<compile_context>
chip_gen: v5e
topology: v5e:2x2
jax: 0.10.0
libtpu: 0.0.40
codegen_flags: <defaults>
</compile_context>

<pallas_src>
import math

import jax
import jax.numpy as jnp
from jax.experimental import pallas as pl

# ---------------- scaled-down ViT-B/16-style config ----------------
BATCH       = 2
IN_CH       = 1          # module replaces conv_proj with Conv2d(1, D, kernel=16, stride=16)
IMG         = 32
PATCH       = 16
HIDDEN      = 64         # D
NUM_LAYERS  = 2
NUM_HEADS   = 4
HEAD_DIM    = HIDDEN // NUM_HEADS
MLP_DIM     = 128
NUM_CLASSES = 6          # module replaces heads.head with Linear(D, 6)
LN_EPS      = 1e-6       # torchvision ViT uses LayerNorm(eps=1e-6)
HEAD_PAD    = 128        # lane-dense padded width for logits / vector slabs

PATCH_DIM = IN_CH * PATCH * PATCH        # 256
N_PATCHES = (IMG // PATCH) ** 2          # 4
SEQ       = N_PATCHES + 1                # 5 (= 4 patches + class token)
S_PAD     = 8                            # per-image rows padded to a full sublane group
BS        = BATCH * S_PAD                # 16 rows: both images, padded
HSTACK    = NUM_HEADS * BS               # 64 rows: heads stacked along sublanes

# "globals" slab row layout
GROW_LNF_G  = BS                         # 16
GROW_LNF_B  = BS + 1                     # 17
GROW_HEAD_B = BS + 2                     # 18
GROW_MASK   = 24                         # 24 .. 24 + HSTACK
GLOB_ROWS   = GROW_MASK + HSTACK         # 88

# per-layer vector slab row layout
LV_LN1_G, LV_LN1_B, LV_OUT_B, LV_LN2_G, LV_LN2_B, LV_FC1_B, LV_FC2_B = range(7)
LVEC_ROWS = 8


# ---------------------------- in-kernel helpers ----------------------------

def _erf(x):
    # Abramowitz & Stegun 7.1.26 rational approximation (max abs err ~1.5e-7),
    # built only from ops guaranteed to lower on the VPU/EUP.
    ax = jnp.abs(x)
    t = 1.0 / (1.0 + 0.3275911 * ax)
    poly = t * (0.254829592 + t * (-0.284496736 + t * (1.421413741
             + t * (-1.453152027 + t * 1.061405429))))
    y = 1.0 - poly * jnp.exp(-ax * ax)
    return jnp.where(x < 0, -y, y)


def _gelu_exact(x):
    # PyTorch nn.GELU() default is the exact erf-based GELU.
    return 0.5 * x * (1.0 + _erf(x * (1.0 / math.sqrt(2.0))))


def _ln(x, g, b):
    # Row-wise LayerNorm over the last dim (biased variance, like torch).
    mean = jnp.mean(x, axis=-1, keepdims=True)
    cent = x - mean
    var = jnp.mean(cent * cent, axis=-1, keepdims=True)
    return cent * jax.lax.rsqrt(var + LN_EPS) * g + b


# --------------------------- fused whole-model kernel ---------------------------

def _vit_kernel(patches_ref, glob_ref, patch_w_ref, w_qkv_ref, b_qkv_ref,
                w_out_ref, w_fc1_ref, w_fc2_ref, lvec_ref, head_w_ref, out_ref):
    f32, bf16 = jnp.float32, jnp.bfloat16

    # ---- patch projection (conv_proj as per-patch linear); cls token, pos embedding and
    #      the conv bias are pre-folded into the wrapper-built seq_base rows ----
    tok = jnp.dot(patches_ref[...], patch_w_ref[...],
                  preferred_element_type=f32)                        # (B*Np, D) = (8, 64)
    zero1 = jnp.zeros((1, HIDDEN), f32)
    zpad = jnp.zeros((S_PAD - SEQ, HIDDEN), f32)
    rows = []
    for b in range(BATCH):
        rows.append(jnp.concatenate(
            [zero1, tok[b * N_PATCHES:(b + 1) * N_PATCHES], zpad], axis=0))
    seq = glob_ref[0:BS, 0:HIDDEN] + jnp.concatenate(rows, axis=0)   # (16, 64)
    # encoder / attention / MLP dropouts are identity in eval mode.

    # static block-diagonal mask (heads x images x valid keys), built in the wrapper
    mask = glob_ref[GROW_MASK:GROW_MASK + HSTACK, 0:HSTACK]          # (64, 64)

    scale = 1.0 / math.sqrt(HEAD_DIM)
    for l in range(NUM_LAYERS):
        lv = lvec_ref[l]                                             # (8, 128)
        ln1_g = lv[LV_LN1_G:LV_LN1_G + 1, 0:HIDDEN]
        ln1_b = lv[LV_LN1_B:LV_LN1_B + 1, 0:HIDDEN]
        out_b = lv[LV_OUT_B:LV_OUT_B + 1, 0:HIDDEN]
        ln2_g = lv[LV_LN2_G:LV_LN2_G + 1, 0:HIDDEN]
        ln2_b = lv[LV_LN2_B:LV_LN2_B + 1, 0:HIDDEN]
        fc1_b = lv[LV_FC1_B:LV_FC1_B + 1, 0:MLP_DIM]
        fc2_b = lv[LV_FC2_B:LV_FC2_B + 1, 0:HIDDEN]

        # ---- self-attention sub-block ----
        y = _ln(seq, ln1_g, ln1_b).astype(bf16)                      # (16, 64)
        qs, ks, vs = [], [], []
        for h in range(NUM_HEADS):                                   # per-head weights via
            qs.append(jnp.dot(y, w_qkv_ref[l, h * 3 + 0],            # leading-dim indexing
                              preferred_element_type=f32))           # -> no lane slicing
            ks.append(jnp.dot(y, w_qkv_ref[l, h * 3 + 1],
                              preferred_element_type=f32))
            vs.append(jnp.dot(y, w_qkv_ref[l, h * 3 + 2],
                              preferred_element_type=f32))
        q = jnp.concatenate(qs, axis=0) + b_qkv_ref[l, 0]            # (64, 16): heads stacked
        k = jnp.concatenate(ks, axis=0) + b_qkv_ref[l, 1]            # along sublanes
        v = jnp.concatenate(vs, axis=0) + b_qkv_ref[l, 2]

        # one masked (64, 64) score block -> one softmax pass for all heads & both images
        s = jax.lax.dot_general(q.astype(bf16), k.astype(bf16),
                                (((1,), (1,)), ((), ())),
                                preferred_element_type=f32) * scale + mask
        m = jnp.max(s, axis=-1, keepdims=True)
        e = jnp.exp(s - m)
        p = e * pl.reciprocal(jnp.sum(e, axis=-1, keepdims=True), approx=True)
        o = jnp.dot(p.astype(bf16), v.astype(bf16),
                    preferred_element_type=f32)                      # (64, 16)

        ao = out_b                                                   # out-proj accumulated
        for h in range(NUM_HEADS):                                   # per head (no attn_sc)
            ao = ao + jnp.dot(o[h * BS:(h + 1) * BS, :].astype(bf16), w_out_ref[l, h],
                              preferred_element_type=f32)            # (16, 64)
        seq = seq + ao

        # ---- MLP sub-block ----
        z = _ln(seq, ln2_g, ln2_b).astype(bf16)
        h1 = _gelu_exact(jnp.dot(z, w_fc1_ref[l], preferred_element_type=f32) + fc1_b)
        h2 = jnp.dot(h1.astype(bf16), w_fc2_ref[l], preferred_element_type=f32) + fc2_b
        seq = seq + h2

    # ---- final LayerNorm on the class tokens + lane-dense padded classification head ----
    cls_rows = jnp.concatenate([seq[b * S_PAD:b * S_PAD + 1, :] for b in range(BATCH)],
                               axis=0)                               # (B, 64)
    yf = _ln(cls_rows,
             glob_ref[GROW_LNF_G:GROW_LNF_G + 1, 0:HIDDEN],
             glob_ref[GROW_LNF_B:GROW_LNF_B + 1, 0:HIDDEN])
    out_ref[...] = (jnp.dot(yf.astype(bf16), head_w_ref[...], preferred_element_type=f32)
                    + glob_ref[GROW_HEAD_B:GROW_HEAD_B + 1, :])      # (B, 128)


# ------------------------------ forward pass ------------------------------

def vit_forward(params, x):
    # x: (N, 1, H, W), NCHW float32 (same as the PyTorch module input)
    n, c, h, w = x.shape
    assert (n, c, h, w) == (BATCH, IN_CH, IMG, IMG)
    nh, nw = h // PATCH, w // PATCH

    # im2col for the stride-16 conv_proj (non-overlapping patches); the projection matmul
    # itself happens inside the fused kernel.
    patches = x.reshape(n, c, nh, PATCH, nw, PATCH)
    patches = patches.transpose(0, 2, 4, 1, 3, 5).reshape(n * nh * nw, PATCH_DIM)
    patches = patches.astype(jnp.bfloat16)

    layers = params["layers"]

    # ---- globals slab: assembled seq base (cls + pos + conv bias, padded to 8 rows per
    #      image), final-LN params, padded head bias, and the static attention mask ----
    pos = params["pos_embed"].reshape(SEQ, HIDDEN)
    cls = params["cls_token"].reshape(1, HIDDEN)
    patch_b = params["patch_b"].reshape(1, HIDDEN)
    per_img = jnp.concatenate(
        [cls + pos[0:1], pos[1:SEQ] + patch_b,
         jnp.zeros((S_PAD - SEQ, HIDDEN), jnp.float32)], axis=0)            # (8, 64)
    seq_base = jnp.tile(per_img, (BATCH, 1))                                # (16, 64)

    r = jnp.arange(HSTACK)[:, None]
    col = jnp.arange(HSTACK)[None, :]
    ok = ((r // BS) == (col // BS)) \
        & (((r % BS) // S_PAD) == ((col % BS) // S_PAD)) \
        & ((col % S_PAD) < SEQ)
    mask = jnp.where(ok, 0.0, -1e30).astype(jnp.float32)                    # (64, 64)

    gslab = jnp.zeros((GLOB_ROWS, HEAD_PAD), jnp.float32)
    gslab = gslab.at[0:BS, 0:HIDDEN].set(seq_base)
    gslab = gslab.at[GROW_LNF_G, 0:HIDDEN].set(params["ln_g"])
    gslab = gslab.at[GROW_LNF_B, 0:HIDDEN].set(params["ln_b"])
    gslab = gslab.at[GROW_HEAD_B, 0:NUM_CLASSES].set(params["head_b"])
    gslab = gslab.at[GROW_MASK:GROW_MASK + HSTACK, 0:HSTACK].set(mask)

    # ---- per-layer packed weights (bf16 MXU operands, f32 bias/LN vectors) ----
    def qkv_perm(wqkv):   # (D, 3D) -> (3*H, D, Dh); entry index j = h*3 + c, c in {q,k,v}
        w4 = wqkv.reshape(HIDDEN, 3, NUM_HEADS, HEAD_DIM)
        return w4.transpose(2, 1, 0, 3).reshape(3 * NUM_HEADS, HIDDEN, HEAD_DIM)

    def qkvb_perm(bqkv):  # (3D,) -> (3, H*BS, Dh): per-head bias broadcast over stacked rows
        b4 = bqkv.reshape(3, NUM_HEADS, 1, HEAD_DIM)
        b4 = jnp.broadcast_to(b4, (3, NUM_HEADS, BS, HEAD_DIM))
        return b4.reshape(3, HSTACK, HEAD_DIM)

    w_qkv = jnp.stack([qkv_perm(l["qkv_w"]) for l in layers]).astype(jnp.bfloat16)
    b_qkv = jnp.stack([qkvb_perm(l["qkv_b"]) for l in layers])
    w_out = jnp.stack([l["out_w"].reshape(NUM_HEADS, HEAD_DIM, HIDDEN)
                       for l in layers]).astype(jnp.bfloat16)
    w_fc1 = jnp.stack([l["fc1_w"] for l in layers]).astype(jnp.bfloat16)
    w_fc2 = jnp.stack([l["fc2_w"] for l in layers]).astype(jnp.bfloat16)

    lvec = jnp.zeros((NUM_LAYERS, LVEC_ROWS, HEAD_PAD), jnp.float32)
    for i, lyr in enumerate(layers):
        lvec = lvec.at[i, LV_LN1_G, 0:HIDDEN].set(lyr["ln1_g"])
        lvec = lvec.at[i, LV_LN1_B, 0:HIDDEN].set(lyr["ln1_b"])
        lvec = lvec.at[i, LV_OUT_B, 0:HIDDEN].set(lyr["out_b"])
        lvec = lvec.at[i, LV_LN2_G, 0:HIDDEN].set(lyr["ln2_g"])
        lvec = lvec.at[i, LV_LN2_B, 0:HIDDEN].set(lyr["ln2_b"])
        lvec = lvec.at[i, LV_FC1_B, 0:MLP_DIM].set(lyr["fc1_b"])
        lvec = lvec.at[i, LV_FC2_B, 0:HIDDEN].set(lyr["fc2_b"])

    patch_w = params["patch_w"].astype(jnp.bfloat16)
    head_w = jnp.pad(params["head_w"],
                     ((0, 0), (0, HEAD_PAD - NUM_CLASSES))).astype(jnp.bfloat16)

    # Single fused invocation: no grid, every operand is one full-array VMEM block
    # (total resident weights/activations ~0.3 MiB, far under any VMEM limit).
    # TODO(synk): on v7x (2 TensorCores) a batch grid axis marked "parallel" (one image per
    # core) would roughly halve wall clock; single-step is optimal on v5e/v6e.
    logits_pad = pl.pallas_call(
        _vit_kernel,
        out_shape=jax.ShapeDtypeStruct((BATCH, HEAD_PAD), jnp.float32),
    )(patches, gslab, patch_w, w_qkv, b_qkv, w_out, w_fc1, w_fc2, lvec, head_w)

    return logits_pad[:, :NUM_CLASSES]


# --------------------------- deterministic init ---------------------------

def init_params(key):
    keys = iter(jax.random.split(key, 8 + 8 * NUM_LAYERS))

    def nrm(shape, std=0.02):
        return (std * jax.random.normal(next(keys), shape)).astype(jnp.float32)

    params = {
        # == Conv2d(1, D, 16, 16).weight of shape (D,1,16,16), flattened to (256, D)
        "patch_w": nrm((PATCH_DIM, HIDDEN)),
        "patch_b": jnp.zeros((HIDDEN,), jnp.float32),
        "cls_token": nrm((1, 1, HIDDEN)),
        "pos_embed": nrm((1, SEQ, HIDDEN)),
        "ln_g": jnp.ones((HIDDEN,), jnp.float32),
        "ln_b": jnp.zeros((HIDDEN,), jnp.float32),
        "head_w": nrm((HIDDEN, NUM_CLASSES)),
        "head_b": jnp.zeros((NUM_CLASSES,), jnp.float32),
        "layers": [],
    }
    for _ in range(NUM_LAYERS):
        params["layers"].append({
            "ln1_g": jnp.ones((HIDDEN,), jnp.float32),
            "ln1_b": jnp.zeros((HIDDEN,), jnp.float32),
            "qkv_w": nrm((HIDDEN, 3 * HIDDEN)),     # packed [q|k|v] like in_proj_weight (x @ W)
            "qkv_b": jnp.zeros((3 * HIDDEN,), jnp.float32),
            "out_w": nrm((HIDDEN, HIDDEN)),
            "out_b": jnp.zeros((HIDDEN,), jnp.float32),
            "ln2_g": jnp.ones((HIDDEN,), jnp.float32),
            "ln2_b": jnp.zeros((HIDDEN,), jnp.float32),
            "fc1_w": nrm((HIDDEN, MLP_DIM)),
            "fc1_b": jnp.zeros((MLP_DIM,), jnp.float32),
            "fc2_w": nrm((MLP_DIM, HIDDEN)),
            "fc2_b": jnp.zeros((HIDDEN,), jnp.float32),
        })
    return params


if __name__ == "__main__":
    root = jax.random.PRNGKey(0)
    pkey, xkey = jax.random.split(root)
    params = init_params(pkey)
    x = jax.random.normal(xkey, (BATCH, IN_CH, IMG, IMG), dtype=jnp.float32)

    logits = jax.jit(vit_forward)(params, x)
    logits = jax.block_until_ready(logits)

    assert logits.shape == (BATCH, NUM_CLASSES)
    assert logits.dtype == jnp.float32
    assert bool(jnp.all(jnp.isfinite(logits)))
    print("KERNEL_OK")
</pallas_src>

<mosaic_0001>
module attributes {stable_mosaic.version = 11 : i64} {
  func.func @_vit_kernel(%arg0: memref<8x256xbf16, #tpu.memory_space<vmem>>, %arg1: memref<88x128xf32, #tpu.memory_space<vmem>>, %arg2: memref<256x64xbf16, #tpu.memory_space<vmem>>, %arg3: memref<2x12x64x16xbf16, #tpu.memory_space<vmem>>, %arg4: memref<2x3x64x16xf32, #tpu.memory_space<vmem>>, %arg5: memref<2x4x16x64xbf16, #tpu.memory_space<vmem>>, %arg6: memref<2x64x128xbf16, #tpu.memory_space<vmem>>, %arg7: memref<2x128x64xbf16, #tpu.memory_space<vmem>>, %arg8: memref<2x8x128xf32, #tpu.memory_space<vmem>>, %arg9: memref<64x128xbf16, #tpu.memory_space<vmem>>, %arg10: memref<2x128xf32, #tpu.memory_space<vmem>>) attributes {dimension_semantics = [], scalar_prefetch = 0 : i64, scratch_operands = 0 : i64, tpu.core_type = #tpu.core_type<tc>} {
    %c0 = arith.constant 0 : index
    %c0_0 = arith.constant 0 : index
    %0 = vector.load %arg0[%c0, %c0_0] : memref<8x256xbf16, #tpu.memory_space<vmem>>, vector<8x256xbf16>
    %c0_1 = arith.constant 0 : index
    %c0_2 = arith.constant 0 : index
    %1 = vector.load %arg2[%c0_1, %c0_2] : memref<256x64xbf16, #tpu.memory_space<vmem>>, vector<256x64xbf16>
    %cst = arith.constant dense<0.000000e+00> : vector<8x64xf32>
    %2 = tpu.matmul %0, %1, %cst {dimension_numbers = #tpu.dot_dimension_numbers<[1], [0], [0], [1], [0, 0, 1, 1], [], []>} : vector<8x256xbf16>, vector<256x64xbf16>, vector<8x64xf32> -> vector<8x64xf32>
    %cst_3 = arith.constant 0.000000e+00 : f32
    %3 = vector.broadcast %cst_3 : f32 to vector<1x64xf32>
    %cst_4 = arith.constant 0.000000e+00 : f32
    %4 = vector.broadcast %cst_4 : f32 to vector<3x64xf32>
    %5 = vector.extract_strided_slice %2 {offsets = [0, 0], sizes = [4, 64], strides = [1, 1]} : vector<8x64xf32> to vector<4x64xf32>
    %6 = tpu.concatenate %3, %5, %4 in 0 : vector<1x64xf32>, vector<4x64xf32>, vector<3x64xf32> -> vector<8x64xf32>
    %7 = vector.extract_strided_slice %2 {offsets = [4, 0], sizes = [4, 64], strides = [1, 1]} : vector<8x64xf32> to vector<4x64xf32>
    %8 = tpu.concatenate %3, %7, %4 in 0 : vector<1x64xf32>, vector<4x64xf32>, vector<3x64xf32> -> vector<8x64xf32>
    %c0_5 = arith.constant 0 : index
    %c0_6 = arith.constant 0 : index
    %9 = vector.load %arg1[%c0_5, %c0_6] : memref<88x128xf32, #tpu.memory_space<vmem>>, vector<16x64xf32>
    %10 = tpu.concatenate %6, %8 in 0 : vector<8x64xf32>, vector<8x64xf32> -> vector<16x64xf32>
    %11 = arith.addf %9, %10 : vector<16x64xf32>
    %c24 = arith.constant 24 : index
    %c0_7 = arith.constant 0 : index
    %12 = vector.load %arg1[%c24, %c0_7] : memref<88x128xf32, #tpu.memory_space<vmem>>, vector<64x64xf32>
    %c0_8 = arith.constant 0 : index
    %c0_9 = arith.constant 0 : index
    %c0_10 = arith.constant 0 : index
    %13 = vector.load %arg8[%c0_8, %c0_9, %c0_10] : memref<2x8x128xf32, #tpu.memory_space<vmem>>, vector<1x8x128xf32>
    %14 = vector.shape_cast %13 : vector<1x8x128xf32> to vector<8x128xf32>
    %15 = vector.extract_strided_slice %14 {offsets = [0, 0], sizes = [1, 64], strides = [1, 1]} : vector<8x128xf32> to vector<1x64xf32>
    %16 = vector.extract_strided_slice %14 {offsets = [1, 0], sizes = [1, 64], strides = [1, 1]} : vector<8x128xf32> to vector<1x64xf32>
    %17 = vector.extract_strided_slice %14 {offsets = [2, 0], sizes = [1, 64], strides = [1, 1]} : vector<8x128xf32> to vector<1x64xf32>
    %18 = vector.extract_strided_slice %14 {offsets = [3, 0], sizes = [1, 64], strides = [1, 1]} : vector<8x128xf32> to vector<1x64xf32>
    %19 = vector.extract_strided_slice %14 {offsets = [4, 0], sizes = [1, 64], strides = [1, 1]} : vector<8x128xf32> to vector<1x64xf32>
    %20 = vector.extract_strided_slice %14 {offsets = [5, 0], sizes = [1, 128], strides = [1, 1]} : vector<8x128xf32> to vector<1x128xf32>
    %21 = vector.extract_strided_slice %14 {offsets = [6, 0], sizes = [1, 64], strides = [1, 1]} : vector<8x128xf32> to vector<1x64xf32>
    %cst_11 = arith.constant dense<0.000000e+00> : vector<16xf32>
    %22 = vector.multi_reduction <add>, %11, %cst_11 [1] : vector<16x64xf32> to vector<16xf32>
    %23 = vector.shape_cast %22 : vector<16xf32> to vector<16x1xf32>
    %cst_12 = arith.constant 6.400000e+01 : f32
    %24 = vector.broadcast %cst_12 : f32 to vector<16x1xf32>
    %25 = arith.divf %23, %24 : vector<16x1xf32>
    %26 = vector.broadcast %25 : vector<16x1xf32> to vector<16x64xf32>
    %27 = arith.subf %11, %26 : vector<16x64xf32>
    %28 = arith.mulf %27, %27 : vector<16x64xf32>
    %cst_13 = arith.constant dense<0.000000e+00> : vector<16xf32>
    %29 = vector.multi_reduction <add>, %28, %cst_13 [1] : vector<16x64xf32> to vector<16xf32>
    %30 = vector.shape_cast %29 : vector<16xf32> to vector<16x1xf32>
    %cst_14 = arith.constant 6.400000e+01 : f32
    %31 = vector.broadcast %cst_14 : f32 to vector<16x1xf32>
    %32 = arith.divf %30, %31 : vector<16x1xf32>
    %cst_15 = arith.constant 9.99999997E-7 : f32
    %33 = vector.broadcast %cst_15 : f32 to vector<16x1xf32>
    %34 = arith.addf %32, %33 : vector<16x1xf32>
    %35 = math.rsqrt %34 : vector<16x1xf32>
    %36 = vector.broadcast %35 : vector<16x1xf32> to vector<16x64xf32>
    %37 = arith.mulf %27, %36 : vector<16x64xf32>
    %38 = vector.broadcast %15 : vector<1x64xf32> to vector<16x64xf32>
    %39 = arith.mulf %37, %38 : vector<16x64xf32>
    %40 = vector.broadcast %16 : vector<1x64xf32> to vector<16x64xf32>
    %41 = arith.addf %39, %40 : vector<16x64xf32>
    %42 = arith.truncf %41 : vector<16x64xf32> to vector<16x64xbf16>
    %c0_16 = arith.constant 0 : index
    %c0_17 = arith.constant 0 : index
    %c0_18 = arith.constant 0 : index
    %c0_19 = arith.constant 0 : index
    %43 = vector.load %arg3[%c0_16, %c0_17, %c0_18, %c0_19] : memref<2x12x64x16xbf16, #tpu.memory_space<vmem>>, vector<1x1x64x16xbf16>
    %44 = vector.shape_cast %43 : vector<1x1x64x16xbf16> to vector<64x16xbf16>
    %cst_20 = arith.constant dense<0.000000e+00> : vector<16x16xf32>
    %45 = tpu.matmul %42, %44, %cst_20 {dimension_numbers = #tpu.dot_dimension_numbers<[1], [0], [0], [1], [0, 0, 1, 1], [], []>} : vector<16x64xbf16>, vector<64x16xbf16>, vector<16x16xf32> -> vector<16x16xf32>
    %c0_21 = arith.constant 0 : index
    %c1 = arith.constant 1 : index
    %c0_22 = arith.constant 0 : index
    %c0_23 = arith.constant 0 : index
    %46 = vector.load %arg3[%c0_21, %c1, %c0_22, %c0_23] : memref<2x12x64x16xbf16, #tpu.memory_space<vmem>>, vector<1x1x64x16xbf16>
    %47 = vector.shape_cast %46 : vector<1x1x64x16xbf16> to vector<64x16xbf16>
    %cst_24 = arith.constant dense<0.000000e+00> : vector<16x16xf32>
    %48 = tpu.matmul %42, %47, %cst_24 {dimension_numbers = #tpu.dot_dimension_numbers<[1], [0], [0], [1], [0, 0, 1, 1], [], []>} : vector<16x64xbf16>, vector<64x16xbf16>, vector<16x16xf32> -> vector<16x16xf32>
    %c0_25 = arith.constant 0 : index
    %c2 = arith.constant 2 : index
    %c0_26 = arith.constant 0 : index
    %c0_27 = arith.constant 0 : index
    %49 = vector.load %arg3[%c0_25, %c2, %c0_26, %c0_27] : memref<2x12x64x16xbf16, #tpu.memory_space<vmem>>, vector<1x1x64x16xbf16>
    %50 = vector.shape_cast %49 : vector<1x1x64x16xbf16> to vector<64x16xbf16>
    %cst_28 = arith.constant dense<0.000000e+00> : vector<16x16xf32>
    %51 = tpu.matmul %42, %50, %cst_28 {dimension_numbers = #tpu.dot_dimension_numbers<[1], [0], [0], [1], [0, 0, 1, 1], [], []>} : vector<16x64xbf16>, vector<64x16xbf16>, vector<16x16xf32> -> vector<16x16xf32>
    %c0_29 = arith.constant 0 : index
    %c3 = arith.constant 3 : index
    %c0_30 = arith.constant 0 : index
    %c0_31 = arith.constant 0 : index
    %52 = vector.load %arg3[%c0_29, %c3, %c0_30, %c0_31] : memref<2x12x64x16xbf16, #tpu.memory_space<vmem>>, vector<1x1x64x16xbf16>
    %53 = vector.shape_cast %52 : vector<1x1x64x16xbf16> to vector<64x16xbf16>
    %cst_32 = arith.constant dense<0.000000e+00> : vector<16x16xf32>
    %54 = tpu.matmul %42, %53, %cst_32 {dimension_numbers = #tpu.dot_dimension_numbers<[1], [0], [0], [1], [0, 0, 1, 1], [], []>} : vector<16x64xbf16>, vector<64x16xbf16>, vector<16x16xf32> -> vector<16x16xf32>
    %c0_33 = arith.constant 0 : index
    %c4 = arith.constant 4 : index
    %c0_34 = arith.constant 0 : index
    %c0_35 = arith.constant 0 : index
    %55 = vector.load %arg3[%c0_33, %c4, %c0_34, %c0_35] : memref<2x12x64x16xbf16, #tpu.memory_space<vmem>>, vector<1x1x64x16xbf16>
    %56 = vector.shape_cast %55 : vector<1x1x64x16xbf16> to vector<64x16xbf16>
    %cst_36 = arith.constant dense<0.000000e+00> : vector<16x16xf32>
    %57 = tpu.matmul %42, %56, %cst_36 {dimension_numbers = #tpu.dot_dimension_numbers<[1], [0], [0], [1], [0, 0, 1, 1], [], []>} : vector<16x64xbf16>, vector<64x16xbf16>, vector<16x16xf32> -> vector<16x16xf32>
    %c0_37 = arith.constant 0 : index
    %c5 = arith.constant 5 : index
    %c0_38 = arith.constant 0 : index
    %c0_39 = arith.constant 0 : index
    %58 = vector.load %arg3[%c0_37, %c5, %c0_38, %c0_39] : memref<2x12x64x16xbf16, #tpu.memory_space<vmem>>, vector<1x1x64x16xbf16>
    %59 = vector.shape_cast %58 : vector<1x1x64x16xbf16> to vector<64x16xbf16>
    %cst_40 = arith.constant dense<0.000000e+00> : vector<16x16xf32>
    %60 = tpu.matmul %42, %59, %cst_40 {dimension_numbers = #tpu.dot_dimension_numbers<[1], [0], [0], [1], [0, 0, 1, 1], [], []>} : vector<16x64xbf16>, vector<64x16xbf16>, vector<16x16xf32> -> vector<16x16xf32>
    %c0_41 = arith.constant 0 : index
    %c6 = arith.constant 6 : index
    %c0_42 = arith.constant 0 : index
    %c0_43 = arith.constant 0 : index
    %61 = vector.load %arg3[%c0_41, %c6, %c0_42, %c0_43] : memref<2x12x64x16xbf16, #tpu.memory_space<vmem>>, vector<1x1x64x16xbf16>
    %62 = vector.shape_cast %61 : vector<1x1x64x16xbf16> to vector<64x16xbf16>
    %cst_44 = arith.constant dense<0.000000e+00> : vector<16x16xf32>
    %63 = tpu.matmul %42, %62, %cst_44 {dimension_numbers = #tpu.dot_dimension_numbers<[1], [0], [0], [1], [0, 0, 1, 1], [], []>} : vector<16x64xbf16>, vector<64x16xbf16>, vector<16x16xf32> -> vector<16x16xf32>
    %c0_45 = arith.constant 0 : index
    %c7 = arith.constant 7 : index
    %c0_46 = arith.constant 0 : index
    %c0_47 = arith.constant 0 : index
    %64 = vector.load %arg3[%c0_45, %c7, %c0_46, %c0_47] : memref<2x12x64x16xbf16, #tpu.memory_space<vmem>>, vector<1x1x64x16xbf16>
    %65 = vector.shape_cast %64 : vector<1x1x64x16xbf16> to vector<64x16xbf16>
    %cst_48 = arith.constant dense<0.000000e+00> : vector<16x16xf32>
    %66 = tpu.matmul %42, %65, %cst_48 {dimension_numbers = #tpu.dot_dimension_numbers<[1], [0], [0], [1], [0, 0, 1, 1], [], []>} : vector<16x64xbf16>, vector<64x16xbf16>, vector<16x16xf32> -> vector<16x16xf32>
    %c0_49 = arith.constant 0 : index
    %c8 = arith.constant 8 : index
    %c0_50 = arith.constant 0 : index
    %c0_51 = arith.constant 0 : index
    %67 = vector.load %arg3[%c0_49, %c8, %c0_50, %c0_51] : memref<2x12x64x16xbf16, #tpu.memory_space<vmem>>, vector<1x1x64x16xbf16>
    %68 = vector.shape_cast %67 : vector<1x1x64x16xbf16> to vector<64x16xbf16>
    %cst_52 = arith.constant dense<0.000000e+00> : vector<16x16xf32>
    %69 = tpu.matmul %42, %68, %cst_52 {dimension_numbers = #tpu.dot_dimension_numbers<[1], [0], [0], [1], [0, 0, 1, 1], [], []>} : vector<16x64xbf16>, vector<64x16xbf16>, vector<16x16xf32> -> vector<16x16xf32>
    %c0_53 = arith.constant 0 : index
    %c9 = arith.constant 9 : index
    %c0_54 = arith.constant 0 : index
    %c0_55 = arith.constant 0 : index
    %70 = vector.load %arg3[%c0_53, %c9, %c0_54, %c0_55] : memref<2x12x64x16xbf16, #tpu.memory_space<vmem>>, vector<1x1x64x16xbf16>
    %71 = vector.shape_cast %70 : vector<1x1x64x16xbf16> to vector<64x16xbf16>
    %cst_56 = arith.constant dense<0.000000e+00> : vector<16x16xf32>
    %72 = tpu.matmul %42, %71, %cst_56 {dimension_numbers = #tpu.dot_dimension_numbers<[1], [0], [0], [1], [0, 0, 1, 1], [], []>} : vector<16x64xbf16>, vector<64x16xbf16>, vector<16x16xf32> -> vector<16x16xf32>
    %c0_57 = arith.constant 0 : index
    %c10 = arith.constant 10 : index
    %c0_58 = arith.constant 0 : index
    %c0_59 = arith.constant 0 : index
    %73 = vector.load %arg3[%c0_57, %c10, %c0_58, %c0_59] : memref<2x12x64x16xbf16, #tpu.memory_space<vmem>>, vector<1x1x64x16xbf16>
    %74 = vector.shape_cast %73 : vector<1x1x64x16xbf16> to vector<64x16xbf16>
    %cst_60 = arith.constant dense<0.000000e+00> : vector<16x16xf32>
    %75 = tpu.matmul %42, %74, %cst_60 {dimension_numbers = #tpu.dot_dimension_numbers<[1], [0], [0], [1], [0, 0, 1, 1], [], []>} : vector<16x64xbf16>, vector<64x16xbf16>, vector<16x16xf32> -> vector<16x16xf32>
    %c0_61 = arith.constant 0 : index
    %c11 = arith.constant 11 : index
    %c0_62 = arith.constant 0 : index
    %c0_63 = arith.constant 0 : index
    %76 = vector.load %arg3[%c0_61, %c11, %c0_62, %c0_63] : memref<2x12x64x16xbf16, #tpu.memory_space<vmem>>, vector<1x1x64x16xbf16>
    %77 = vector.shape_cast %76 : vector<1x1x64x16xbf16> to vector<64x16xbf16>
    %cst_64 = arith.constant dense<0.000000e+00> : vector<16x16xf32>
    %78 = tpu.matmul %42, %77, %cst_64 {dimension_numbers = #tpu.dot_dimension_numbers<[1], [0], [0], [1], [0, 0, 1, 1], [], []>} : vector<16x64xbf16>, vector<64x16xbf16>, vector<16x16xf32> -> vector<16x16xf32>
    %79 = tpu.concatenate %45, %54, %63, %72 in 0 : vector<16x16xf32>, vector<16x16xf32>, vector<16x16xf32>, vector<16x16xf32> -> vector<64x16xf32>
    %c0_65 = arith.constant 0 : index
    %c0_66 = arith.constant 0 : index
    %c0_67 = arith.constant 0 : index
    %c0_68 = arith.constant 0 : index
    %80 = vector.load %arg4[%c0_65, %c0_66, %c0_67, %c0_68] : memref<2x3x64x16xf32, #tpu.memory_space<vmem>>, vector<1x1x64x16xf32>
    %81 = vector.shape_cast %80 : vector<1x1x64x16xf32> to vector<64x16xf32>
    %82 = arith.addf %79, %81 : vector<64x16xf32>
    %83 = tpu.concatenate %48, %57, %66, %75 in 0 : vector<16x16xf32>, vector<16x16xf32>, vector<16x16xf32>, vector<16x16xf32> -> vector<64x16xf32>
    %c0_69 = arith.constant 0 : index
    %c1_70 = arith.constant 1 : index
    %c0_71 = arith.constant 0 : index
    %c0_72 = arith.constant 0 : index
    %84 = vector.load %arg4[%c0_69, %c1_70, %c0_71, %c0_72] : memref<2x3x64x16xf32, #tpu.memory_space<vmem>>, vector<1x1x64x16xf32>
    %85 = vector.shape_cast %84 : vector<1x1x64x16xf32> to vector<64x16xf32>
    %86 = arith.addf %83, %85 : vector<64x16xf32>
    %87 = tpu.concatenate %51, %60, %69, %78 in 0 : vector<16x16xf32>, vector<16x16xf32>, vector<16x16xf32>, vector<16x16xf32> -> vector<64x16xf32>
    %c0_73 = arith.constant 0 : index
    %c2_74 = arith.constant 2 : index
    %c0_75 = arith.constant 0 : index
    %c0_76 = arith.constant 0 : index
    %88 = vector.load %arg4[%c0_73, %c2_74, %c0_75, %c0_76] : memref<2x3x64x16xf32, #tpu.memory_space<vmem>>, vector<1x1x64x16xf32>
    %89 = vector.shape_cast %88 : vector<1x1x64x16xf32> to vector<64x16xf32>
    %90 = arith.addf %87, %89 : vector<64x16xf32>
    %91 = arith.truncf %82 : vector<64x16xf32> to vector<64x16xbf16>
    %92 = arith.truncf %86 : vector<64x16xf32> to vector<64x16xbf16>
    %cst_77 = arith.constant dense<0.000000e+00> : vector<64x64xf32>
    %93 = tpu.matmul %91, %92, %cst_77 {dimension_numbers = #tpu.dot_dimension_numbers<[1], [1], [0], [0], [0, 0, 1, 0], [], []>} : vector<64x16xbf16>, vector<64x16xbf16>, vector<64x64xf32> -> vector<64x64xf32>
    %cst_78 = arith.constant 2.500000e-01 : f32
    %94 = vector.broadcast %cst_78 : f32 to vector<64x64xf32>
    %95 = arith.mulf %93, %94 : vector<64x64xf32>
    %96 = arith.addf %95, %12 : vector<64x64xf32>
    %cst_79 = arith.constant dense<0xFF800000> : vector<64xf32>
    %97 = vector.multi_reduction <maximumf>, %96, %cst_79 [1] : vector<64x64xf32> to vector<64xf32>
    %98 = vector.shape_cast %97 : vector<64xf32> to vector<64x1xf32>
    %99 = vector.broadcast %98 : vector<64x1xf32> to vector<64x64xf32>
    %100 = arith.subf %96, %99 : vector<64x64xf32>
    %101 = math.exp %100 : vector<64x64xf32>
    %cst_80 = arith.constant dense<0.000000e+00> : vector<64xf32>
    %102 = vector.multi_reduction <add>, %101, %cst_80 [1] : vector<64x64xf32> to vector<64xf32>
    %103 = vector.shape_cast %102 : vector<64xf32> to vector<64x1xf32>
    %104 = tpu.reciprocal %103 {approx = true} : vector<64x1xf32> -> vector<64x1xf32>
    %105 = vector.broadcast %104 : vector<64x1xf32> to vector<64x64xf32>
    %106 = arith.mulf %101, %105 : vector<64x64xf32>
    %107 = arith.truncf %106 : vector<64x64xf32> to vector<64x64xbf16>
    %108 = arith.truncf %90 : vector<64x16xf32> to vector<64x16xbf16>
    %cst_81 = arith.constant dense<0.000000e+00> : vector<64x16xf32>
    %109 = tpu.matmul %107, %108, %cst_81 {dimension_numbers = #tpu.dot_dimension_numbers<[1], [0], [0], [1], [0, 0, 1, 1], [], []>} : vector<64x64xbf16>, vector<64x16xbf16>, vector<64x16xf32> -> vector<64x16xf32>
    %110 = vector.extract_strided_slice %109 {offsets = [0, 0], sizes = [16, 16], strides = [1, 1]} : vector<64x16xf32> to vector<16x16xf32>
    %111 = arith.truncf %110 : vector<16x16xf32> to vector<16x16xbf16>
    %c0_82 = arith.constant 0 : index
    %c0_83 = arith.constant 0 : index
    %c0_84 = arith.constant 0 : index
    %c0_85 = arith.constant 0 : index
    %112 = vector.load %arg5[%c0_82, %c0_83, %c0_84, %c0_85] : memref<2x4x16x64xbf16, #tpu.memory_space<vmem>>, vector<1x1x16x64xbf16>
    %113 = vector.shape_cast %112 : vector<1x1x16x64xbf16> to vector<16x64xbf16>
    %cst_86 = arith.constant dense<0.000000e+00> : vector<16x64xf32>
    %114 = tpu.matmul %111, %113, %cst_86 {dimension_numbers = #tpu.dot_dimension_numbers<[1], [0], [0], [1], [0, 0, 1, 1], [], []>} : vector<16x16xbf16>, vector<16x64xbf16>, vector<16x64xf32> -> vector<16x64xf32>
    %115 = vector.broadcast %17 : vector<1x64xf32> to vector<16x64xf32>
    %116 = arith.addf %115, %114 : vector<16x64xf32>
    %117 = vector.extract_strided_slice %109 {offsets = [16, 0], sizes = [16, 16], strides = [1, 1]} : vector<64x16xf32> to vector<16x16xf32>
    %118 = arith.truncf %117 : vector<16x16xf32> to vector<16x16xbf16>
    %c0_87 = arith.constant 0 : index
    %c1_88 = arith.constant 1 : index
    %c0_89 = arith.constant 0 : index
    %c0_90 = arith.constant 0 : index
    %119 = vector.load %arg5[%c0_87, %c1_88, %c0_89, %c0_90] : memref<2x4x16x64xbf16, #tpu.memory_space<vmem>>, vector<1x1x16x64xbf16>
    %120 = vector.shape_cast %119 : vector<1x1x16x64xbf16> to vector<16x64xbf16>
    %cst_91 = arith.constant dense<0.000000e+00> : vector<16x64xf32>
    %121 = tpu.matmul %118, %120, %cst_91 {dimension_numbers = #tpu.dot_dimension_numbers<[1], [0], [0], [1], [0, 0, 1, 1], [], []>} : vector<16x16xbf16>, vector<16x64xbf16>, vector<16x64xf32> -> vector<16x64xf32>
    %122 = arith.addf %116, %121 : vector<16x64xf32>
    %123 = vector.extract_strided_slice %109 {offsets = [32, 0], sizes = [16, 16], strides = [1, 1]} : vector<64x16xf32> to vector<16x16xf32>
    %124 = arith.truncf %123 : vector<16x16xf32> to vector<16x16xbf16>
    %c0_92 = arith.constant 0 : index
    %c2_93 = arith.constant 2 : index
    %c0_94 = arith.constant 0 : index
    %c0_95 = arith.constant 0 : index
    %125 = vector.load %arg5[%c0_92, %c2_93, %c0_94, %c0_95] : memref<2x4x16x64xbf16, #tpu.memory_space<vmem>>, vector<1x1x16x64xbf16>
    %126 = vector.shape_cast %125 : vector<1x1x16x64xbf16> to vector<16x64xbf16>
    %cst_96 = arith.constant dense<0.000000e+00> : vector<16x64xf32>
    %127 = tpu.matmul %124, %126, %cst_96 {dimension_numbers = #tpu.dot_dimension_numbers<[1], [0], [0], [1], [0, 0, 1, 1], [], []>} : vector<16x16xbf16>, vector<16x64xbf16>, vector<16x64xf32> -> vector<16x64xf32>
    %128 = arith.addf %122, %127 : vector<16x64xf32>
    %129 = vector.extract_strided_slice %109 {offsets = [48, 0], sizes = [16, 16], strides = [1, 1]} : vector<64x16xf32> to vector<16x16xf32>
    %130 = arith.truncf %129 : vector<16x16xf32> to vector<16x16xbf16>
    %c0_97 = arith.constant 0 : index
    %c3_98 = arith.constant 3 : index
    %c0_99 = arith.constant 0 : index
    %c0_100 = arith.constant 0 : index
    %131 = vector.load %arg5[%c0_97, %c3_98, %c0_99, %c0_100] : memref<2x4x16x64xbf16, #tpu.memory_space<vmem>>, vector<1x1x16x64xbf16>
    %132 = vector.shape_cast %131 : vector<1x1x16x64xbf16> to vector<16x64xbf16>
    %cst_101 = arith.constant dense<0.000000e+00> : vector<16x64xf32>
    %133 = tpu.matmul %130, %132, %cst_101 {dimension_numbers = #tpu.dot_dimension_numbers<[1], [0], [0], [1], [0, 0, 1, 1], [], []>} : vector<16x16xbf16>, vector<16x64xbf16>, vector<16x64xf32> -> vector<16x64xf32>
    %134 = arith.addf %128, %133 : vector<16x64xf32>
    %135 = arith.addf %11, %134 : vector<16x64xf32>
    %cst_102 = arith.constant dense<0.000000e+00> : vector<16xf32>
    %136 = vector.multi_reduction <add>, %135, %cst_102 [1] : vector<16x64xf32> to vector<16xf32>
    %137 = vector.shape_cast %136 : vector<16xf32> to vector<16x1xf32>
    %cst_103 = arith.constant 6.400000e+01 : f32
    %138 = vector.broadcast %cst_103 : f32 to vector<16x1xf32>
    %139 = arith.divf %137, %138 : vector<16x1xf32>
    %140 = vector.broadcast %139 : vector<16x1xf32> to vector<16x64xf32>
    %141 = arith.subf %135, %140 : vector<16x64xf32>
    %142 = arith.mulf %141, %141 : vector<16x64xf32>
    %cst_104 = arith.constant dense<0.000000e+00> : vector<16xf32>
    %143 = vector.multi_reduction <add>, %142, %cst_104 [1] : vector<16x64xf32> to vector<16xf32>
    %144 = vector.shape_cast %143 : vector<16xf32> to vector<16x1xf32>
    %cst_105 = arith.constant 6.400000e+01 : f32
    %145 = vector.broadcast %cst_105 : f32 to vector<16x1xf32>
    %146 = arith.divf %144, %145 : vector<16x1xf32>
    %cst_106 = arith.constant 9.99999997E-7 : f32
    %147 = vector.broadcast %cst_106 : f32 to vector<16x1xf32>
    %148 = arith.addf %146, %147 : vector<16x1xf32>
    %149 = math.rsqrt %148 : vector<16x1xf32>
    %150 = vector.broadcast %149 : vector<16x1xf32> to vector<16x64xf32>
    %151 = arith.mulf %141, %150 : vector<16x64xf32>
    %152 = vector.broadcast %18 : vector<1x64xf32> to vector<16x64xf32>
    %153 = arith.mulf %151, %152 : vector<16x64xf32>
    %154 = vector.broadcast %19 : vector<1x64xf32> to vector<16x64xf32>
    %155 = arith.addf %153, %154 : vector<16x64xf32>
    %156 = arith.truncf %155 : vector<16x64xf32> to vector<16x64xbf16>
    %c0_107 = arith.constant 0 : index
    %c0_108 = arith.constant 0 : index
    %c0_109 = arith.constant 0 : index
    %157 = vector.load %arg6[%c0_107, %c0_108, %c0_109] : memref<2x64x128xbf16, #tpu.memory_space<vmem>>, vector<1x64x128xbf16>
    %158 = vector.shape_cast %157 : vector<1x64x128xbf16> to vector<64x128xbf16>
    %cst_110 = arith.constant dense<0.000000e+00> : vector<16x128xf32>
    %159 = tpu.matmul %156, %158, %cst_110 {dimension_numbers = #tpu.dot_dimension_numbers<[1], [0], [0], [1], [0, 0, 1, 1], [], []>} : vector<16x64xbf16>, vector<64x128xbf16>, vector<16x128xf32> -> vector<16x128xf32>
    %160 = vector.broadcast %20 : vector<1x128xf32> to vector<16x128xf32>
    %161 = arith.addf %159, %160 : vector<16x128xf32>
    %cst_111 = arith.constant 5.000000e-01 : f32
    %162 = vector.broadcast %cst_111 : f32 to vector<16x128xf32>
    %163 = arith.mulf %162, %161 : vector<16x128xf32>
    %cst_112 = arith.constant 0.707106769 : f32
    %164 = vector.broadcast %cst_112 : f32 to vector<16x128xf32>
    %165 = arith.mulf %161, %164 : vector<16x128xf32>
    %166 = math.absf %165 : vector<16x128xf32>
    %cst_113 = arith.constant 0.327591091 : f32
    %167 = vector.broadcast %cst_113 : f32 to vector<16x128xf32>
    %168 = arith.mulf %167, %166 : vector<16x128xf32>
    %cst_114 = arith.constant 1.000000e+00 : f32
    %169 = vector.broadcast %cst_114 : f32 to vector<16x128xf32>
    %170 = arith.addf %169, %168 : vector<16x128xf32>
    %cst_115 = arith.constant 1.000000e+00 : f32
    %171 = vector.broadcast %cst_115 : f32 to vector<16x128xf32>
    %172 = arith.divf %171, %170 : vector<16x128xf32>
    %cst_116 = arith.constant 1.06140542 : f32
    %173 = vector.broadcast %cst_116 : f32 to vector<16x128xf32>
    %174 = arith.mulf %172, %173 : vector<16x128xf32>
    %cst_117 = arith.constant -1.45315206 : f32
    %175 = vector.broadcast %cst_117 : f32 to vector<16x128xf32>
    %176 = arith.addf %175, %174 : vector<16x128xf32>
    %177 = arith.mulf %172, %176 : vector<16x128xf32>
    %cst_118 = arith.constant 1.42141378 : f32
    %178 = vector.broadcast %cst_118 : f32 to vector<16x128xf32>
    %179 = arith.addf %178, %177 : vector<16x128xf32>
    %180 = arith.mulf %172, %179 : vector<16x128xf32>
    %cst_119 = arith.constant -0.284496725 : f32
    %181 = vector.broadcast %cst_119 : f32 to vector<16x128xf32>
    %182 = arith.addf %181, %180 : vector<16x128xf32>
    %183 = arith.mulf %172, %182 : vector<16x128xf32>
    %cst_120 = arith.constant 0.254829586 : f32
    %184 = vector.broadcast %cst_120 : f32 to vector<16x128xf32>
    %185 = arith.addf %184, %183 : vector<16x128xf32>
    %186 = arith.mulf %172, %185 : vector<16x128xf32>
    %cst_121 = arith.constant 0.000000e+00 : f32
    %187 = vector.broadcast %cst_121 : f32 to vector<16x128xf32>
    %188 = arith.subf %187, %166 : vector<16x128xf32>
    %189 = arith.mulf %188, %166 : vector<16x128xf32>
    %190 = math.exp %189 : vector<16x128xf32>
    %191 = arith.mulf %186, %190 : vector<16x128xf32>
    %cst_122 = arith.constant 1.000000e+00 : f32
    %192 = vector.broadcast %cst_122 : f32 to vector<16x128xf32>
    %193 = arith.subf %192, %191 : vector<16x128xf32>
    %cst_123 = arith.constant 0.000000e+00 : f32
    %194 = vector.broadcast %cst_123 : f32 to vector<16x128xf32>
    %195 = arith.cmpf olt, %165, %194 : vector<16x128xf32>
    %cst_124 = arith.constant 0.000000e+00 : f32
    %196 = vector.broadcast %cst_124 : f32 to vector<16x128xf32>
    %197 = arith.subf %196, %193 : vector<16x128xf32>
    %198 = arith.select %195, %197, %193 : vector<16x128xi1>, vector<16x128xf32>
    %cst_125 = arith.constant 1.000000e+00 : f32
    %199 = vector.broadcast %cst_125 : f32 to vector<16x128xf32>
    %200 = arith.addf %199, %198 : vector<16x128xf32>
    %201 = arith.mulf %163, %200 : vector<16x128xf32>
    %202 = arith.truncf %201 : vector<16x128xf32> to vector<16x128xbf16>
    %c0_126 = arith.constant 0 : index
    %c0_127 = arith.constant 0 : index
    %c0_128 = arith.constant 0 : index
    %203 = vector.load %arg7[%c0_126, %c0_127, %c0_128] : memref<2x128x64xbf16, #tpu.memory_space<vmem>>, vector<1x128x64xbf16>
    %204 = vector.shape_cast %203 : vector<1x128x64xbf16> to vector<128x64xbf16>
    %cst_129 = arith.constant dense<0.000000e+00> : vector<16x64xf32>
    %205 = tpu.matmul %202, %204, %cst_129 {dimension_numbers = #tpu.dot_dimension_numbers<[1], [0], [0], [1], [0, 0, 1, 1], [], []>} : vector<16x128xbf16>, vector<128x64xbf16>, vector<16x64xf32> -> vector<16x64xf32>
    %206 = vector.broadcast %21 : vector<1x64xf32> to vector<16x64xf32>
    %207 = arith.addf %205, %206 : vector<16x64xf32>
    %208 = arith.addf %135, %207 : vector<16x64xf32>
    %c1_130 = arith.constant 1 : index
    %c0_131 = arith.constant 0 : index
    %c0_132 = arith.constant 0 : index
    %209 = vector.load %arg8[%c1_130, %c0_131, %c0_132] : memref<2x8x128xf32, #tpu.memory_space<vmem>>, vector<1x8x128xf32>
    %210 = vector.shape_cast %209 : vector<1x8x128xf32> to vector<8x128xf32>
    %211 = vector.extract_strided_slice %210 {offsets = [0, 0], sizes = [1, 64], strides = [1, 1]} : vector<8x128xf32> to vector<1x64xf32>
    %212 = vector.extract_strided_slice %210 {offsets = [1, 0], sizes = [1, 64], strides = [1, 1]} : vector<8x128xf32> to vector<1x64xf32>
    %213 = vector.extract_strided_slice %210 {offsets = [2, 0], sizes = [1, 64], strides = [1, 1]} : vector<8x128xf32> to vector<1x64xf32>
    %214 = vector.extract_strided_slice %210 {offsets = [3, 0], sizes = [1, 64], strides = [1, 1]} : vector<8x128xf32> to vector<1x64xf32>
    %215 = vector.extract_strided_slice %210 {offsets = [4, 0], sizes = [1, 64], strides = [1, 1]} : vector<8x128xf32> to vector<1x64xf32>
    %216 = vector.extract_strided_slice %210 {offsets = [5, 0], sizes = [1, 128], strides = [1, 1]} : vector<8x128xf32> to vector<1x128xf32>
    %217 = vector.extract_strided_slice %210 {offsets = [6, 0], sizes = [1, 64], strides = [1, 1]} : vector<8x128xf32> to vector<1x64xf32>
    %cst_133 = arith.constant dense<0.000000e+00> : vector<16xf32>
    %218 = vector.multi_reduction <add>, %208, %cst_133 [1] : vector<16x64xf32> to vector<16xf32>
    %219 = vector.shape_cast %218 : vector<16xf32> to vector<16x1xf32>
    %cst_134 = arith.constant 6.400000e+01 : f32
    %220 = vector.broadcast %cst_134 : f32 to vector<16x1xf32>
    %221 = arith.divf %219, %220 : vector<16x1xf32>
    %222 = vector.broadcast %221 : vector<16x1xf32> to vector<16x64xf32>
    %223 = arith.subf %208, %222 : vector<16x64xf32>
    %224 = arith.mulf %223, %223 : vector<16x64xf32>
    %cst_135 = arith.constant dense<0.000000e+00> : vector<16xf32>
    %225 = vector.multi_reduction <add>, %224, %cst_135 [1] : vector<16x64xf32> to vector<16xf32>
    %226 = vector.shape_cast %225 : vector<16xf32> to vector<16x1xf32>
    %cst_136 = arith.constant 6.400000e+01 : f32
    %227 = vector.broadcast %cst_136 : f32 to vector<16x1xf32>
    %228 = arith.divf %226, %227 : vector<16x1xf32>
    %cst_137 = arith.constant 9.99999997E-7 : f32
    %229 = vector.broadcast %cst_137 : f32 to vector<16x1xf32>
    %230 = arith.addf %228, %229 : vector<16x1xf32>
    %231 = math.rsqrt %230 : vector<16x1xf32>
    %232 = vector.broadcast %231 : vector<16x1xf32> to vector<16x64xf32>
    %233 = arith.mulf %223, %232 : vector<16x64xf32>
    %234 = vector.broadcast %211 : vector<1x64xf32> to vector<16x64xf32>
    %235 = arith.mulf %233, %234 : vector<16x64xf32>
    %236 = vector.broadcast %212 : vector<1x64xf32> to vector<16x64xf32>
    %237 = arith.addf %235, %236 : vector<16x64xf32>
    %238 = arith.truncf %237 : vector<16x64xf32> to vector<16x64xbf16>
    %c1_138 = arith.constant 1 : index
    %c0_139 = arith.constant 0 : index
    %c0_140 = arith.constant 0 : index
    %c0_141 = arith.constant 0 : index
    %239 = vector.load %arg3[%c1_138, %c0_139, %c0_140, %c0_141] : memref<2x12x64x16xbf16, #tpu.memory_space<vmem>>, vector<1x1x64x16xbf16>
    %240 = vector.shape_cast %239 : vector<1x1x64x16xbf16> to vector<64x16xbf16>
    %cst_142 = arith.constant dense<0.000000e+00> : vector<16x16xf32>
    %241 = tpu.matmul %238, %240, %cst_142 {dimension_numbers = #tpu.dot_dimension_numbers<[1], [0], [0], [1], [0, 0, 1, 1], [], []>} : vector<16x64xbf16>, vector<64x16xbf16>, vector<16x16xf32> -> vector<16x16xf32>
    %c1_143 = arith.constant 1 : index
    %c1_144 = arith.constant 1 : index
    %c0_145 = arith.constant 0 : index
    %c0_146 = arith.constant 0 : index
    %242 = vector.load %arg3[%c1_143, %c1_144, %c0_145, %c0_146] : memref<2x12x64x16xbf16, #tpu.memory_space<vmem>>, vector<1x1x64x16xbf16>
    %243 = vector.shape_cast %242 : vector<1x1x64x16xbf16> to vector<64x16xbf16>
    %cst_147 = arith.constant dense<0.000000e+00> : vector<16x16xf32>
    %244 = tpu.matmul %238, %243, %cst_147 {dimension_numbers = #tpu.dot_dimension_numbers<[1], [0], [0], [1], [0, 0, 1, 1], [], []>} : vector<16x64xbf16>, vector<64x16xbf16>, vector<16x16xf32> -> vector<16x16xf32>
    %c1_148 = arith.constant 1 : index
    %c2_149 = arith.constant 2 : index
    %c0_150 = arith.constant 0 : index
    %c0_151 = arith.constant 0 : index
    %245 = vector.load %arg3[%c1_148, %c2_149, %c0_150, %c0_151] : memref<2x12x64x16xbf16, #tpu.memory_space<vmem>>, vector<1x1x64x16xbf16>
    %246 = vector.shape_cast %245 : vector<1x1x64x16xbf16> to vector<64x16xbf16>
    %cst_152 = arith.constant dense<0.000000e+00> : vector<16x16xf32>
    %247 = tpu.matmul %238, %246, %cst_152 {dimension_numbers = #tpu.dot_dimension_numbers<[1], [0], [0], [1], [0, 0, 1, 1], [], []>} : vector<16x64xbf16>, vector<64x16xbf16>, vector<16x16xf32> -> vector<16x16xf32>
    %c1_153 = arith.constant 1 : index
    %c3_154 = arith.constant 3 : index
    %c0_155 = arith.constant 0 : index
    %c0_156 = arith.constant 0 : index
    %248 = vector.load %arg3[%c1_153, %c3_154, %c0_155, %c0_156] : memref<2x12x64x16xbf16, #tpu.memory_space<vmem>>, vector<1x1x64x16xbf16>
    %249 = vector.shape_cast %248 : vector<1x1x64x16xbf16> to vector<64x16xbf16>
    %cst_157 = arith.constant dense<0.000000e+00> : vector<16x16xf32>
    %250 = tpu.matmul %238, %249, %cst_157 {dimension_numbers = #tpu.dot_dimension_numbers<[1], [0], [0], [1], [0, 0, 1, 1], [], []>} : vector<16x64xbf16>, vector<64x16xbf16>, vector<16x16xf32> -> vector<16x16xf32>
    %c1_158 = arith.constant 1 : index
    %c4_159 = arith.constant 4 : index
    %c0_160 = arith.constant 0 : index
    %c0_161 = arith.constant 0 : index
    %251 = vector.load %arg3[%c1_158, %c4_159, %c0_160, %c0_161] : memref<2x12x64x16xbf16, #tpu.memory_space<vmem>>, vector<1x1x64x16xbf16>
    %252 = vector.shape_cast %251 : vector<1x1x64x16xbf16> to vector<64x16xbf16>
    %cst_162 = arith.constant dense<0.000000e+00> : vector<16x16xf32>
    %253 = tpu.matmul %238, %252, %cst_162 {dimension_numbers = #tpu.dot_dimension_numbers<[1], [0], [0], [1], [0, 0, 1, 1], [], []>} : vector<16x64xbf16>, vector<64x16xbf16>, vector<16x16xf32> -> vector<16x16xf32>
    %c1_163 = arith.constant 1 : index
    %c5_164 = arith.constant 5 : index
    %c0_165 = arith.constant 0 : index
    %c0_166 = arith.constant 0 : index
    %254 = vector.load %arg3[%c1_163, %c5_164, %c0_165, %c0_166] : memref<2x12x64x16xbf16, #tpu.memory_space<vmem>>, vector<1x1x64x16xbf16>
    %255 = vector.shape_cast %254 : vector<1x1x64x16xbf16> to vector<64x16xbf16>
    %cst_167 = arith.constant dense<0.000000e+00> : vector<16x16xf32>
    %256 = tpu.matmul %238, %255, %cst_167 {dimension_numbers = #tpu.dot_dimension_numbers<[1], [0], [0], [1], [0, 0, 1, 1], [], []>} : vector<16x64xbf16>, vector<64x16xbf16>, vector<16x16xf32> -> vector<16x16xf32>
    %c1_168 = arith.constant 1 : index
    %c6_169 = arith.constant 6 : index
    %c0_170 = arith.constant 0 : index
    %c0_171 = arith.constant 0 : index
    %257 = vector.load %arg3[%c1_168, %c6_169, %c0_170, %c0_171] : memref<2x12x64x16xbf16, #tpu.memory_space<vmem>>, vector<1x1x64x16xbf16>
    %258 = vector.shape_cast %257 : vector<1x1x64x16xbf16> to vector<64x16xbf16>
    %cst_172 = arith.constant dense<0.000000e+00> : vector<16x16xf32>
    %259 = tpu.matmul %238, %258, %cst_172 {dimension_numbers = #tpu.dot_dimension_numbers<[1], [0], [0], [1], [0, 0, 1, 1], [], []>} : vector<16x64xbf16>, vector<64x16xbf16>, vector<16x16xf32> -> vector<16x16xf32>
    %c1_173 = arith.constant 1 : index
    %c7_174 = arith.constant 7 : index
    %c0_175 = arith.constant 0 : index
    %c0_176 = arith.constant 0 : index
    %260 = vector.load %arg3[%c1_173, %c7_174, %c0_175, %c0_176] : memref<2x12x64x16xbf16, #tpu.memory_space<vmem>>, vector<1x1x64x16xbf16>
    %261 = vector.shape_cast %260 : vector<1x1x64x16xbf16> to vector<64x16xbf16>
    %cst_177 = arith.constant dense<0.000000e+00> : vector<16x16xf32>
    %262 = tpu.matmul %238, %261, %cst_177 {dimension_numbers = #tpu.dot_dimension_numbers<[1], [0], [0], [1], [0, 0, 1, 1], [], []>} : vector<16x64xbf16>, vector<64x16xbf16>, vector<16x16xf32> -> vector<16x16xf32>
    %c1_178 = arith.constant 1 : index
    %c8_179 = arith.constant 8 : index
    %c0_180 = arith.constant 0 : index
    %c0_181 = arith.constant 0 : index
    %263 = vector.load %arg3[%c1_178, %c8_179, %c0_180, %c0_181] : memref<2x12x64x16xbf16, #tpu.memory_space<vmem>>, vector<1x1x64x16xbf16>
    %264 = vector.shape_cast %263 : vector<1x1x64x16xbf16> to vector<64x16xbf16>
    %cst_182 = arith.constant dense<0.000000e+00> : vector<16x16xf32>
    %265 = tpu.matmul %238, %264, %cst_182 {dimension_numbers = #tpu.dot_dimension_numbers<[1], [0], [0], [1], [0, 0, 1, 1], [], []>} : vector<16x64xbf16>, vector<64x16xbf16>, vector<16x16xf32> -> vector<16x16xf32>
    %c1_183 = arith.constant 1 : index
    %c9_184 = arith.constant 9 : index
    %c0_185 = arith.constant 0 : index
    %c0_186 = arith.constant 0 : index
    %266 = vector.load %arg3[%c1_183, %c9_184, %c0_185, %c0_186] : memref<2x12x64x16xbf16, #tpu.memory_space<vmem>>, vector<1x1x64x16xbf16>
    %267 = vector.shape_cast %266 : vector<1x1x64x16xbf16> to vector<64x16xbf16>
    %cst_187 = arith.constant dense<0.000000e+00> : vector<16x16xf32>
    %268 = tpu.matmul %238, %267, %cst_187 {dimension_numbers = #tpu.dot_dimension_numbers<[1], [0], [0], [1], [0, 0, 1, 1], [], []>} : vector<16x64xbf16>, vector<64x16xbf16>, vector<16x16xf32> -> vector<16x16xf32>
    %c1_188 = arith.constant 1 : index
    %c10_189 = arith.constant 10 : index
    %c0_190 = arith.constant 0 : index
    %c0_191 = arith.constant 0 : index
    %269 = vector.load %arg3[%c1_188, %c10_189, %c0_190, %c0_191] : memref<2x12x64x16xbf16, #tpu.memory_space<vmem>>, vector<1x1x64x16xbf16>
    %270 = vector.shape_cast %269 : vector<1x1x64x16xbf16> to vector<64x16xbf16>
    %cst_192 = arith.constant dense<0.000000e+00> : vector<16x16xf32>
    %271 = tpu.matmul %238, %270, %cst_192 {dimension_numbers = #tpu.dot_dimension_numbers<[1], [0], [0], [1], [0, 0, 1, 1], [], []>} : vector<16x64xbf16>, vector<64x16xbf16>, vector<16x16xf32> -> vector<16x16xf32>
    %c1_193 = arith.constant 1 : index
    %c11_194 = arith.constant 11 : index
    %c0_195 = arith.constant 0 : index
    %c0_196 = arith.constant 0 : index
    %272 = vector.load %arg3[%c1_193, %c11_194, %c0_195, %c0_196] : memref<2x12x64x16xbf16, #tpu.memory_space<vmem>>, vector<1x1x64x16xbf16>
    %273 = vector.shape_cast %272 : vector<1x1x64x16xbf16> to vector<64x16xbf16>
    %cst_197 = arith.constant dense<0.000000e+00> : vector<16x16xf32>
    %274 = tpu.matmul %238, %273, %cst_197 {dimension_numbers = #tpu.dot_dimension_numbers<[1], [0], [0], [1], [0, 0, 1, 1], [], []>} : vector<16x64xbf16>, vector<64x16xbf16>, vector<16x16xf32> -> vector<16x16xf32>
    %275 = tpu.concatenate %241, %250, %259, %268 in 0 : vector<16x16xf32>, vector<16x16xf32>, vector<16x16xf32>, vector<16x16xf32> -> vector<64x16xf32>
    %c1_198 = arith.constant 1 : index
    %c0_199 = arith.constant 0 : index
    %c0_200 = arith.constant 0 : index
    %c0_201 = arith.constant 0 : index
    %276 = vector.load %arg4[%c1_198, %c0_199, %c0_200, %c0_201] : memref<2x3x64x16xf32, #tpu.memory_space<vmem>>, vector<1x1x64x16xf32>
    %277 = vector.shape_cast %276 : vector<1x1x64x16xf32> to vector<64x16xf32>
    %278 = arith.addf %275, %277 : vector<64x16xf32>
    %279 = tpu.concatenate %244, %253, %262, %271 in 0 : vector<16x16xf32>, vector<16x16xf32>, vector<16x16xf32>, vector<16x16xf32> -> vector<64x16xf32>
    %c1_202 = arith.constant 1 : index
    %c1_203 = arith.constant 1 : index
    %c0_204 = arith.constant 0 : index
    %c0_205 = arith.constant 0 : index
    %280 = vector.load %arg4[%c1_202, %c1_203, %c0_204, %c0_205] : memref<2x3x64x16xf32, #tpu.memory_space<vmem>>, vector<1x1x64x16xf32>
    %281 = vector.shape_cast %280 : vector<1x1x64x16xf32> to vector<64x16xf32>
    %282 = arith.addf %279, %281 : vector<64x16xf32>
    %283 = tpu.concatenate %247, %256, %265, %274 in 0 : vector<16x16xf32>, vector<16x16xf32>, vector<16x16xf32>, vector<16x16xf32> -> vector<64x16xf32>
    %c1_206 = arith.constant 1 : index
    %c2_207 = arith.constant 2 : index
    %c0_208 = arith.constant 0 : index
    %c0_209 = arith.constant 0 : index
    %284 = vector.load %arg4[%c1_206, %c2_207, %c0_208, %c0_209] : memref<2x3x64x16xf32, #tpu.memory_space<vmem>>, vector<1x1x64x16xf32>
    %285 = vector.shape_cast %284 : vector<1x1x64x16xf32> to vector<64x16xf32>
    %286 = arith.addf %283, %285 : vector<64x16xf32>
    %287 = arith.truncf %278 : vector<64x16xf32> to vector<64x16xbf16>
    %288 = arith.truncf %282 : vector<64x16xf32> to vector<64x16xbf16>
    %cst_210 = arith.constant dense<0.000000e+00> : vector<64x64xf32>
    %289 = tpu.matmul %287, %288, %cst_210 {dimension_numbers = #tpu.dot_dimension_numbers<[1], [1], [0], [0], [0, 0, 1, 0], [], []>} : vector<64x16xbf16>, vector<64x16xbf16>, vector<64x64xf32> -> vector<64x64xf32>
    %cst_211 = arith.constant 2.500000e-01 : f32
    %290 = vector.broadcast %cst_211 : f32 to vector<64x64xf32>
    %291 = arith.mulf %289, %290 : vector<64x64xf32>
    %292 = arith.addf %291, %12 : vector<64x64xf32>
    %cst_212 = arith.constant dense<0xFF800000> : vector<64xf32>
    %293 = vector.multi_reduction <maximumf>, %292, %cst_212 [1] : vector<64x64xf32> to vector<64xf32>
    %294 = vector.shape_cast %293 : vector<64xf32> to vector<64x1xf32>
    %295 = vector.broadcast %294 : vector<64x1xf32> to vector<64x64xf32>
    %296 = arith.subf %292, %295 : vector<64x64xf32>
    %297 = math.exp %296 : vector<64x64xf32>
    %cst_213 = arith.constant dense<0.000000e+00> : vector<64xf32>
    %298 = vector.multi_reduction <add>, %297, %cst_213 [1] : vector<64x64xf32> to vector<64xf32>
    %299 = vector.shape_cast %298 : vector<64xf32> to vector<64x1xf32>
    %300 = tpu.reciprocal %299 {approx = true} : vector<64x1xf32> -> vector<64x1xf32>
    %301 = vector.broadcast %300 : vector<64x1xf32> to vector<64x64xf32>
    %302 = arith.mulf %297, %301 : vector<64x64xf32>
    %303 = arith.truncf %302 : vector<64x64xf32> to vector<64x64xbf16>
    %304 = arith.truncf %286 : vector<64x16xf32> to vector<64x16xbf16>
    %cst_214 = arith.constant dense<0.000000e+00> : vector<64x16xf32>
    %305 = tpu.matmul %303, %304, %cst_214 {dimension_numbers = #tpu.dot_dimension_numbers<[1], [0], [0], [1], [0, 0, 1, 1], [], []>} : vector<64x64xbf16>, vector<64x16xbf16>, vector<64x16xf32> -> vector<64x16xf32>
    %306 = vector.extract_strided_slice %305 {offsets = [0, 0], sizes = [16, 16], strides = [1, 1]} : vector<64x16xf32> to vector<16x16xf32>
    %307 = arith.truncf %306 : vector<16x16xf32> to vector<16x16xbf16>
    %c1_215 = arith.constant 1 : index
    %c0_216 = arith.constant 0 : index
    %c0_217 = arith.constant 0 : index
    %c0_218 = arith.constant 0 : index
    %308 = vector.load %arg5[%c1_215, %c0_216, %c0_217, %c0_218] : memref<2x4x16x64xbf16, #tpu.memory_space<vmem>>, vector<1x1x16x64xbf16>
    %309 = vector.shape_cast %308 : vector<1x1x16x64xbf16> to vector<16x64xbf16>
    %cst_219 = arith.constant dense<0.000000e+00> : vector<16x64xf32>
    %310 = tpu.matmul %307, %309, %cst_219 {dimension_numbers = #tpu.dot_dimension_numbers<[1], [0], [0], [1], [0, 0, 1, 1], [], []>} : vector<16x16xbf16>, vector<16x64xbf16>, vector<16x64xf32> -> vector<16x64xf32>
    %311 = vector.broadcast %213 : vector<1x64xf32> to vector<16x64xf32>
    %312 = arith.addf %311, %310 : vector<16x64xf32>
    %313 = vector.extract_strided_slice %305 {offsets = [16, 0], sizes = [16, 16], strides = [1, 1]} : vector<64x16xf32> to vector<16x16xf32>
    %314 = arith.truncf %313 : vector<16x16xf32> to vector<16x16xbf16>
    %c1_220 = arith.constant 1 : index
    %c1_221 = arith.constant 1 : index
    %c0_222 = arith.constant 0 : index
    %c0_223 = arith.constant 0 : index
    %315 = vector.load %arg5[%c1_220, %c1_221, %c0_222, %c0_223] : memref<2x4x16x64xbf16, #tpu.memory_space<vmem>>, vector<1x1x16x64xbf16>
    %316 = vector.shape_cast %315 : vector<1x1x16x64xbf16> to vector<16x64xbf16>
    %cst_224 = arith.constant dense<0.000000e+00> : vector<16x64xf32>
    %317 = tpu.matmul %314, %316, %cst_224 {dimension_numbers = #tpu.dot_dimension_numbers<[1], [0], [0], [1], [0, 0, 1, 1], [], []>} : vector<16x16xbf16>, vector<16x64xbf16>, vector<16x64xf32> -> vector<16x64xf32>
    %318 = arith.addf %312, %317 : vector<16x64xf32>
    %319 = vector.extract_strided_slice %305 {offsets = [32, 0], sizes = [16, 16], strides = [1, 1]} : vector<64x16xf32> to vector<16x16xf32>
    %320 = arith.truncf %319 : vector<16x16xf32> to vector<16x16xbf16>
    %c1_225 = arith.constant 1 : index
    %c2_226 = arith.constant 2 : index
    %c0_227 = arith.constant 0 : index
    %c0_228 = arith.constant 0 : index
    %321 = vector.load %arg5[%c1_225, %c2_226, %c0_227, %c0_228] : memref<2x4x16x64xbf16, #tpu.memory_space<vmem>>, vector<1x1x16x64xbf16>
    %322 = vector.shape_cast %321 : vector<1x1x16x64xbf16> to vector<16x64xbf16>
    %cst_229 = arith.constant dense<0.000000e+00> : vector<16x64xf32>
    %323 = tpu.matmul %320, %322, %cst_229 {dimension_numbers = #tpu.dot_dimension_numbers<[1], [0], [0], [1], [0, 0, 1, 1], [], []>} : vector<16x16xbf16>, vector<16x64xbf16>, vector<16x64xf32> -> vector<16x64xf32>
    %324 = arith.addf %318, %323 : vector<16x64xf32>
    %325 = vector.extract_strided_slice %305 {offsets = [48, 0], sizes = [16, 16], strides = [1, 1]} : vector<64x16xf32> to vector<16x16xf32>
    %326 = arith.truncf %325 : vector<16x16xf32> to vector<16x16xbf16>
    %c1_230 = arith.constant 1 : index
    %c3_231 = arith.constant 3 : index
    %c0_232 = arith.constant 0 : index
    %c0_233 = arith.constant 0 : index
    %327 = vector.load %arg5[%c1_230, %c3_231, %c0_232, %c0_233] : memref<2x4x16x64xbf16, #tpu.memory_space<vmem>>, vector<1x1x16x64xbf16>
    %328 = vector.shape_cast %327 : vector<1x1x16x64xbf16> to vector<16x64xbf16>
    %cst_234 = arith.constant dense<0.000000e+00> : vector<16x64xf32>
    %329 = tpu.matmul %326, %328, %cst_234 {dimension_numbers = #tpu.dot_dimension_numbers<[1], [0], [0], [1], [0, 0, 1, 1], [], []>} : vector<16x16xbf16>, vector<16x64xbf16>, vector<16x64xf32> -> vector<16x64xf32>
    %330 = arith.addf %324, %329 : vector<16x64xf32>
    %331 = arith.addf %208, %330 : vector<16x64xf32>
    %cst_235 = arith.constant dense<0.000000e+00> : vector<16xf32>
    %332 = vector.multi_reduction <add>, %331, %cst_235 [1] : vector<16x64xf32> to vector<16xf32>
    %333 = vector.shape_cast %332 : vector<16xf32> to vector<16x1xf32>
    %cst_236 = arith.constant 6.400000e+01 : f32
    %334 = vector.broadcast %cst_236 : f32 to vector<16x1xf32>
    %335 = arith.divf %333, %334 : vector<16x1xf32>
    %336 = vector.broadcast %335 : vector<16x1xf32> to vector<16x64xf32>
    %337 = arith.subf %331, %336 : vector<16x64xf32>
    %338 = arith.mulf %337, %337 : vector<16x64xf32>
    %cst_237 = arith.constant dense<0.000000e+00> : vector<16xf32>
    %339 = vector.multi_reduction <add>, %338, %cst_237 [1] : vector<16x64xf32> to vector<16xf32>
    %340 = vector.shape_cast %339 : vector<16xf32> to vector<16x1xf32>
    %cst_238 = arith.constant 6.400000e+01 : f32
    %341 = vector.broadcast %cst_238 : f32 to vector<16x1xf32>
    %342 = arith.divf %340, %341 : vector<16x1xf32>
    %cst_239 = arith.constant 9.99999997E-7 : f32
    %343 = vector.broadcast %cst_239 : f32 to vector<16x1xf32>
    %344 = arith.addf %342, %343 : vector<16x1xf32>
    %345 = math.rsqrt %344 : vector<16x1xf32>
    %346 = vector.broadcast %345 : vector<16x1xf32> to vector<16x64xf32>
    %347 = arith.mulf %337, %346 : vector<16x64xf32>
    %348 = vector.broadcast %214 : vector<1x64xf32> to vector<16x64xf32>
    %349 = arith.mulf %347, %348 : vector<16x64xf32>
    %350 = vector.broadcast %215 : vector<1x64xf32> to vector<16x64xf32>
    %351 = arith.addf %349, %350 : vector<16x64xf32>
    %352 = arith.truncf %351 : vector<16x64xf32> to vector<16x64xbf16>
    %c1_240 = arith.constant 1 : index
    %c0_241 = arith.constant 0 : index
    %c0_242 = arith.constant 0 : index
    %353 = vector.load %arg6[%c1_240, %c0_241, %c0_242] : memref<2x64x128xbf16, #tpu.memory_space<vmem>>, vector<1x64x128xbf16>
    %354 = vector.shape_cast %353 : vector<1x64x128xbf16> to vector<64x128xbf16>
    %cst_243 = arith.constant dense<0.000000e+00> : vector<16x128xf32>
    %355 = tpu.matmul %352, %354, %cst_243 {dimension_numbers = #tpu.dot_dimension_numbers<[1], [0], [0], [1], [0, 0, 1, 1], [], []>} : vector<16x64xbf16>, vector<64x128xbf16>, vector<16x128xf32> -> vector<16x128xf32>
    %356 = vector.broadcast %216 : vector<1x128xf32> to vector<16x128xf32>
    %357 = arith.addf %355, %356 : vector<16x128xf32>
    %cst_244 = arith.constant 5.000000e-01 : f32
    %358 = vector.broadcast %cst_244 : f32 to vector<16x128xf32>
    %359 = arith.mulf %358, %357 : vector<16x128xf32>
    %cst_245 = arith.constant 0.707106769 : f32
    %360 = vector.broadcast %cst_245 : f32 to vector<16x128xf32>
    %361 = arith.mulf %357, %360 : vector<16x128xf32>
    %362 = math.absf %361 : vector<16x128xf32>
    %cst_246 = arith.constant 0.327591091 : f32
    %363 = vector.broadcast %cst_246 : f32 to vector<16x128xf32>
    %364 = arith.mulf %363, %362 : vector<16x128xf32>
    %cst_247 = arith.constant 1.000000e+00 : f32
    %365 = vector.broadcast %cst_247 : f32 to vector<16x128xf32>
    %366 = arith.addf %365, %364 : vector<16x128xf32>
    %cst_248 = arith.constant 1.000000e+00 : f32
    %367 = vector.broadcast %cst_248 : f32 to vector<16x128xf32>
    %368 = arith.divf %367, %366 : vector<16x128xf32>
    %cst_249 = arith.constant 1.06140542 : f32
    %369 = vector.broadcast %cst_249 : f32 to vector<16x128xf32>
    %370 = arith.mulf %368, %369 : vector<16x128xf32>
    %cst_250 = arith.constant -1.45315206 : f32
    %371 = vector.broadcast %cst_250 : f32 to vector<16x128xf32>
    %372 = arith.addf %371, %370 : vector<16x128xf32>
    %373 = arith.mulf %368, %372 : vector<16x128xf32>
    %cst_251 = arith.constant 1.42141378 : f32
    %374 = vector.broadcast %cst_251 : f32 to vector<16x128xf32>
    %375 = arith.addf %374, %373 : vector<16x128xf32>
    %376 = arith.mulf %368, %375 : vector<16x128xf32>
    %cst_252 = arith.constant -0.284496725 : f32
    %377 = vector.broadcast %cst_252 : f32 to vector<16x128xf32>
    %378 = arith.addf %377, %376 : vector<16x128xf32>
    %379 = arith.mulf %368, %378 : vector<16x128xf32>
    %cst_253 = arith.constant 0.254829586 : f32
    %380 = vector.broadcast %cst_253 : f32 to vector<16x128xf32>
    %381 = arith.addf %380, %379 : vector<16x128xf32>
    %382 = arith.mulf %368, %381 : vector<16x128xf32>
    %cst_254 = arith.constant 0.000000e+00 : f32
    %383 = vector.broadcast %cst_254 : f32 to vector<16x128xf32>
    %384 = arith.subf %383, %362 : vector<16x128xf32>
    %385 = arith.mulf %384, %362 : vector<16x128xf32>
    %386 = math.exp %385 : vector<16x128xf32>
    %387 = arith.mulf %382, %386 : vector<16x128xf32>
    %cst_255 = arith.constant 1.000000e+00 : f32
    %388 = vector.broadcast %cst_255 : f32 to vector<16x128xf32>
    %389 = arith.subf %388, %387 : vector<16x128xf32>
    %cst_256 = arith.constant 0.000000e+00 : f32
    %390 = vector.broadcast %cst_256 : f32 to vector<16x128xf32>
    %391 = arith.cmpf olt, %361, %390 : vector<16x128xf32>
    %cst_257 = arith.constant 0.000000e+00 : f32
    %392 = vector.broadcast %cst_257 : f32 to vector<16x128xf32>
    %393 = arith.subf %392, %389 : vector<16x128xf32>
    %394 = arith.select %391, %393, %389 : vector<16x128xi1>, vector<16x128xf32>
    %cst_258 = arith.constant 1.000000e+00 : f32
    %395 = vector.broadcast %cst_258 : f32 to vector<16x128xf32>
    %396 = arith.addf %395, %394 : vector<16x128xf32>
    %397 = arith.mulf %359, %396 : vector<16x128xf32>
    %398 = arith.truncf %397 : vector<16x128xf32> to vector<16x128xbf16>
    %c1_259 = arith.constant 1 : index
    %c0_260 = arith.constant 0 : index
    %c0_261 = arith.constant 0 : index
    %399 = vector.load %arg7[%c1_259, %c0_260, %c0_261] : memref<2x128x64xbf16, #tpu.memory_space<vmem>>, vector<1x128x64xbf16>
    %400 = vector.shape_cast %399 : vector<1x128x64xbf16> to vector<128x64xbf16>
    %cst_262 = arith.constant dense<0.000000e+00> : vector<16x64xf32>
    %401 = tpu.matmul %398, %400, %cst_262 {dimension_numbers = #tpu.dot_dimension_numbers<[1], [0], [0], [1], [0, 0, 1, 1], [], []>} : vector<16x128xbf16>, vector<128x64xbf16>, vector<16x64xf32> -> vector<16x64xf32>
    %402 = vector.broadcast %217 : vector<1x64xf32> to vector<16x64xf32>
    %403 = arith.addf %401, %402 : vector<16x64xf32>
    %404 = arith.addf %331, %403 : vector<16x64xf32>
    %405 = vector.extract_strided_slice %404 {offsets = [0, 0], sizes = [1, 64], strides = [1, 1]} : vector<16x64xf32> to vector<1x64xf32>
    %406 = vector.extract_strided_slice %404 {offsets = [8, 0], sizes = [1, 64], strides = [1, 1]} : vector<16x64xf32> to vector<1x64xf32>
    %407 = tpu.concatenate %405, %406 in 0 : vector<1x64xf32>, vector<1x64xf32> -> vector<2x64xf32>
    %c16 = arith.constant 16 : index
    %c0_263 = arith.constant 0 : index
    %408 = vector.load %arg1[%c16, %c0_263] : memref<88x128xf32, #tpu.memory_space<vmem>>, vector<1x64xf32>
    %c17 = arith.constant 17 : index
    %c0_264 = arith.constant 0 : index
    %409 = vector.load %arg1[%c17, %c0_264] : memref<88x128xf32, #tpu.memory_space<vmem>>, vector<1x64xf32>
    %cst_265 = arith.constant dense<0.000000e+00> : vector<2xf32>
    %410 = vector.multi_reduction <add>, %407, %cst_265 [1] : vector<2x64xf32> to vector<2xf32>
    %411 = vector.shape_cast %410 : vector<2xf32> to vector<2x1xf32>
    %cst_266 = arith.constant 6.400000e+01 : f32
    %412 = vector.broadcast %cst_266 : f32 to vector<2x1xf32>
    %413 = arith.divf %411, %412 : vector<2x1xf32>
    %414 = vector.broadcast %413 : vector<2x1xf32> to vector<2x64xf32>
    %415 = arith.subf %407, %414 : vector<2x64xf32>
    %416 = arith.mulf %415, %415 : vector<2x64xf32>
    %cst_267 = arith.constant dense<0.000000e+00> : vector<2xf32>
    %417 = vector.multi_reduction <add>, %416, %cst_267 [1] : vector<2x64xf32> to vector<2xf32>
    %418 = vector.shape_cast %417 : vector<2xf32> to vector<2x1xf32>
    %cst_268 = arith.constant 6.400000e+01 : f32
    %419 = vector.broadcast %cst_268 : f32 to vector<2x1xf32>
    %420 = arith.divf %418, %419 : vector<2x1xf32>
    %cst_269 = arith.constant 9.99999997E-7 : f32
    %421 = vector.broadcast %cst_269 : f32 to vector<2x1xf32>
    %422 = arith.addf %420, %421 : vector<2x1xf32>
    %423 = math.rsqrt %422 : vector<2x1xf32>
    %424 = vector.broadcast %423 : vector<2x1xf32> to vector<2x64xf32>
    %425 = arith.mulf %415, %424 : vector<2x64xf32>
    %426 = vector.broadcast %408 : vector<1x64xf32> to vector<2x64xf32>
    %427 = arith.mulf %425, %426 : vector<2x64xf32>
    %428 = vector.broadcast %409 : vector<1x64xf32> to vector<2x64xf32>
    %429 = arith.addf %427, %428 : vector<2x64xf32>
    %430 = arith.truncf %429 : vector<2x64xf32> to vector<2x64xbf16>
    %c0_270 = arith.constant 0 : index
    %c0_271 = arith.constant 0 : index
    %431 = vector.load %arg9[%c0_270, %c0_271] : memref<64x128xbf16, #tpu.memory_space<vmem>>, vector<64x128xbf16>
    %cst_272 = arith.constant dense<0.000000e+00> : vector<2x128xf32>
    %432 = tpu.matmul %430, %431, %cst_272 {dimension_numbers = #tpu.dot_dimension_numbers<[1], [0], [0], [1], [0, 0, 1, 1], [], []>} : vector<2x64xbf16>, vector<64x128xbf16>, vector<2x128xf32> -> vector<2x128xf32>
    %c18 = arith.constant 18 : index
    %c0_273 = arith.constant 0 : index
    %433 = vector.load %arg1[%c18, %c0_273] : memref<88x128xf32, #tpu.memory_space<vmem>>, vector<1x128xf32>
    %434 = vector.broadcast %433 : vector<1x128xf32> to vector<2x128xf32>
    %435 = arith.addf %432, %434 : vector<2x128xf32>
    %c0_274 = arith.constant 0 : index
    %c0_275 = arith.constant 0 : index
    %436 = vector.load %arg10[%c0_274, %c0_275] : memref<2x128xf32, #tpu.memory_space<vmem>>, vector<2x128xf32>
    tpu.vector_store %arg10[%c0_274, %c0_275], %435 {strides = array<i32>} : memref<2x128xf32, #tpu.memory_space<vmem>>, vector<2x128xf32>,
    return
  }
}

</mosaic_0001>

<bundles_post_ra>
// kernel: vit_forward.1
= control target key start
LH: loop header
LB: loop body
LE: loop exit
PB: predicated region body
PF: predicated region fallthrough
CT: control target
= control target key end

     0   :  { %s5071_s0 = inlined_call_operand.vmem [shape: bf16[8,256], index: 0, kind: input, shape index: {}]   ;;  %s5072_s1 = inlined_call_operand.vmem [shape: f32[88,128], index: 1, kind: input, shape index: {}]   ;;  %s5073_s2 = inlined_call_operand.vmem [shape: bf16[256,64], index: 2, kind: input, shape index: {}]   ;;  %s5074_s3 = inlined_call_operand.vmem [shape: bf16[2,12,64,16], index: 3, kind: input, shape index: {}]   ;;  %s5075_s4 = inlined_call_operand.vmem [shape: f32[2,3,64,16], index: 4, kind: input, shape index: {}]   ;;  %s5076_s5 = inlined_call_operand.vmem [shape: bf16[2,4,16,64], index: 5, kind: input, shape index: {}]   ;;  %s5077_s6 = inlined_call_operand.vmem [shape: bf16[2,64,128], index: 6, kind: input, shape index: {}]   ;;  %s5078_s7 = inlined_call_operand.vmem [shape: bf16[2,128,64], index: 7, kind: input, shape index: {}]   ;;  %s5079_s8 = inlined_call_operand.vmem [shape: f32[2,8,128], index: 8, kind: input, shape index: {}]   ;;  %s5080_s9 = inlined_call_operand.vmem [shape: bf16[64,128], index: 9, kind: input, shape index: {}]   ;;  %s5081_s10 = inlined_call_operand.hbm [shape: f32[2,128], index: 10, kind: output, shape index: {}]  }
   0x1   :  { %v3777_v0 = vld [vmem:[%s5073_s2 + $0x38] sm:$0xff]  ;;  %v3776_v2 = vld [vmem:[%s5073_s2 + $0x30] sm:$0xff]  ;;  %v3775_v4 = vld [vmem:[%s5073_s2 + $0x28] sm:$0xff] }
   0x2   :  { %v3785_v1 = vld [vmem:[%s5073_s2 + $0x78] sm:$0xff]  ;;  %173 = vmatpush.bf16.msra.mxu0 %v3777_v0  ;;  %v3784_v3 = vld [vmem:[%s5073_s2 + $0x70] sm:$0xff]  ;;  %v3783_v5 = vld [vmem:[%s5073_s2 + $0x68] sm:$0xff] }
   0x3   :  { %186 = vmatpush.bf16.msra.mxu1 %v3785_v1 }
   0x6   :  { %174 = vmatpush.bf16.msra.mxu0 %v3776_v2 }
   0x7   :  { %187 = vmatpush.bf16.msra.mxu1 %v3784_v3 }
   0x8   :  { %15 = vsyncpa [#allocation3], 0  ;;  %v3774_v6 = vld [vmem:[%s5073_s2 + $0x20] sm:$0xff]  ;;  %v3773_v8 = vld [vmem:[%s5073_s2 + $0x18] sm:$0xff]  ;;  %vm202_vm0 = vcmask 1040384   ;;  %vm204_vm1 = vcmask 1044480  }
   0x9   :  { %v3782_v7 = vld [vmem:[%s5073_s2 + $0x60] sm:$0xff]  ;;  %v3781_v9 = vld [vmem:[%s5073_s2 + $0x58] sm:$0xff]  ;;  %v3772_v10 = vld [vmem:[%s5073_s2 + $0x10] sm:$0xff]  ;;  %vm223_vm2 = vcmask 523264   ;;  %v4058_v38 = vmov 64.0   ;;  %vm906_vm10 = vcmask 130048  }
   0xa   :  { %175 = vmatpush.bf16.msra.mxu0 %v3775_v4  ;;  %v3780_v11 = vld [vmem:[%s5073_s2 + $0x50] sm:$0xff]  ;;  %v3771_v12 = vld [vmem:[%s5073_s2 + $0x8] sm:$0xff]  ;;  %v37_v14 = vld [vmem:[%s5071_s0] sm:$0xff]  ;;  %3923 = vrcp.f32 %v4058_v38  ;;  %s4059_s19 = smov [#allocation2]   ;;  %s2855_s23 = sshll.u32 %s5081_s10, 4  ;;  %s2856_s23 = int_to_ptr.hbm [resolvable:$true] %s2855_s23 }
   0xb   :  { %188 = vmatpush.bf16.msra.mxu1 %v3783_v5  ;;  %v3779_v13 = vld [vmem:[%s5073_s2 + $0x48] sm:$0xff]  ;;  %v71_v15 = vunpack.c.l.b16 %v37_v14  ;;  %v72_v16 = vunpack.c.h.b16 %v37_v14  ;;  %v3770_v17 = vld [vmem:[%s5073_s2] sm:$0xff]  ;;  %v3789_v55 = vld [vmem:[%s5074_s3 + $0x18] sm:$0xff]  ;;  %s2853_s20 = sshll.u32 %s4059_s19, 4  ;;  %s2854_s20 = int_to_ptr.vmem [resolvable:$true] %s2853_s20 }
   0xc   :  { %v3778_v18 = vld [vmem:[%s5073_s2 + $0x40] sm:$0xff]  ;;  %v211_v35 = vld [vmem:[%s5072_s1 + $0x8] sm:$0xff]  ;;  %v3793_v56 = vld [vmem:[%s5074_s3 + $0x38] sm:$0xff]  ;;  %321 = vmatpush.bf16.msra.mxu2 %v3789_v55 }
   0xd   :  { %v73_v19 = vpack.c.b16 %v71_v15, %v71_v15  ;;  %v74_v20 = vpack.c.b16 %v72_v16, %v72_v16  ;;  %v210_v26 = vld [vmem:[%s5072_s1] sm:$0xff]  ;;  %v3805_v57 = vld [vmem:[%s5074_s3 + $0x98] sm:$0xff]  ;;  %368 = vmatpush.bf16.msra.mxu3 %v3793_v56  ;;  %v3788_v59 = vld [vmem:[%s5074_s3 + $0x10] sm:$0xff] }
   0xe   :  { %176 = vmatpush.bf16.msra.mxu0 %v3774_v6  ;;  %v3809_v58 = vld [vmem:[%s5074_s3 + $0xb8] sm:$0xff]  ;;  %v3792_v60 = vld [vmem:[%s5074_s3 + $0x30] sm:$0xff]  ;;  %v3787_v63 = vld [vmem:[%s5074_s3 + $0x8] sm:$0xff] }
   0xf   :  { %189 = vmatpush.bf16.msra.mxu1 %v3782_v7  ;;  %v3804_v61 = vld [vmem:[%s5074_s3 + $0x90] sm:$0xff]  ;;  %v3791_v0 = vld [vmem:[%s5074_s3 + $0x28] sm:$0xff]  ;;  %v3786_v5 = vld [vmem:[%s5074_s3] sm:$0xff] }
  0x10   :  { %v3924_v39 = vpop.eup %3923  ;;  %v3808_v62 = vld [vmem:[%s5074_s3 + $0xb0] sm:$0xff]  ;;  %322 = vmatpush.bf16.msra.mxu2 %v3788_v59  ;;  %v3803_v1 = vld [vmem:[%s5074_s3 + $0x88] sm:$0xff]  ;;  %v3790_v6 = vld [vmem:[%s5074_s3 + $0x20] sm:$0xff] }
  0x11   :  { %v231_v40 = vmul.f32 64.0, %v3924_v39  ;;  %vm235_vm3 = vweird.f32 %v3924_v39  ;;  %369 = vmatpush.bf16.msra.mxu3 %v3792_v60  ;;  %v3807_v2 = vld [vmem:[%s5074_s3 + $0xa8] sm:$0xff]  ;;  %v3802_v7 = vld [vmem:[%s5074_s3 + $0x80] sm:$0xff]  ;;  %v3796_v15 = vld [vmem:[%s5074_s3 + $0x50] sm:$0xff] }
  0x12   :  { %177 = vmatpush.bf16.msra.mxu0 %v3773_v8  ;;  %v3816_v59 = vld [vmem:[%s5074_s3 + $0xf0] sm:$0xff]  ;;  %v3811_v60 = vld [vmem:[%s5074_s3 + $0xc8] sm:$0xff] }
  0x13   :  { %190 = vmatpush.bf16.msra.mxu1 %v3781_v9  ;;  %v232_v41 = vsub.f32 1.0, %v231_v40  ;;  %v3806_v9 = vld [vmem:[%s5074_s3 + $0xa0] sm:$0xff] }
  0x14   :  { %323 = vmatpush.bf16.msra.mxu2 %v3787_v63  ;;  %v4299_v40 = vld [vmem:[%s5079_s8] sm:$0xff] }
  0x15   :  { %v233_v42 = vmul.f32 %v3924_v39, %v232_v41  ;;  %370 = vmatpush.bf16.msra.mxu3 %v3791_v0  ;;  %v3814_v63 = vld [vmem:[%s5074_s3 + $0xe0] sm:$0xff]  ;;  %v3829_v0 = vld [vmem:[%s5074_s3 + $0x158] sm:$0xff] }
  0x16   :  { %178 = vmatpush.bf16.msra.mxu0 %v3772_v10  ;;  %v3797_v10 = vld [vmem:[%s5074_s3 + $0x58] sm:$0xff] }
  0x17   :  { %191 = vmatpush.bf16.msra.mxu1 %v3780_v11  ;;  %v234_v43 = vadd.f32 %v3924_v39, %v233_v42  ;;  %v3801_v11 = vld [vmem:[%s5074_s3 + $0x78] sm:$0xff] }
  0x18   :  { %324 = vmatpush.bf16.msra.mxu2 %v3786_v5  ;;  %v3831_v5 = vld [vmem:[%s5074_s3 + $0x168] sm:$0xff] }
  0x19   :  { %v4182_v44 = vsel %vm235_vm3, %v3924_v39, %v234_v43  ;;  %371 = vmatpush.bf16.msra.mxu3 %v3790_v6  ;;  %v3826_v6 = vld [vmem:[%s5074_s3 + $0x140] sm:$0xff] }
  0x1a   :  { %179 = vmatpush.bf16.msra.mxu0 %v3771_v12  ;;  %v3821_v12 = vld [vmem:[%s5074_s3 + $0x118] sm:$0xff] }
  0x1b   :  { %192 = vmatpush.bf16.msra.mxu1 %v3779_v13  ;;  %v3825_v13 = vld [vmem:[%s5074_s3 + $0x138] sm:$0xff] }
  0x1c   :  { %415 = vmatpush.bf16.msrb.mxu2 %v3797_v10 }
  0x1d   :  { %462 = vmatpush.bf16.msrb.mxu3 %v3801_v11 }
  0x1e   :  { %180 = vmatpush.bf16.msra.mxu0 %v3770_v17  ;;  %v3800_v17 = vld [vmem:[%s5074_s3 + $0x70] sm:$0xff] }
  0x1f   :  { %193 = vmatpush.bf16.msra.mxu1 %v3778_v18  ;;  %v3820_v18 = vld [vmem:[%s5074_s3 + $0x110] sm:$0xff] }
  0x20   :  { %416 = vmatpush.bf16.msrb.mxu2 %v3796_v15  ;;  %v851_v15 = vld [vmem:[%s5075_s4 + $0x18] sm:$0xff] }
  0x21   :  { %181 = vmatmul.bf16.vlgmr.msra.gmra.mxu0 %v73_v19  ;;  %v3824_v19 = vld [vmem:[%s5074_s3 + $0x130] sm:$0xff]  ;;  %463 = vmatpush.bf16.msrb.mxu3 %v3800_v17 }
  0x22   :  { %194 = vmatmul.bf16.vlgmr.msra.gmra.mxu1 %v74_v20  ;;  %509 = vmatpush.bf16.msrb.mxu0 %v3805_v57 }
  0x23   :  { %556 = vmatpush.bf16.msrb.mxu1 %v3809_v58  ;;  %v3813_v58 = vld [vmem:[%s5074_s3 + $0xd8] sm:$0xff] }
  0x26   :  { %510 = vmatpush.bf16.msrb.mxu0 %v3804_v61  ;;  %v3815_v61 = vld [vmem:[%s5074_s3 + $0xe8] sm:$0xff] }
  0x27   :  { %557 = vmatpush.bf16.msrb.mxu1 %v3808_v62  ;;  %v3810_v62 = vld [vmem:[%s5074_s3 + $0xc0] sm:$0xff] }
  0x2a   :  { %511 = vmatpush.bf16.msrb.mxu0 %v3803_v1  ;;  %v3833_v1 = vld [vmem:[%s5074_s3 + $0x178] sm:$0xff] }
  0x2b   :  { %558 = vmatpush.bf16.msrb.mxu1 %v3807_v2  ;;  %v3828_v2 = vld [vmem:[%s5074_s3 + $0x150] sm:$0xff] }
  0x2e   :  { %512 = vmatpush.bf16.msrb.mxu0 %v3802_v7  ;;  %v3830_v7 = vld [vmem:[%s5074_s3 + $0x160] sm:$0xff] }
  0x2f   :  { %559 = vmatpush.bf16.msrb.mxu1 %v3806_v9 }
  0x32   :  { %697 = vmatpush.bf16.msra.mxu0 %v3821_v12 }
  0x33   :  { %744 = vmatpush.bf16.msra.mxu1 %v3825_v13 }
  0x36   :  { %698 = vmatpush.bf16.msra.mxu0 %v3820_v18 }
  0x37   :  { %745 = vmatpush.bf16.msra.mxu1 %v3824_v19 }
  0x9e   :  { %v182_v21 = vpop.f32.mrf.mxu0 }
  0x9f   :  { %v195_v22 = vpop.f32.mrf.mxu1 }
  0xa0   :  { %v196_v23 = vadd.f32 %v195_v22, %v182_v21 }
  0xa2   :  { %v200_v24 = vrot.slane %v196_v23, 7  ;;  %v206_v25 = vrot.slane %v196_v23, 3  ;;  %v3795_v23 = vld [vmem:[%s5074_s3 + $0x48] sm:$0xff] }
  0xa3   :  { %417 = vmatpush.bf16.msrb.mxu2 %v3795_v23 }
  0xa4   :  { %v203_v27 = vsel %vm202_vm0, 0.0, %v200_v24  ;;  %v208_v29 = vsel %vm202_vm0, 0.0, %v206_v25  ;;  %v3799_v24 = vld [vmem:[%s5074_s3 + $0x68] sm:$0xff] }
  0xa5   :  { %v205_v28 = vsel %vm204_vm1, %v203_v27, 0.0  ;;  %v209_v34 = vsel %vm204_vm1, %v208_v29, 0.0  ;;  %v3819_v25 = vld [vmem:[%s5074_s3 + $0x108] sm:$0xff]  ;;  %v3794_v29 = vld [vmem:[%s5074_s3 + $0x40] sm:$0xff]  ;;  %464 = vmatpush.bf16.msrb.mxu3 %v3799_v24 }
  0xa6   :  { %v4171_v30 = vadd.f32 %v210_v26, %v205_v28  ;;  %v184_v31 = vpop.f32.mrf.mxu0  ;;  %v4178_v36 = vadd.f32 %v211_v35, %v209_v34  ;;  %v3823_v27 = vld [vmem:[%s5074_s3 + $0x128] sm:$0xff]  ;;  %699 = vmatpush.bf16.msra.mxu0 %v3819_v25  ;;  %v3822_v34 = vld [vmem:[%s5074_s3 + $0x120] sm:$0xff] }
  0xa7   :  { %v197_v32 = vpop.f32.mrf.mxu1  ;;  %v3798_v31 = vld [vmem:[%s5074_s3 + $0x60] sm:$0xff]  ;;  %746 = vmatpush.bf16.msra.mxu1 %v3823_v27  ;;  %418 = vmatpush.bf16.msrb.mxu2 %v3794_v29 }
  0xa8   :  { %v224_v33 = vsel %vm223_vm2, %v4171_v30, 0.0  ;;  %v227_v37 = vsel %vm223_vm2, %v4178_v36, 0.0  ;;  %v3818_v32 = vld [vmem:[%s5074_s3 + $0x100] sm:$0xff] }
  0xa9   :  { %225 = vadd.xlane.f32.xlu0 %v224_v33  ;;  %465 = vmatpush.bf16.msrb.mxu3 %v3798_v31 }
  0xaa   :  { %700 = vmatpush.bf16.msra.mxu0 %v3818_v32  ;;  %v3226_v32 = vld [vmem:[%s5075_s4 + $0x70] sm:$0xff] }
  0xab   :  { %747 = vmatpush.bf16.msra.mxu1 %v3822_v34  ;;  %v3227_v34 = vld [vmem:[%s5075_s4 + $0x78] sm:$0xff] }
  0xb1   :  { %228 = vadd.xlane.f32.xlu0 %v227_v37 }
 0x11c   :  { %v226_v45 = vpop.xlane.xlu0 %225 }
 0x11d   :  { %v237_v46 = vmul.f32 %v4182_v44, %v226_v45  ;;  %v275_v45 = vperm.slane %v4299_v40, 0 }
 0x11f   :  { %v4186_v47 = vsub.f32 %v4171_v30, %v237_v46 }
 0x121   :  { %v241_v48 = vmul.f32 %v4186_v47, %v4186_v47 }
 0x123   :  { %v243_v49 = vsel %vm223_vm2, %v241_v48, 0.0 }
 0x124   :  { %244 = vadd.xlane.f32.xlu1 %v243_v49  ;;  %v229_v50 = vpop.xlane.xlu0 %228 }
 0x125   :  { %v238_v51 = vmul.f32 %v4182_v44, %v229_v50  ;;  %v278_v50 = vperm.slane %v4299_v40, 1 }
 0x127   :  { %v4193_v52 = vsub.f32 %v4178_v36, %v238_v51 }
 0x129   :  { %v242_v53 = vmul.f32 %v4193_v52, %v4193_v52 }
 0x12b   :  { %v246_v54 = vsel %vm223_vm2, %v242_v53, 0.0 }
 0x12c   :  { %247 = vadd.xlane.f32.xlu1 %v246_v54 }
 0x197   :  { %v245_v3 = vpop.xlane.xlu1 %244 }
 0x198   :  { %v249_v4 = vmul.f32 %v245_v3, %v4182_v44  ;;  %v3832_v3 = vld [vmem:[%s5074_s3 + $0x170] sm:$0xff] }
 0x19a   :  { %v251_v8 = vadd.f32 1e-06, %v249_v4  ;;  %v3827_v4 = vld [vmem:[%s5074_s3 + $0x148] sm:$0xff] }
 0x19c   :  { %3925 = vrsqrt.f32 %v251_v8  ;;  %vm259_vm5 = vweird.f32 %v251_v8 }
 0x19f   :  { %v248_v14 = vpop.xlane.xlu1 %247 }
 0x1a0   :  { %v250_v16 = vmul.f32 %v248_v14, %v4182_v44  ;;  %v850_v14 = vld [vmem:[%s5075_s4 + $0x10] sm:$0xff] }
 0x1a2   :  { %v3926_v20 = vpop.eup %3925  ;;  %v252_v21 = vadd.f32 1e-06, %v250_v16 }
 0x1a3   :  { %v254_v22 = vmul.f32 %v3926_v20, %v251_v8  ;;  %vm260_vm4 = vweird.f32 %v3926_v20 }
 0x1a4   :  { %3927 = vrsqrt.f32 %v252_v21  ;;  %vm261_vm6 = vmor %vm259_vm5, %vm260_vm4  ;;  %vm269_vm8 = vweird.f32 %v252_v21 }
 0x1a5   :  { %v255_v26 = vmul.f32 %v3926_v20, %v254_v22 }
 0x1a7   :  { %v256_v28 = vmul.f32 0.5, %v255_v26 }
 0x1a9   :  { %v257_v33 = vsub.f32 1.5, %v256_v28 }
 0x1aa   :  { %v3928_v35 = vpop.eup %3927 }
 0x1ab   :  { %v258_v37 = vmul.f32 %v3926_v20, %v257_v33  ;;  %v264_v38 = vmul.f32 %v3928_v35, %v252_v21  ;;  %vm270_vm7 = vweird.f32 %v3928_v35  ;;  %v3234_v33 = vld [vmem:[%s5075_s4 + $0xb0] sm:$0xff] }
 0x1ac   :  { %vm271_vm9 = vmor %vm269_vm8, %vm270_vm7 }
 0x1ad   :  { %v265_v39 = vmul.f32 %v3928_v35, %v264_v38  ;;  %v262_v41 = vsel %vm261_vm6, %v3926_v20, %v258_v37  ;;  %v3233_v38 = vld [vmem:[%s5075_s4 + $0xa8] sm:$0xff] }
 0x1ae   :  { %v273_v46 = vmul.f32 %v262_v41, %v4186_v47  ;;  %v3817_v47 = vld [vmem:[%s5074_s3 + $0xf8] sm:$0xff] }
 0x1af   :  { %v266_v42 = vmul.f32 0.5, %v265_v39 }
 0x1b0   :  { %v276_v51 = vmul.f32 %v275_v45, %v273_v46 }
 0x1b1   :  { %v267_v43 = vsub.f32 1.5, %v266_v42 }
 0x1b2   :  { %v279_v55 = vadd.f32 %v278_v50, %v276_v51 }
 0x1b3   :  { %v268_v48 = vmul.f32 %v3928_v35, %v267_v43 }
 0x1b5   :  { %v272_v49 = vsel %vm271_vm9, %v3928_v35, %v268_v48  ;;  %v3235_v35 = vld [vmem:[%s5075_s4 + $0xb8] sm:$0xff]  ;;  %v3232_v48 = vld [vmem:[%s5075_s4 + $0xa0] sm:$0xff] }
 0x1b6   :  { %v274_v53 = vmul.f32 %v272_v49, %v4193_v52  ;;  %v3812_v52 = vld [vmem:[%s5074_s3 + $0xd0] sm:$0xff]  ;;  %v3225_v49 = vld [vmem:[%s5075_s4 + $0x68] sm:$0xff] }
 0x1b8   :  { %v277_v54 = vmul.f32 %v275_v45, %v274_v53 }
 0x1ba   :  { %v280_v56 = vadd.f32 %v278_v50, %v277_v54 }
 0x1bc   :  { %v281_v57 = vpack.c.bf16 %v280_v56, %v279_v55  ;;  %v3231_v55 = vld [vmem:[%s5075_s4 + $0x98] sm:$0xff]  ;;  %v3224_v56 = vld [vmem:[%s5075_s4 + $0x60] sm:$0xff] }
 0x1be   :  { %2944 = vmatmul.msk.bf16.vlgmr.msra.gmra.mxu2 %vm223_vm2, %v281_v57  ;;  %2969 = vmatmul.msk.bf16.vlgmr.msra.gmra.mxu3 %vm223_vm2, %v281_v57 }
 0x1bf   :  { %3044 = vmatmul.msk.bf16.vlgmr.msrb.gmra.mxu0 %vm223_vm2, %v281_v57  ;;  %3069 = vmatmul.msk.bf16.vlgmr.msrb.gmra.mxu1 %vm223_vm2, %v281_v57 }
 0x1c0   :  { %603 = vmatpush.bf16.msra.mxu2 %v3813_v58  ;;  %650 = vmatpush.bf16.msra.mxu3 %v3817_v47 }
 0x1c4   :  { %604 = vmatpush.bf16.msra.mxu2 %v3812_v52  ;;  %651 = vmatpush.bf16.msra.mxu3 %v3816_v59  ;;  %v3230_v52 = vld [vmem:[%s5075_s4 + $0x90] sm:$0xff] }
 0x1c8   :  { %605 = vmatpush.bf16.msra.mxu2 %v3811_v60  ;;  %652 = vmatpush.bf16.msra.mxu3 %v3815_v61 }
 0x1cc   :  { %606 = vmatpush.bf16.msra.mxu2 %v3810_v62  ;;  %653 = vmatpush.bf16.msra.mxu3 %v3814_v63  ;;  %v3229_v62 = vld [vmem:[%s5075_s4 + $0x88] sm:$0xff] }
 0x1ce   :  { %2994 = vmatmul.msk.bf16.vlgmr.msrb.gmra.mxu2 %vm223_vm2, %v281_v57  ;;  %3019 = vmatmul.msk.bf16.vlgmr.msrb.gmra.mxu3 %vm223_vm2, %v281_v57 }
 0x1cf   :  { %3144 = vmatmul.msk.bf16.vlgmr.msra.gmra.mxu0 %vm223_vm2, %v281_v57  ;;  %3169 = vmatmul.msk.bf16.vlgmr.msra.gmra.mxu1 %vm223_vm2, %v281_v57 }
 0x1d0   :  { %791 = vmatpush.bf16.msrb.mxu2 %v3829_v0  ;;  %838 = vmatpush.bf16.msrb.mxu3 %v3833_v1  ;;  %v3223_v1 = vld [vmem:[%s5075_s4 + $0x58] sm:$0xff] }
 0x1d4   :  { %792 = vmatpush.bf16.msrb.mxu2 %v3828_v2  ;;  %839 = vmatpush.bf16.msrb.mxu3 %v3832_v3  ;;  %v3228_v2 = vld [vmem:[%s5075_s4 + $0x80] sm:$0xff] }
 0x1d8   :  { %793 = vmatpush.bf16.msrb.mxu2 %v3827_v4  ;;  %840 = vmatpush.bf16.msrb.mxu3 %v3831_v5  ;;  %v3222_v5 = vld [vmem:[%s5075_s4 + $0x50] sm:$0xff] }
 0x1dc   :  { %794 = vmatpush.bf16.msrb.mxu2 %v3826_v6  ;;  %841 = vmatpush.bf16.msrb.mxu3 %v3830_v7 }
 0x1de   :  { %3094 = vmatmul.msk.bf16.vlgmr.msra.gmra.mxu2 %vm223_vm2, %v281_v57  ;;  %3119 = vmatmul.msk.bf16.vlgmr.msra.gmra.mxu3 %vm223_vm2, %v281_v57 }
 0x1ee   :  { %3194 = vmatmul.msk.bf16.vlgmr.msrb.gmra.mxu2 %vm223_vm2, %v281_v57  ;;  %3219 = vmatmul.msk.bf16.vlgmr.msrb.gmra.mxu3 %vm223_vm2, %v281_v57 }
 0x23c   :  { %v514_v18 = vpop.f32.mrf.mxu0  ;;  %v561_v31 = vpop.f32.mrf.mxu1 }
 0x23d   :  { %v892_v63 = vadd.f32 %v3230_v52, %v561_v31 }
 0x241   :  { %v4365_v8 = vpop.f32.mrf.mxu2  ;;  %v4367_v9 = vpop.f32.mrf.mxu3 }
 0x244   :  { %v516_v24 = vpop.f32.mrf.mxu0  ;;  %v563_v54 = vpop.f32.mrf.mxu1 }
 0x245   :  { %v893_v59 = vadd.f32 %v3231_v55, %v563_v54  ;;  %v876_v6 = vadd.f32 %v3223_v1, %v516_v24 }
 0x247   :  { %v1069_v3 = vpack.c.bf16 %v893_v59, %v892_v63 }
 0x249   :  { %v4369_v10 = vpop.f32.mrf.mxu2  ;;  %v4371_v11 = vpop.f32.mrf.mxu3 }
 0x24c   :  { %v702_v27 = vpop.f32.mrf.mxu0 }
 0x24d   :  { %v894_v57 = vadd.f32 %v3232_v48, %v702_v27 }
 0x251   :  { %v420_v12 = vpop.f32.mrf.mxu2  ;;  %v467_v13 = vpop.f32.mrf.mxu3 }
 0x252   :  { %v4379_v19 = vadd.f32 %v850_v14, %v467_v13  ;;  %v890_v7 = vadd.f32 %v3228_v2, %v420_v12  ;;  %v875_v14 = vadd.f32 %v3222_v5, %v514_v18  ;;  %v849_v18 = vld [vmem:[%s5075_s4 + $0x8] sm:$0xff]  ;;  %v219_v2 = vld [vmem:[%s5072_s1 + $0x40] sm:$0xff] }
 0x253   :  { %v857_v31 = vadd.f32 %v849_v18, %v4369_v10 }
 0x254   :  { %v704_v37 = vpop.f32.mrf.mxu0 }
 0x255   :  { %v895_v50 = vadd.f32 %v3233_v38, %v704_v37 }
 0x257   :  { %v1070_v60 = vpack.c.bf16 %v895_v50, %v894_v57 }
 0x259   :  { %v422_v16 = vpop.f32.mrf.mxu2  ;;  %v469_v17 = vpop.f32.mrf.mxu3 }
 0x25a   :  { %v4381_v20 = vadd.f32 %v851_v15, %v469_v17  ;;  %v891_v4 = vadd.f32 %v3229_v62, %v422_v16  ;;  %v903_v17 = vpack.c.bf16 %v876_v6, %v875_v14  ;;  %v3220_v16 = vld [vmem:[%s5075_s4 + $0x40] sm:$0xff] }
 0x25b   :  { %v873_v24 = vadd.f32 %v3220_v16, %v4367_v9  ;;  %v853_v9 = vld [vmem:[%s5075_s4 + $0x28] sm:$0xff] }
 0x25c   :  { %v899_v21 = vpack.c.bf16 %v4381_v20, %v4379_v19  ;;  %v1068_v15 = vpack.c.bf16 %v891_v4, %v890_v7  ;;  %v923_v12 = vsel %vm906_vm10, %v903_v17, 0  ;;  %v855_v19 = vld [vmem:[%s5075_s4 + $0x38] sm:$0xff]  ;;  %v854_v20 = vld [vmem:[%s5075_s4 + $0x30] sm:$0xff]  ;;  %v220_v7 = vld [vmem:[%s5072_s1 + $0x48] sm:$0xff] }
 0x261   :  { %v4385_v22 = vpop.f32.mrf.mxu2  ;;  %v655_v23 = vpop.f32.mrf.mxu3 }
 0x262   :  { %v877_v61 = vadd.f32 %v3224_v56, %v655_v23  ;;  %v3221_v23 = vld [vmem:[%s5075_s4 + $0x48] sm:$0xff] }
 0x269   :  { %v4387_v25 = vpop.f32.mrf.mxu2  ;;  %v657_v26 = vpop.f32.mrf.mxu3 }
 0x26a   :  { %v878_v58 = vadd.f32 %v3225_v49, %v657_v26  ;;  %v874_v26 = vadd.f32 %v3221_v23, %v4371_v11  ;;  %v861_v10 = vadd.f32 %v853_v9, %v4387_v25  ;;  %v221_v23 = vld [vmem:[%s5072_s1 + $0x50] sm:$0xff] }
 0x26c   :  { %v904_v0 = vpack.c.bf16 %v878_v58, %v877_v61  ;;  %v902_v27 = vpack.c.bf16 %v874_v26, %v873_v24  ;;  %v217_v58 = vld [vmem:[%s5072_s1 + $0x30] sm:$0xff]  ;;  %v218_v61 = vld [vmem:[%s5072_s1 + $0x38] sm:$0xff] }
 0x26e   :  { %v926_v13 = vsel %vm906_vm10, %v904_v0, 0 }
 0x271   :  { %v796_v28 = vpop.f32.mrf.mxu2  ;;  %v843_v29 = vpop.f32.mrf.mxu3 }
 0x272   :  { %v879_v42 = vadd.f32 %v3226_v32, %v796_v28  ;;  %v896_v43 = vadd.f32 %v3234_v33, %v843_v29  ;;  %v920_v28 = vsel %vm906_vm10, %v902_v27, 0  ;;  %v848_v29 = vld [vmem:[%s5075_s4] sm:$0xff] }
 0x273   :  { %v856_v11 = vadd.f32 %v848_v29, %v4365_v8  ;;  %v852_v33 = vld [vmem:[%s5075_s4 + $0x20] sm:$0xff] }
 0x274   :  { %v860_v8 = vadd.f32 %v852_v33, %v4385_v22  ;;  %v214_v22 = vld [vmem:[%s5072_s1 + $0x18] sm:$0xff] }
 0x275   :  { %v898_v32 = vpack.c.bf16 %v857_v31, %v856_v11 }
 0x279   :  { %v798_v39 = vpop.f32.mrf.mxu2  ;;  %v845_v41 = vpop.f32.mrf.mxu3 }
 0x27a   :  { %v880_v45 = vadd.f32 %v3227_v34, %v798_v39  ;;  %v897_v46 = vadd.f32 %v3235_v35, %v845_v41  ;;  %v749_v34 = vpop.f32.mrf.mxu1  ;;  %v900_v35 = vpack.c.bf16 %v861_v10, %v860_v8 }
 0x27b   :  { %v862_v38 = vadd.f32 %v854_v20, %v749_v34 }
 0x27c   :  { %v905_v51 = vpack.c.bf16 %v880_v45, %v879_v42  ;;  %v1071_v53 = vpack.c.bf16 %v897_v46, %v896_v43  ;;  %v215_v46 = vld [vmem:[%s5072_s1 + $0x20] sm:$0xff] }
 0x27e   :  { %1088 = vmatpush.bf16.msrb.mxu1 %v1071_v53  ;;  %v929_v47 = vsel %vm906_vm10, %v905_v51, 0  ;;  %v216_v53 = vld [vmem:[%s5072_s1 + $0x28] sm:$0xff] }
 0x27f   :  { %935 = vmatpush.bf16.xpose.msrb.mxu0 %v929_v47 }
 0x282   :  { %1089 = vmatpush.bf16.msrb.mxu1 %v1070_v60  ;;  %v751_v37 = vpop.f32.mrf.mxu1 }
 0x286   :  { %1090 = vmatpush.bf16.msrb.mxu1 %v1069_v3 }
 0x287   :  { %936 = vmatpush.bf16.xpose.msrb.mxu0 %v926_v13 }
 0x28a   :  { %1091 = vmatpush.bf16.msrb.mxu1 %v1068_v15 }
 0x28f   :  { %937 = vmatpush.bf16.xpose.msrb.mxu0 %v923_v12 }
 0x297   :  { %938 = vmatpush.bf16.xpose.msrb.mxu0 %v920_v28 }
 0x29e   :  { %3236 = vmatmul.msk.bf16.vlgmr.msrb.gmra.mxu0 %vm906_vm10, %v898_v32 }
 0x2ae   :  { %3237 = vmatmul.msk.bf16.gmra.mxu0 %vm906_vm10, %v899_v21  ;;  %v863_v21 = vadd.f32 %v855_v19, %v751_v37 }
 0x2b0   :  { %v901_v39 = vpack.c.bf16 %v863_v21, %v862_v38 }
 0x2be   :  { %3238 = vmatmul.msk.bf16.gmra.mxu0 %vm906_vm10, %v900_v35 }
 0x2ce   :  { %3239 = vmatmul.msk.bf16.gmra.mxu0 %vm906_vm10, %v901_v39 }
 0x31b   :  { %v940_v25 = vpop.f32.mrf.mxu0 }
 0x31c   :  { %v960_v41 = vmul.f32 0.25, %v940_v25 }
 0x31e   :  { %v968_v42 = vadd.f32 %v960_v41, %v214_v22 }
 0x320   :  { %v976_v43 = vsel %vm223_vm2, %v968_v42, -inf }
 0x321   :  { %977 = vmax.xlane.f32.xlu2 %v976_v43 }
 0x323   :  { %v942_v45 = vpop.f32.mrf.mxu0 }
 0x324   :  { %v961_v48 = vmul.f32 0.25, %v942_v45 }
 0x326   :  { %v969_v49 = vadd.f32 %v961_v48, %v215_v46 }
 0x328   :  { %v979_v50 = vsel %vm223_vm2, %v969_v49, -inf }
 0x329   :  { %980 = vmax.xlane.f32.xlu2 %v979_v50 }
 0x32b   :  { %v945_v51 = vpop.f32.mrf.mxu0 }
 0x32c   :  { %v962_v54 = vmul.f32 0.25, %v945_v51 }
 0x32e   :  { %v970_v55 = vadd.f32 %v962_v54, %v216_v53 }
 0x330   :  { %v982_v56 = vsel %vm223_vm2, %v970_v55, -inf }
 0x331   :  { %983 = vmax.xlane.f32.xlu0 %v982_v56 }
 0x333   :  { %v947_v57 = vpop.f32.mrf.mxu0 }
 0x334   :  { %v963_v47 = vmul.f32 0.25, %v947_v57 }
 0x336   :  { %v971_v52 = vadd.f32 %v963_v47, %v217_v58 }
 0x338   :  { %v985_v59 = vsel %vm223_vm2, %v971_v52, -inf }
 0x339   :  { %986 = vmax.xlane.f32.xlu1 %v985_v59 }
 0x33b   :  { %v950_v60 = vpop.f32.mrf.mxu0 }
 0x33c   :  { %v964_v62 = vmul.f32 0.25, %v950_v60 }
 0x33e   :  { %v972_v63 = vadd.f32 %v964_v62, %v218_v61 }
 0x340   :  { %v988_v0 = vsel %vm223_vm2, %v972_v63, -inf }
 0x341   :  { %989 = vmax.xlane.f32.xlu2 %v988_v0 }
 0x343   :  { %v952_v1 = vpop.f32.mrf.mxu0 }
 0x344   :  { %v965_v3 = vmul.f32 0.25, %v952_v1 }
 0x346   :  { %v973_v4 = vadd.f32 %v965_v3, %v219_v2 }
 0x348   :  { %v991_v5 = vsel %vm223_vm2, %v973_v4, -inf }
 0x349   :  { %992 = vmax.xlane.f32.xlu0 %v991_v5 }
 0x34b   :  { %v955_v6 = vpop.f32.mrf.mxu0 }
 0x34c   :  { %v966_v13 = vmul.f32 0.25, %v955_v6 }
 0x34e   :  { %v974_v14 = vadd.f32 %v966_v13, %v220_v7 }
 0x350   :  { %v994_v15 = vsel %vm223_vm2, %v974_v14, -inf }
 0x351   :  { %995 = vmax.xlane.f32.xlu1 %v994_v15 }
 0x353   :  { %v957_v17 = vpop.f32.mrf.mxu0 }
 0x354   :  { %v967_v16 = vmul.f32 0.25, %v957_v17 }
 0x356   :  { %v975_v26 = vadd.f32 %v967_v16, %v221_v23 }
 0x358   :  { %v997_v12 = vsel %vm223_vm2, %v975_v26, -inf }
 0x359   :  { %998 = vmax.xlane.f32.xlu2 %v997_v12 }
 0x394   :  { %v978_v24 = vpop.xlane.xlu2 %977 }
 0x395   :  { %v1000_v27 = vsub.f32 %v968_v42, %v978_v24 }
 0x397   :  { %v1008_v18 = vmul.f32 1.442695, %v1000_v27 }
 0x399   :  { %3929 = vpow2.f32 %v1008_v18 }
 0x39c   :  { %v981_v28 = vpop.xlane.xlu2 %980 }
 0x39d   :  { %v1001_v29 = vsub.f32 %v969_v49, %v981_v28 }
 0x39f   :  { %v3930_v31 = vpop.eup %3929  ;;  %v1010_v11 = vmul.f32 1.442695, %v1001_v29 }
 0x3a0   :  { %v1024_v32 = vsel %vm223_vm2, %v3930_v31, 0.0 }
 0x3a1   :  { %3931 = vpow2.f32 %v1010_v11  ;;  %1025 = vadd.xlane.f32.xlu0 %v1024_v32 }
 0x3a4   :  { %v984_v9 = vpop.xlane.xlu0 %983 }
 0x3a5   :  { %v1002_v33 = vsub.f32 %v970_v55, %v984_v9  ;;  %v3834_v9 = vld [vmem:[%s5076_s5] sm:$0xff] }
 0x3a6   :  { %1132 = vmatpush.bf16.msra.mxu2 %v3834_v9 }
 0x3a7   :  { %v3932_v10 = vpop.eup %3931  ;;  %v1012_v8 = vmul.f32 1.442695, %v1002_v33  ;;  %v3835_v33 = vld [vmem:[%s5076_s5 + $0x8] sm:$0xff] }
 0x3a8   :  { %v1027_v34 = vsel %vm223_vm2, %v3932_v10, 0.0  ;;  %1162 = vmatpush.bf16.msra.mxu3 %v3835_v33 }
 0x3a9   :  { %3933 = vpow2.f32 %v1012_v8  ;;  %1028 = vadd.xlane.f32.xlu1 %v1027_v34  ;;  %v3836_v8 = vld [vmem:[%s5076_s5 + $0x10] sm:$0xff] }
 0x3aa   :  { %1191 = vmatpush.bf16.msrb.mxu2 %v3836_v8 }
 0x3ac   :  { %v987_v35 = vpop.xlane.xlu1 %986 }
 0x3ad   :  { %v1003_v37 = vsub.f32 %v971_v52, %v987_v35 }
 0x3af   :  { %v3934_v19 = vpop.eup %3933  ;;  %v1014_v20 = vmul.f32 1.442695, %v1003_v37  ;;  %v3837_v37 = vld [vmem:[%s5076_s5 + $0x18] sm:$0xff] }
 0x3b0   :  { %v1030_v21 = vsel %vm223_vm2, %v3934_v19, 0.0  ;;  %1220 = vmatpush.bf16.msrb.mxu3 %v3837_v37 }
 0x3b1   :  { %3935 = vpow2.f32 %v1014_v20  ;;  %1031 = vadd.xlane.f32.xlu2 %v1030_v21 }
 0x3b4   :  { %v990_v38 = vpop.xlane.xlu2 %989 }
 0x3b5   :  { %v1004_v39 = vsub.f32 %v972_v63, %v990_v38 }
 0x3b7   :  { %v3936_v25 = vpop.eup %3935  ;;  %v1016_v22 = vmul.f32 1.442695, %v1004_v39 }
 0x3b8   :  { %v1033_v41 = vsel %vm223_vm2, %v3936_v25, 0.0 }
 0x3b9   :  { %3937 = vpow2.f32 %v1016_v22  ;;  %1034 = vadd.xlane.f32.xlu0 %v1033_v41 }
 0x3bc   :  { %v993_v42 = vpop.xlane.xlu0 %992 }
 0x3bd   :  { %v1005_v43 = vsub.f32 %v973_v4, %v993_v42 }
 0x3bf   :  { %v3938_v45 = vpop.eup %3937  ;;  %v1018_v46 = vmul.f32 1.442695, %v1005_v43 }
 0x3c0   :  { %v1036_v48 = vsel %vm223_vm2, %v3938_v45, 0.0 }
 0x3c1   :  { %3939 = vpow2.f32 %v1018_v46  ;;  %1037 = vadd.xlane.f32.xlu1 %v1036_v48  ;;  %v1139_v48 = vperm.slane %v4299_v40, 2 }
 0x3c4   :  { %v996_v49 = vpop.xlane.xlu1 %995 }
 0x3c5   :  { %v1006_v50 = vsub.f32 %v974_v14, %v996_v49 }
 0x3c7   :  { %v3940_v51 = vpop.eup %3939  ;;  %v1020_v53 = vmul.f32 1.442695, %v1006_v50 }
 0x3c8   :  { %v1039_v54 = vsel %vm223_vm2, %v3940_v51, 0.0 }
 0x3c9   :  { %3941 = vpow2.f32 %v1020_v53  ;;  %1040 = vadd.xlane.f32.xlu2 %v1039_v54 }
 0x3cc   :  { %v999_v55 = vpop.xlane.xlu2 %998 }
 0x3cd   :  { %v1007_v56 = vsub.f32 %v975_v26, %v999_v55 }
 0x3cf   :  { %v3942_v57 = vpop.eup %3941  ;;  %v1022_v58 = vmul.f32 1.442695, %v1007_v56 }
 0x3d0   :  { %v1042_v47 = vsel %vm223_vm2, %v3942_v57, 0.0 }
 0x3d1   :  { %3943 = vpow2.f32 %v1022_v58  ;;  %1043 = vadd.xlane.f32.xlu0 %v1042_v47 }
 0x3d7   :  { %v3944_v52 = vpop.eup %3943 }
 0x3d8   :  { %v1045_v59 = vsel %vm223_vm2, %v3944_v52, 0.0 }
 0x3d9   :  { %1046 = vadd.xlane.f32.xlu1 %v1045_v59 }
 0x414   :  { %v1026_v60 = vpop.xlane.xlu0 %1025 }
 0x415   :  { %3945 = vrcp.f32 %v1026_v60 }
 0x41b   :  { %v3946_v62 = vpop.eup %3945 }
 0x41c   :  { %v1029_v61 = vpop.xlane.xlu1 %1028  ;;  %v1056_v0 = vmul.f32 %v3946_v62, %v3930_v31 }
 0x41d   :  { %3947 = vrcp.f32 %v1029_v61 }
 0x423   :  { %v3948_v63 = vpop.eup %3947 }
 0x424   :  { %v1057_v1 = vmul.f32 %v3948_v63, %v3932_v10  ;;  %v1032_v3 = vpop.xlane.xlu2 %1031 }
 0x425   :  { %3949 = vrcp.f32 %v1032_v3 }
 0x426   :  { %v1064_v2 = vpack.c.bf16 %v1057_v1, %v1056_v0 }
 0x428   :  { %3240 = vmatmul.msk.bf16.vlgmr.msrb.gmra.mxu1 %vm223_vm2, %v1064_v2 }
 0x42b   :  { %v3950_v5 = vpop.eup %3949 }
 0x42c   :  { %v1035_v4 = vpop.xlane.xlu0 %1034  ;;  %v1058_v7 = vmul.f32 %v3950_v5, %v3934_v19 }
 0x42d   :  { %3951 = vrcp.f32 %v1035_v4 }
 0x433   :  { %v3952_v6 = vpop.eup %3951 }
 0x434   :  { %v1059_v13 = vmul.f32 %v3952_v6, %v3936_v25  ;;  %v1038_v15 = vpop.xlane.xlu1 %1037 }
 0x435   :  { %3953 = vrcp.f32 %v1038_v15  ;;  %v3840_v15 = vld [vmem:[%s5077_s6 + $0x10] sm:$0xff] }
 0x436   :  { %v1065_v14 = vpack.c.bf16 %v1059_v13, %v1058_v7 }
 0x438   :  { %3241 = vmatmul.msk.bf16.gmra.mxu1 %vm223_vm2, %v1065_v14  ;;  %v3841_v14 = vld [vmem:[%s5077_s6 + $0x18] sm:$0xff] }
 0x43b   :  { %v3954_v23 = vpop.eup %3953 }
 0x43c   :  { %v1041_v17 = vpop.xlane.xlu2 %1040  ;;  %v1060_v26 = vmul.f32 %v3954_v23, %v3938_v45 }
 0x43d   :  { %3955 = vrcp.f32 %v1041_v17  ;;  %v3839_v17 = vld [vmem:[%s5077_s6 + $0x8] sm:$0xff] }
 0x443   :  { %v3956_v16 = vpop.eup %3955 }
 0x444   :  { %v1061_v12 = vmul.f32 %v3956_v16, %v3940_v51  ;;  %v1044_v27 = vpop.xlane.xlu0 %1043 }
 0x445   :  { %3957 = vrcp.f32 %v1044_v27 }
 0x446   :  { %v1066_v24 = vpack.c.bf16 %v1061_v12, %v1060_v26  ;;  %v3838_v12 = vld [vmem:[%s5077_s6] sm:$0xff] }
 0x448   :  { %3242 = vmatmul.msk.bf16.gmra.mxu1 %vm223_vm2, %v1066_v24 }
 0x44b   :  { %v3958_v28 = vpop.eup %3957 }
 0x44c   :  { %v1047_v18 = vpop.xlane.xlu1 %1046  ;;  %v1062_v31 = vmul.f32 %v3958_v28, %v3942_v57 }
 0x44d   :  { %3959 = vrcp.f32 %v1047_v18 }
 0x453   :  { %v3960_v29 = vpop.eup %3959 }
 0x454   :  { %v1063_v11 = vmul.f32 %v3960_v29, %v3944_v52 }
 0x456   :  { %v1067_v32 = vpack.c.bf16 %v1063_v11, %v1062_v31 }
 0x458   :  { %3243 = vmatmul.msk.bf16.gmra.mxu1 %vm223_vm2, %v1067_v32 }
 0x4a5   :  { %v1093_v10 = vpop.f32.mrf.mxu1 }
 0x4ad   :  { %v1095_v34 = vpop.f32.mrf.mxu1 }
 0x4ae   :  { %v1113_v35 = vpack.c.bf16 %v1095_v34, %v1093_v10 }
 0x4b0   :  { %3248 = vmatmul.msk.bf16.vlgmr.msra.gmra.mxu2 %vm906_vm10, %v1113_v35 }
 0x4b1   :  { %1322 = vmatpush.bf16.msra.mxu2 %v3841_v14 }
 0x4b5   :  { %v1098_v19 = vpop.f32.mrf.mxu1  ;;  %1323 = vmatpush.bf16.msra.mxu2 %v3840_v15 }
 0x4b9   :  { %1324 = vmatpush.bf16.msra.mxu2 %v3839_v17 }
 0x4bd   :  { %v1100_v20 = vpop.f32.mrf.mxu1  ;;  %1325 = vmatpush.bf16.msra.mxu2 %v3838_v12 }
 0x4be   :  { %v1142_v21 = vpack.c.bf16 %v1100_v20, %v1098_v19  ;;  %v1275_v19 = vperm.slane %v4299_v40, 3 }
 0x4c0   :  { %3255 = vmatmul.msk.bf16.vlgmr.msra.gmra.mxu3 %vm906_vm10, %v1142_v21 }
 0x4c5   :  { %v1103_v38 = vpop.f32.mrf.mxu1 }
 0x4cd   :  { %v1105_v39 = vpop.f32.mrf.mxu1 }
 0x4ce   :  { %v1171_v25 = vpack.c.bf16 %v1105_v39, %v1103_v38  ;;  %v1278_v39 = vperm.slane %v4299_v40, 4 }
 0x4d0   :  { %3262 = vmatmul.msk.bf16.vlgmr.msrb.gmra.mxu2 %vm906_vm10, %v1171_v25 }
 0x4d5   :  { %v1108_v22 = vpop.f32.mrf.mxu1 }
 0x4dd   :  { %v1110_v41 = vpop.f32.mrf.mxu1 }
 0x4de   :  { %v1200_v42 = vpack.c.bf16 %v1110_v41, %v1108_v22 }
 0x4e0   :  { %3269 = vmatmul.msk.bf16.vlgmr.msrb.gmra.mxu3 %vm906_vm10, %v1200_v42 }
 0x533   :  { %v1134_v43 = vpop.f32.mrf.mxu2 }
 0x534   :  { %v1140_v51 = vadd.f32 %v1139_v48, %v1134_v43 }
 0x53b   :  { %v1136_v46 = vpop.f32.mrf.mxu2 }
 0x53c   :  { %v1141_v57 = vadd.f32 %v1139_v48, %v1136_v46  ;;  %v1290_v46 = vperm.slane %v4299_v40, 5 }
 0x543   :  { %v1164_v45 = vpop.f32.mrf.mxu3 }
 0x544   :  { %v1169_v53 = vadd.f32 %v1164_v45, %v1140_v51  ;;  %v3849_v51 = vld [vmem:[%s5078_s7 + $0x38] sm:$0xff] }
 0x545   :  { %1478 = vmatpush.bf16.msra.mxu3 %v3849_v51 }
 0x54b   :  { %v1166_v49 = vpop.f32.mrf.mxu3 }
 0x54c   :  { %v1170_v52 = vadd.f32 %v1166_v49, %v1141_v57 }
 0x553   :  { %v1193_v50 = vpop.f32.mrf.mxu2 }
 0x554   :  { %v1198_v54 = vadd.f32 %v1193_v50, %v1169_v53 }
 0x55b   :  { %v1195_v47 = vpop.f32.mrf.mxu2 }
 0x55c   :  { %v1199_v60 = vadd.f32 %v1195_v47, %v1170_v52  ;;  %v3847_v52 = vld [vmem:[%s5078_s7 + $0x28] sm:$0xff] }
 0x563   :  { %v1222_v55 = vpop.f32.mrf.mxu3 }
 0x564   :  { %v1227_v56 = vadd.f32 %v1222_v55, %v1198_v54 }
 0x566   :  { %v4534_v58 = vadd.f32 %v1227_v56, %v4171_v30  ;;  %v3848_v56 = vld [vmem:[%s5078_s7 + $0x30] sm:$0xff] }
 0x567   :  { %1479 = vmatpush.bf16.msra.mxu3 %v3848_v56 }
 0x568   :  { %v1231_v59 = vsel %vm223_vm2, %v4534_v58, 0.0 }
 0x569   :  { %1232 = vadd.xlane.f32.xlu2 %v1231_v59 }
 0x56b   :  { %v1224_v61 = vpop.f32.mrf.mxu3  ;;  %1480 = vmatpush.bf16.msra.mxu3 %v3847_v52 }
 0x56c   :  { %v1228_v62 = vadd.f32 %v1224_v61, %v1199_v60  ;;  %v3846_v61 = vld [vmem:[%s5078_s7 + $0x20] sm:$0xff] }
 0x56e   :  { %v4539_v63 = vadd.f32 %v1228_v62, %v4178_v36 }
 0x56f   :  { %1481 = vmatpush.bf16.msra.mxu3 %v3846_v61 }
 0x570   :  { %v1234_v0 = vsel %vm223_vm2, %v4539_v63, 0.0 }
 0x571   :  { %1235 = vadd.xlane.f32.xlu0 %v1234_v0 }
 0x5dc   :  { %v1233_v1 = vpop.xlane.xlu2 %1232 }
 0x5dd   :  { %v1237_v30 = vmul.f32 %v1233_v1, %v4182_v44 }
 0x5df   :  { %v1239_v2 = vsub.f32 %v4534_v58, %v1237_v30 }
 0x5e1   :  { %v1241_v3 = vmul.f32 %v1239_v2, %v1239_v2 }
 0x5e3   :  { %v1243_v4 = vsel %vm223_vm2, %v1241_v3, 0.0 }
 0x5e4   :  { %1244 = vadd.xlane.f32.xlu1 %v1243_v4  ;;  %v1236_v5 = vpop.xlane.xlu0 %1235 }
 0x5e5   :  { %v1238_v6 = vmul.f32 %v1236_v5, %v4182_v44 }
 0x5e7   :  { %v1240_v7 = vsub.f32 %v4539_v63, %v1238_v6 }
 0x5e9   :  { %v1242_v36 = vmul.f32 %v1240_v7, %v1240_v7 }
 0x5eb   :  { %v1246_v13 = vsel %vm223_vm2, %v1242_v36, 0.0 }
 0x5ec   :  { %1247 = vadd.xlane.f32.xlu2 %v1246_v13 }
 0x657   :  { %v1245_v23 = vpop.xlane.xlu1 %1244 }
 0x658   :  { %v1249_v16 = vmul.f32 %v1245_v23, %v4182_v44 }
 0x65a   :  { %v1251_v26 = vadd.f32 1e-06, %v1249_v16 }
 0x65c   :  { %3961 = vrsqrt.f32 %v1251_v26  ;;  %vm1259_vm12 = vweird.f32 %v1251_v26 }
 0x65f   :  { %v1248_v24 = vpop.xlane.xlu2 %1247 }
 0x660   :  { %v1250_v27 = vmul.f32 %v1248_v24, %v4182_v44 }
 0x662   :  { %v3962_v18 = vpop.eup %3961  ;;  %v1252_v28 = vadd.f32 1e-06, %v1250_v27 }
 0x663   :  { %v1254_v29 = vmul.f32 %v3962_v18, %v1251_v26  ;;  %vm1260_vm11 = vweird.f32 %v3962_v18  ;;  %v3843_v26 = vld [vmem:[%s5078_s7 + $0x8] sm:$0xff] }
 0x664   :  { %3963 = vrsqrt.f32 %v1252_v28  ;;  %vm1261_vm13 = vmor %vm1259_vm12, %vm1260_vm11  ;;  %vm1269_vm15 = vweird.f32 %v1252_v28 }
 0x665   :  { %v1255_v31 = vmul.f32 %v3962_v18, %v1254_v29 }
 0x667   :  { %v1256_v11 = vmul.f32 0.5, %v1255_v31 }
 0x669   :  { %v1257_v32 = vsub.f32 1.5, %v1256_v11  ;;  %v3842_v11 = vld [vmem:[%s5078_s7] sm:$0xff] }
 0x66a   :  { %v3964_v9 = vpop.eup %3963 }
 0x66b   :  { %v1258_v33 = vmul.f32 %v3962_v18, %v1257_v32  ;;  %v1264_v10 = vmul.f32 %v3964_v9, %v1252_v28  ;;  %vm1270_vm14 = vweird.f32 %v3964_v9 }
 0x66c   :  { %vm1271_vm1 = vmor %vm1269_vm15, %vm1270_vm14 }
 0x66d   :  { %v1265_v8 = vmul.f32 %v3964_v9, %v1264_v10  ;;  %v1262_v34 = vsel %vm1261_vm13, %v3962_v18, %v1258_v33 }
 0x66e   :  { %v1273_v20 = vmul.f32 %v1262_v34, %v1239_v2  ;;  %v3845_v2 = vld [vmem:[%s5078_s7 + $0x18] sm:$0xff] }
 0x66f   :  { %v1266_v35 = vmul.f32 0.5, %v1265_v8  ;;  %1482 = vmatpush.bf16.msra.mxu3 %v3845_v2 }
 0x670   :  { %v1276_v25 = vmul.f32 %v1275_v19, %v1273_v20 }
 0x671   :  { %v1267_v37 = vsub.f32 1.5, %v1266_v35 }
 0x672   :  { %v1279_v42 = vadd.f32 %v1278_v39, %v1276_v25 }
 0x673   :  { %v1268_v21 = vmul.f32 %v3964_v9, %v1267_v37 }
 0x675   :  { %v1272_v38 = vsel %vm1271_vm1, %v3964_v9, %v1268_v21 }
 0x676   :  { %v1274_v22 = vmul.f32 %v1272_v38, %v1240_v7  ;;  %v3844_v7 = vld [vmem:[%s5078_s7 + $0x10] sm:$0xff] }
 0x677   :  { %1483 = vmatpush.bf16.msra.mxu3 %v3844_v7 }
 0x678   :  { %v1277_v41 = vmul.f32 %v1275_v19, %v1274_v22 }
 0x67a   :  { %v1280_v43 = vadd.f32 %v1278_v39, %v1277_v41 }
 0x67b   :  { %1484 = vmatpush.bf16.msra.mxu3 %v3843_v26 }
 0x67c   :  { %v1281_v45 = vpack.c.bf16 %v1280_v43, %v1279_v42 }
 0x67e   :  { %3286 = vmatmul.msk.bf16.vlgmr.msra.gmra.mxu2 %vm223_vm2, %v1281_v45 }
 0x67f   :  { %1485 = vmatpush.bf16.msra.mxu3 %v3842_v11  ;;  %v3865_v11 = vld [vmem:[%s5074_s3 + $0x1f8] sm:$0xff] }
 0x683   :  { %1728 = vmatpush.bf16.msrb.mxu3 %v3865_v11 }
 0x701   :  { %v1327_v48 = vpop.f32.mrf.mxu2 }
 0x702   :  { %v4567_v49 = vadd.f32 %v1327_v48, %v1290_v46 }
 0x704   :  { %v4570_v50 = vmul.f32 0.70710677, %v4567_v49 }
 0x706   :  { %v1336_v53 = vand.u32 2147483647, %v4570_v50  ;;  %vm1402_vm12 = vcmp.lt.f32.partialorder %v4570_v50, 0.0  ;;  %v4023_v50 = vld [vmem:[%s5079_s8] sm:$0xff] }
 0x707   :  { %v1429_v7 = vperm.slane %v4023_v50, 6 }
 0x708   :  { %v1338_v54 = vmul.f32 0.3275911, %v1336_v53  ;;  %v1390_v17 = vsub.f32 0.0, %v1336_v53 }
 0x709   :  { %v1329_v55 = vpop.f32.mrf.mxu2 }
 0x70a   :  { %v1340_v40 = vadd.f32 1.0, %v1338_v54  ;;  %v4579_v57 = vadd.f32 %v1329_v55, %v1290_v46  ;;  %v1392_v18 = vmul.f32 %v1390_v17, %v1336_v53 }
 0x70c   :  { %3965 = vrcp.f32 %v1340_v40  ;;  %v4582_v47 = vmul.f32 0.70710677, %v4579_v57  ;;  %v1353_v3 = vand.u32 2147483648, %v1340_v40  ;;  %v1351_v5 = vand.u32 2147483647, %v1340_v40 }
 0x70d   :  { %vm1347_vm4 = vweird.f32 %v1340_v40  ;;  %v1394_v10 = vmul.f32 1.442695, %v1392_v18  ;;  %v1333_v2 = vmul.f32 0.5, %v4579_v57 }
 0x70e   :  { %v1337_v59 = vand.u32 2147483647, %v4582_v47  ;;  %v1354_v36 = vor.u32 1.1754944e-38, %v1353_v3  ;;  %vm1352_vm6 = vcmp.eq.f32.partialorder %v1351_v5, 8.507059e+37  ;;  %vm1403_vm13 = vcmp.lt.f32.partialorder %v4582_v47, 0.0 }
 0x710   :  { %v1339_v60 = vmul.f32 0.3275911, %v1337_v59  ;;  %v1391_v37 = vsub.f32 0.0, %v1337_v59 }
 0x712   :  { %v3966_v62 = vpop.eup %3965  ;;  %v1341_v1 = vadd.f32 1.0, %v1339_v60  ;;  %v1393_v39 = vmul.f32 %v1391_v37, %v1337_v59  ;;  %v3863_v37 = vld [vmem:[%s5074_s3 + $0x1e8] sm:$0xff] }
 0x713   :  { %v1343_v0 = vmul.f32 %v3966_v62, %v1340_v40  ;;  %vm1348_vm3 = vweird.f32 %v3966_v62 }
 0x714   :  { %3967 = vrcp.f32 %v1341_v1  ;;  %vm1349_vm5 = vmor %vm1347_vm4, %vm1348_vm3  ;;  %v1368_v27 = vand.u32 2147483648, %v1341_v1  ;;  %v1366_v29 = vand.u32 2147483647, %v1341_v1  ;;  %vm1362_vm8 = vweird.f32 %v1341_v1 }
 0x715   :  { %v1344_v30 = vsub.f32 1.0, %v1343_v0  ;;  %3969 = vpow2.f32 %v1394_v10  ;;  %v1396_v43 = vmul.f32 1.442695, %v1393_v39  ;;  %v3864_v10 = vld [vmem:[%s5074_s3 + $0x1f0] sm:$0xff]  ;;  %v3850_v39 = vld [vmem:[%s5074_s3 + $0x180] sm:$0xff] }
 0x716   :  { %v1369_v33 = vor.u32 1.1754944e-38, %v1368_v27  ;;  %vm1367_vm11 = vcmp.eq.f32.partialorder %v1366_v29, 8.507059e+37  ;;  %v3853_v29 = vld [vmem:[%s5074_s3 + $0x198] sm:$0xff]  ;;  %1729 = vmatpush.bf16.msrb.mxu3 %v3864_v10  ;;  %v3896_v10 = vld [vmem:[%s5074_s3 + $0x2f0] sm:$0xff] }
 0x717   :  { %v1345_v4 = vmul.f32 %v3966_v62, %v1344_v30  ;;  %3971 = vpow2.f32 %v1396_v43  ;;  %v1332_v30 = vmul.f32 0.5, %v4567_v49  ;;  %1587 = vmatpush.bf16.msrb.mxu2 %v3853_v29  ;;  %v3873_v43 = vld [vmem:[%s5074_s3 + $0x238] sm:$0xff] }
 0x719   :  { %v1346_v6 = vadd.f32 %v3966_v62, %v1345_v4 }
 0x71a   :  { %v3968_v13 = vpop.eup %3967  ;;  %1730 = vmatpush.bf16.msrb.mxu3 %v3863_v37  ;;  %v3874_v37 = vld [vmem:[%s5074_s3 + $0x240] sm:$0xff] }
 0x71b   :  { %v1350_v14 = vsel %vm1349_vm5, %v3966_v62, %v1346_v6  ;;  %v1358_v23 = vmul.f32 %v3968_v13, %v1341_v1  ;;  %vm1363_vm7 = vweird.f32 %v3968_v13  ;;  %v3970_v45 = vpop.eup %3969 }
 0x71c   :  { %v1355_v15 = vsel %vm1352_vm6, %v1354_v36, %v1350_v14  ;;  %vm1364_vm9 = vmor %vm1362_vm8, %vm1363_vm7 }
 0x71d   :  { %v1372_v16 = vmul.f32 1.0614054, %v1355_v15  ;;  %v1359_v12 = vsub.f32 1.0, %v1358_v23  ;;  %v3972_v52 = vpop.eup %3971 }
 0x71f   :  { %v1374_v24 = vadd.f32 -1.4531521, %v1372_v16  ;;  %v1360_v28 = vmul.f32 %v3968_v13, %v1359_v12 }
 0x721   :  { %v1376_v31 = vmul.f32 %v1374_v24, %v1355_v15  ;;  %v1361_v32 = vadd.f32 %v3968_v13, %v1360_v28 }
 0x723   :  { %v1378_v9 = vadd.f32 1.4214138, %v1376_v31  ;;  %v1365_v8 = vsel %vm1364_vm9, %v3968_v13, %v1361_v32  ;;  %v3857_v31 = vld [vmem:[%s5074_s3 + $0x1b8] sm:$0xff] }
 0x724   :  { %v1370_v35 = vsel %vm1367_vm11, %v1369_v33, %v1365_v8  ;;  %v3869_v32 = vld [vmem:[%s5074_s3 + $0x218] sm:$0xff]  ;;  %1634 = vmatpush.bf16.msra.mxu1 %v3857_v31  ;;  %v3856_v33 = vld [vmem:[%s5074_s3 + $0x1b0] sm:$0xff] }
 0x725   :  { %v1380_v34 = vmul.f32 %v1378_v9, %v1355_v15  ;;  %v1373_v19 = vmul.f32 1.0614054, %v1370_v35  ;;  %1775 = vmatpush.bf16.msra.mxu0 %v3869_v32  ;;  %v3852_v9 = vld [vmem:[%s5074_s3 + $0x190] sm:$0xff]  ;;  %v3877_v32 = vld [vmem:[%s5074_s3 + $0x258] sm:$0xff] }
 0x726   :  { %v3868_v8 = vld [vmem:[%s5074_s3 + $0x210] sm:$0xff]  ;;  %1588 = vmatpush.bf16.msrb.mxu2 %v3852_v9  ;;  %v3897_v9 = vld [vmem:[%s5074_s3 + $0x2f8] sm:$0xff] }
 0x727   :  { %v1382_v20 = vadd.f32 -0.28449672, %v1380_v34  ;;  %v1375_v21 = vadd.f32 -1.4531521, %v1373_v19  ;;  %v3851_v34 = vld [vmem:[%s5074_s3 + $0x188] sm:$0xff] }
 0x728   :  { %1635 = vmatpush.bf16.msra.mxu1 %v3856_v33  ;;  %v3888_v33 = vld [vmem:[%s5074_s3 + $0x2b0] sm:$0xff] }
 0x729   :  { %v1384_v38 = vmul.f32 %v1382_v20, %v1355_v15  ;;  %v1377_v25 = vmul.f32 %v1375_v21, %v1370_v35  ;;  %1776 = vmatpush.bf16.msra.mxu0 %v3868_v8  ;;  %v3867_v20 = vld [vmem:[%s5074_s3 + $0x208] sm:$0xff] }
 0x72a   :  { %1589 = vmatpush.bf16.msrb.mxu2 %v3851_v34  ;;  %v3875_v8 = vld [vmem:[%s5074_s3 + $0x248] sm:$0xff] }
 0x72b   :  { %v1386_v22 = vadd.f32 0.2548296, %v1384_v38  ;;  %v1379_v41 = vadd.f32 1.4214138, %v1377_v25  ;;  %v3854_v25 = vld [vmem:[%s5074_s3 + $0x1a0] sm:$0xff]  ;;  %v3887_v34 = vld [vmem:[%s5074_s3 + $0x2a8] sm:$0xff] }
 0x72d   :  { %v1388_v42 = vmul.f32 %v1386_v22, %v1355_v15  ;;  %v1381_v46 = vmul.f32 %v1379_v41, %v1370_v35  ;;  %1777 = vmatpush.bf16.msra.mxu0 %v3867_v20  ;;  %v3862_v22 = vld [vmem:[%s5074_s3 + $0x1e0] sm:$0xff] }
 0x72e   :  { %v3866_v41 = vld [vmem:[%s5074_s3 + $0x200] sm:$0xff]  ;;  %1590 = vmatpush.bf16.msrb.mxu2 %v3850_v39  ;;  %1731 = vmatpush.bf16.msrb.mxu3 %v3862_v22  ;;  %v3891_v39 = vld [vmem:[%s5074_s3 + $0x2c8] sm:$0xff] }
 0x72f   :  { %v1398_v48 = vmul.f32 %v3970_v45, %v1388_v42  ;;  %v1383_v51 = vadd.f32 -0.28449672, %v1381_v46  ;;  %v3861_v42 = vld [vmem:[%s5074_s3 + $0x1d8] sm:$0xff]  ;;  %v3894_v20 = vld [vmem:[%s5074_s3 + $0x2e0] sm:$0xff] }
 0x730   :  { %v3881_v45 = vld [vmem:[%s5074_s3 + $0x278] sm:$0xff] }
 0x731   :  { %v1400_v53 = vsub.f32 1.0, %v1398_v48  ;;  %v1385_v54 = vmul.f32 %v1383_v51, %v1370_v35  ;;  %1778 = vmatpush.bf16.msra.mxu0 %v3866_v41  ;;  %v3885_v48 = vld [vmem:[%s5074_s3 + $0x298] sm:$0xff] }
 0x732   :  { %1681 = vmatpush.bf16.msra.mxu2 %v3861_v42  ;;  %v3620_v42 = vld [vmem:[%s5075_s4 + $0xc0] sm:$0xff] }
 0x733   :  { %v1387_v55 = vadd.f32 0.2548296, %v1385_v54  ;;  %v1404_v56 = vsub.f32 0.0, %v1400_v53  ;;  %v3872_v54 = vld [vmem:[%s5074_s3 + $0x230] sm:$0xff] }
 0x735   :  { %v1389_v40 = vmul.f32 %v1387_v55, %v1370_v35  ;;  %v1406_v59 = vsel %vm1402_vm12, %v1404_v56, %v1400_v53  ;;  %v3855_v35 = vld [vmem:[%s5074_s3 + $0x1a8] sm:$0xff]  ;;  %v3860_v53 = vld [vmem:[%s5074_s3 + $0x1d0] sm:$0xff]  ;;  %1963 = vmatpush.bf16.msrb.mxu0 %v3885_v48 }
 0x736   :  { %v1408_v0 = vadd.f32 1.0, %v1406_v59  ;;  %1636 = vmatpush.bf16.msra.mxu1 %v3855_v35  ;;  %v3880_v55 = vld [vmem:[%s5074_s3 + $0x270] sm:$0xff]  ;;  %1682 = vmatpush.bf16.msra.mxu2 %v3860_v53  ;;  %v3859_v59 = vld [vmem:[%s5074_s3 + $0x1c8] sm:$0xff] }
 0x737   :  { %v1399_v60 = vmul.f32 %v3972_v52, %v1389_v40  ;;  %v3884_v56 = vld [vmem:[%s5074_s3 + $0x290] sm:$0xff]  ;;  %v3895_v35 = vld [vmem:[%s5074_s3 + $0x2e8] sm:$0xff] }
 0x738   :  { %v1410_v4 = vmul.f32 %v1408_v0, %v1332_v30  ;;  %v3879_v0 = vld [vmem:[%s5074_s3 + $0x268] sm:$0xff] }
 0x739   :  { %v1401_v61 = vsub.f32 1.0, %v1399_v60  ;;  %1964 = vmatpush.bf16.msrb.mxu0 %v3884_v56 }
 0x73a   :  { %1637 = vmatpush.bf16.msra.mxu1 %v3854_v25  ;;  %1683 = vmatpush.bf16.msra.mxu2 %v3859_v59  ;;  %v3890_v25 = vld [vmem:[%s5074_s3 + $0x2c0] sm:$0xff] }
 0x73b   :  { %v1405_v62 = vsub.f32 0.0, %v1401_v61 }
 0x73d   :  { %v1407_v1 = vsel %vm1403_vm13, %v1405_v62, %v1401_v61  ;;  %v3871_v61 = vld [vmem:[%s5074_s3 + $0x228] sm:$0xff] }
 0x73e   :  { %v1409_v3 = vadd.f32 1.0, %v1407_v1  ;;  %1822 = vmatpush.bf16.msrb.mxu1 %v3873_v43  ;;  %v3883_v1 = vld [vmem:[%s5074_s3 + $0x288] sm:$0xff] }
 0x73f   :  { %1965 = vmatpush.bf16.msrb.mxu0 %v3883_v1  ;;  %v3621_v43 = vld [vmem:[%s5075_s4 + $0xc8] sm:$0xff] }
 0x740   :  { %v1411_v5 = vmul.f32 %v1409_v3, %v1333_v2  ;;  %v3858_v2 = vld [vmem:[%s5074_s3 + $0x1c0] sm:$0xff] }
 0x741   :  { %v3870_v3 = vld [vmem:[%s5074_s3 + $0x220] sm:$0xff]  ;;  %1684 = vmatpush.bf16.msra.mxu2 %v3858_v2 }
 0x742   :  { %v1412_v6 = vpack.c.bf16 %v1411_v5, %v1410_v4  ;;  %1823 = vmatpush.bf16.msrb.mxu1 %v3872_v54  ;;  %v3878_v5 = vld [vmem:[%s5074_s3 + $0x260] sm:$0xff] }
 0x744   :  { %1486 = vmatmul.bf16.vlgmr.msra.gmra.mxu3 %v1412_v6  ;;  %v3882_v6 = vld [vmem:[%s5074_s3 + $0x280] sm:$0xff] }
 0x745   :  { %1916 = vmatpush.bf16.msra.mxu3 %v3881_v45  ;;  %1966 = vmatpush.bf16.msrb.mxu0 %v3882_v6  ;;  %v3622_v45 = vld [vmem:[%s5075_s4 + $0xd0] sm:$0xff] }
 0x746   :  { %1824 = vmatpush.bf16.msrb.mxu1 %v3871_v61 }
 0x749   :  { %1917 = vmatpush.bf16.msra.mxu3 %v3880_v55 }
 0x74a   :  { %1825 = vmatpush.bf16.msrb.mxu1 %v3870_v3 }
 0x74d   :  { %1918 = vmatpush.bf16.msra.mxu3 %v3879_v0 }
 0x751   :  { %1919 = vmatpush.bf16.msra.mxu3 %v3878_v5 }
 0x7c7   :  { %v1487_v36 = vpop.f32.mrf.mxu3 }
 0x7c8   :  { %v1488_v13 = vadd.f32 %v1487_v36, %v1429_v7 }
 0x7ca   :  { %v4611_v14 = vadd.f32 %v1488_v13, %v4534_v58 }
 0x7cc   :  { %v1496_v49 = vsel %vm223_vm2, %v4611_v14, 0.0 }
 0x7cd   :  { %1497 = vadd.xlane.f32.xlu0 %v1496_v49  ;;  %v4735_v49 = vld [vmem:[%s5079_s8 + $0x8] sm:$0xff] }
 0x7cf   :  { %v1489_v57 = vpop.f32.mrf.mxu3 }
 0x7d0   :  { %v1490_v47 = vadd.f32 %v1489_v57, %v1429_v7 }
 0x7d2   :  { %v4616_v15 = vadd.f32 %v1490_v47, %v4539_v63 }
 0x7d4   :  { %v1499_v17 = vsel %vm223_vm2, %v4616_v15, 0.0 }
 0x7d5   :  { %1500 = vadd.xlane.f32.xlu1 %v1499_v17 }
 0x840   :  { %v1498_v23 = vpop.xlane.xlu0 %1497 }
 0x841   :  { %v1502_v16 = vmul.f32 %v1498_v23, %v4182_v44  ;;  %v1540_v23 = vperm.slane %v4735_v49, 0 }
 0x843   :  { %v4622_v26 = vsub.f32 %v4611_v14, %v1502_v16 }
 0x845   :  { %v1506_v58 = vmul.f32 %v4622_v26, %v4622_v26 }
 0x847   :  { %v1508_v12 = vsel %vm223_vm2, %v1506_v58, 0.0 }
 0x848   :  { %v1501_v24 = vpop.xlane.xlu1 %1500  ;;  %1509 = vadd.xlane.f32.xlu2 %v1508_v12 }
 0x849   :  { %v1503_v63 = vmul.f32 %v1501_v24, %v4182_v44  ;;  %v1543_v24 = vperm.slane %v4735_v49, 1 }
 0x84b   :  { %v4629_v27 = vsub.f32 %v4616_v15, %v1503_v63 }
 0x84d   :  { %v1507_v18 = vmul.f32 %v4629_v27, %v4629_v27 }
 0x84f   :  { %v1511_v28 = vsel %vm223_vm2, %v1507_v18, 0.0 }
 0x850   :  { %1512 = vadd.xlane.f32.xlu0 %v1511_v28 }
 0x8bb   :  { %v1510_v19 = vpop.xlane.xlu2 %1509 }
 0x8bc   :  { %v1514_v21 = vmul.f32 %v1510_v19, %v4182_v44  ;;  %v3886_v19 = vld [vmem:[%s5074_s3 + $0x2a0] sm:$0xff] }
 0x8be   :  { %v1516_v38 = vadd.f32 1e-06, %v1514_v21  ;;  %v3893_v21 = vld [vmem:[%s5074_s3 + $0x2d8] sm:$0xff] }
 0x8c0   :  { %3973 = vrsqrt.f32 %v1516_v38  ;;  %vm1524_vm15 = vweird.f32 %v1516_v38 }
 0x8c3   :  { %v1513_v46 = vpop.xlane.xlu0 %1512 }
 0x8c4   :  { %v1515_v51 = vmul.f32 %v1513_v46, %v4182_v44  ;;  %v3623_v46 = vld [vmem:[%s5075_s4 + $0xd8] sm:$0xff] }
 0x8c6   :  { %v3974_v40 = vpop.eup %3973  ;;  %v1517_v52 = vadd.f32 1e-06, %v1515_v51 }
 0x8c7   :  { %v1519_v60 = vmul.f32 %v3974_v40, %v1516_v38  ;;  %vm1525_vm14 = vweird.f32 %v3974_v40  ;;  %v3892_v38 = vld [vmem:[%s5074_s3 + $0x2d0] sm:$0xff] }
 0x8c8   :  { %3975 = vrsqrt.f32 %v1517_v52  ;;  %vm1526_vm1 = vmor %vm1524_vm15, %vm1525_vm14  ;;  %vm1534_vm4 = vweird.f32 %v1517_v52 }
 0x8c9   :  { %v1520_v62 = vmul.f32 %v3974_v40, %v1519_v60 }
 0x8cb   :  { %v1521_v30 = vmul.f32 0.5, %v1520_v62 }
 0x8cd   :  { %v1522_v4 = vsub.f32 1.5, %v1521_v30 }
 0x8ce   :  { %v3976_v50 = vpop.eup %3975 }
 0x8cf   :  { %v1523_v7 = vmul.f32 %v3974_v40, %v1522_v4  ;;  %v1529_v36 = vmul.f32 %v3976_v50, %v1517_v52  ;;  %vm1535_vm3 = vweird.f32 %v3976_v50 }
 0x8d0   :  { %vm1536_vm5 = vmor %vm1534_vm4, %vm1535_vm3 }
 0x8d1   :  { %v1530_v13 = vmul.f32 %v3976_v50, %v1529_v36  ;;  %v1527_v57 = vsel %vm1526_vm1, %v3974_v40, %v1523_v7  ;;  %v3625_v7 = vld [vmem:[%s5075_s4 + $0xe8] sm:$0xff]  ;;  %v3642_v36 = vld [vmem:[%s5075_s4 + $0x170] sm:$0xff] }
 0x8d2   :  { %v1538_v16 = vmul.f32 %v1527_v57, %v4622_v26  ;;  %v3889_v26 = vld [vmem:[%s5074_s3 + $0x2b8] sm:$0xff] }
 0x8d3   :  { %v1531_v47 = vmul.f32 0.5, %v1530_v13  ;;  %v3643_v13 = vld [vmem:[%s5075_s4 + $0x178] sm:$0xff] }
 0x8d4   :  { %v1541_v63 = vmul.f32 %v1540_v23, %v1538_v16 }
 0x8d5   :  { %v1532_v17 = vsub.f32 1.5, %v1531_v47 }
 0x8d6   :  { %v1544_v29 = vadd.f32 %v1543_v24, %v1541_v63  ;;  %v3640_v63 = vld [vmem:[%s5075_s4 + $0x160] sm:$0xff] }
 0x8d7   :  { %v1533_v58 = vmul.f32 %v3976_v50, %v1532_v17  ;;  %v3641_v17 = vld [vmem:[%s5075_s4 + $0x168] sm:$0xff] }
 0x8d9   :  { %v1537_v12 = vsel %vm1536_vm5, %v3976_v50, %v1533_v58  ;;  %v3624_v50 = vld [vmem:[%s5075_s4 + $0xe0] sm:$0xff] }
 0x8da   :  { %v1539_v18 = vmul.f32 %v1537_v12, %v4629_v27  ;;  %v3876_v27 = vld [vmem:[%s5074_s3 + $0x250] sm:$0xff] }
 0x8dc   :  { %v1542_v28 = vmul.f32 %v1540_v23, %v1539_v18 }
 0x8de   :  { %v1545_v31 = vadd.f32 %v1543_v24, %v1542_v28 }
 0x8e0   :  { %v1546_v11 = vpack.c.bf16 %v1545_v31, %v1544_v29 }
 0x8e2   :  { %3344 = vmatmul.msk.bf16.vlgmr.msrb.gmra.mxu2 %vm223_vm2, %v1546_v11  ;;  %3369 = vmatmul.msk.bf16.vlgmr.msra.gmra.mxu1 %vm223_vm2, %v1546_v11 }
 0x8e3   :  { %3419 = vmatmul.msk.bf16.vlgmr.msrb.gmra.mxu3 %vm223_vm2, %v1546_v11  ;;  %3444 = vmatmul.msk.bf16.vlgmr.msra.gmra.mxu0 %vm223_vm2, %v1546_v11 }
 0x8e4   :  { %1869 = vmatpush.bf16.msrb.mxu2 %v3877_v32  ;;  %2010 = vmatpush.bf16.msra.mxu1 %v3889_v26  ;;  %v3638_v26 = vld [vmem:[%s5075_s4 + $0x150] sm:$0xff] }
 0x8e5   :  { %2104 = vmatpush.bf16.msrb.mxu3 %v3897_v9 }
 0x8e8   :  { %1870 = vmatpush.bf16.msrb.mxu2 %v3876_v27  ;;  %2011 = vmatpush.bf16.msra.mxu1 %v3888_v33 }
 0x8e9   :  { %2105 = vmatpush.bf16.msrb.mxu3 %v3896_v10  ;;  %v3637_v10 = vld [vmem:[%s5075_s4 + $0x148] sm:$0xff] }
 0x8ec   :  { %1871 = vmatpush.bf16.msrb.mxu2 %v3875_v8  ;;  %2012 = vmatpush.bf16.msra.mxu1 %v3887_v34  ;;  %v3636_v34 = vld [vmem:[%s5075_s4 + $0x140] sm:$0xff] }
 0x8ed   :  { %2106 = vmatpush.bf16.msrb.mxu3 %v3895_v35 }
 0x8f0   :  { %1872 = vmatpush.bf16.msrb.mxu2 %v3874_v37  ;;  %2013 = vmatpush.bf16.msra.mxu1 %v3886_v19 }
 0x8f1   :  { %2107 = vmatpush.bf16.msrb.mxu3 %v3894_v20  ;;  %v3634_v20 = vld [vmem:[%s5075_s4 + $0x130] sm:$0xff] }
 0x8f2   :  { %3394 = vmatmul.msk.bf16.vlgmr.msra.gmra.mxu2 %vm223_vm2, %v1546_v11  ;;  %3469 = vmatmul.msk.bf16.vlgmr.msrb.gmra.mxu1 %vm223_vm2, %v1546_v11 }
 0x8f3   :  { %3519 = vmatmul.msk.bf16.vlgmr.msra.gmra.mxu3 %vm223_vm2, %v1546_v11  ;;  %3544 = vmatmul.msk.bf16.vlgmr.msrb.gmra.mxu0 %vm223_vm2, %v1546_v11 }
 0x8f4   :  { %2057 = vmatpush.bf16.msra.mxu2 %v3893_v21  ;;  %v3635_v21 = vld [vmem:[%s5075_s4 + $0x138] sm:$0xff] }
 0x8f8   :  { %2058 = vmatpush.bf16.msra.mxu2 %v3892_v38 }
 0x8fc   :  { %2059 = vmatpush.bf16.msra.mxu2 %v3891_v39 }
 0x900   :  { %2060 = vmatpush.bf16.msra.mxu2 %v3890_v25 }
 0x902   :  { %3494 = vmatmul.msk.bf16.vlgmr.msrb.gmra.mxu2 %vm223_vm2, %v1546_v11  ;;  %3569 = vmatmul.msk.bf16.vlgmr.msra.gmra.mxu1 %vm223_vm2, %v1546_v11 }
 0x903   :  { %3619 = vmatmul.msk.bf16.vlgmr.msrb.gmra.mxu3 %vm223_vm2, %v1546_v11 }
 0x912   :  { %3594 = vmatmul.msk.bf16.vlgmr.msra.gmra.mxu2 %vm223_vm2, %v1546_v11  ;;  %v3639_v11 = vld [vmem:[%s5075_s4 + $0x158] sm:$0xff] }
 0x95f   :  { %v4827_v59 = vpop.f32.mrf.mxu1 }
 0x960   :  { %v4821_v40 = vpop.f32.mrf.mxu0 }
 0x965   :  { %v1592_v22 = vpop.f32.mrf.mxu2 }
 0x966   :  { %v1733_v41 = vpop.f32.mrf.mxu3  ;;  %v4813_v51 = vadd.f32 %v3620_v42, %v1592_v22 }
 0x967   :  { %v4817_v55 = vadd.f32 %v3622_v45, %v1733_v41  ;;  %v1641_v30 = vpop.f32.mrf.mxu1  ;;  %v3633_v41 = vld [vmem:[%s5075_s4 + $0x128] sm:$0xff] }
 0x968   :  { %v1782_v0 = vpop.f32.mrf.mxu0 }
 0x96d   :  { %v1594_v48 = vpop.f32.mrf.mxu2 }
 0x96e   :  { %v4815_v53 = vadd.f32 %v3621_v43, %v1594_v48  ;;  %v1735_v54 = vpop.f32.mrf.mxu3  ;;  %v3632_v43 = vld [vmem:[%s5075_s4 + $0x120] sm:$0xff] }
 0x96f   :  { %v4819_v56 = vadd.f32 %v3623_v46, %v1735_v54  ;;  %v1827_v6 = vpop.f32.mrf.mxu1 }
 0x970   :  { %v2165_v52 = vpack.c.bf16 %v4815_v53, %v4813_v51  ;;  %v1968_v3 = vpop.f32.mrf.mxu0  ;;  %v2159_v8 = vadd.f32 %v3638_v26, %v1827_v6  ;;  %v3628_v6 = vld [vmem:[%s5075_s4 + $0x100] sm:$0xff]  ;;  %v4027_v26 = vld [vmem:[%s5072_s1 + $0x30] sm:$0xff] }
 0x971   :  { %v2166_v60 = vpack.c.bf16 %v4819_v56, %v4817_v55  ;;  %v2161_v32 = vadd.f32 %v3640_v63, %v1968_v3 }
 0x975   :  { %v1686_v61 = vpop.f32.mrf.mxu2 }
 0x976   :  { %v1921_v62 = vpop.f32.mrf.mxu3  ;;  %v2157_v19 = vadd.f32 %v3636_v34, %v1686_v61  ;;  %v3631_v61 = vld [vmem:[%s5075_s4 + $0x118] sm:$0xff] }
 0x977   :  { %v1829_v31 = vpop.f32.mrf.mxu1  ;;  %v2144_v48 = vadd.f32 %v3632_v43, %v1921_v62  ;;  %v2143_v3 = vadd.f32 %v3631_v61, %v1782_v0  ;;  %v3629_v62 = vld [vmem:[%s5075_s4 + $0x108] sm:$0xff]  ;;  %v2140_v0 = vadd.f32 %v3628_v6, %v4827_v59  ;;  %v3627_v59 = vld [vmem:[%s5075_s4 + $0xf8] sm:$0xff] }
 0x978   :  { %v1970_v47 = vpop.f32.mrf.mxu0  ;;  %v2160_v9 = vadd.f32 %v3639_v11, %v1829_v31 }
 0x979   :  { %v2162_v28 = vadd.f32 %v3641_v17, %v1970_v47 }
 0x97a   :  { %v2335_v35 = vpack.c.bf16 %v2160_v9, %v2159_v8  ;;  %v4028_v8 = vld [vmem:[%s5072_s1 + $0x38] sm:$0xff] }
 0x97b   :  { %v2336_v27 = vpack.c.bf16 %v2162_v28, %v2161_v32  ;;  %v4026_v28 = vld [vmem:[%s5072_s1 + $0x28] sm:$0xff] }
 0x97d   :  { %v1688_v1 = vpop.f32.mrf.mxu2 }
 0x97e   :  { %v1923_v2 = vpop.f32.mrf.mxu3  ;;  %v2158_v37 = vadd.f32 %v3637_v10, %v1688_v1  ;;  %v3630_v1 = vld [vmem:[%s5075_s4 + $0x110] sm:$0xff] }
 0x97f   :  { %v2145_v45 = vadd.f32 %v3633_v41, %v1923_v2 }
 0x980   :  { %v2334_v38 = vpack.c.bf16 %v2158_v37, %v2157_v19 }
 0x981   :  { %v2171_v54 = vpack.c.bf16 %v2145_v45, %v2144_v48 }
 0x985   :  { %v1874_v4 = vpop.f32.mrf.mxu2 }
 0x986   :  { %v2109_v5 = vpop.f32.mrf.mxu3  ;;  %v2127_v23 = vadd.f32 %v3624_v50, %v1874_v4  ;;  %v2192_v4 = vsel %vm906_vm10, %v2171_v54, 0  ;;  %v2141_v50 = vadd.f32 %v3629_v62, %v1641_v30 }
 0x987   :  { %v2163_v12 = vadd.f32 %v3642_v36, %v2109_v5  ;;  %v2142_v5 = vadd.f32 %v3630_v1, %v4821_v40  ;;  %v2015_v40 = vpop.f32.mrf.mxu1 }
 0x988   :  { %v2169_v36 = vpack.c.bf16 %v2141_v50, %v2140_v0 }
 0x989   :  { %v2170_v2 = vpack.c.bf16 %v2143_v3, %v2142_v5 }
 0x98d   :  { %v1876_v57 = vpop.f32.mrf.mxu2 }
 0x98e   :  { %v2128_v16 = vadd.f32 %v3625_v7, %v1876_v57  ;;  %v2111_v58 = vpop.f32.mrf.mxu3  ;;  %v2189_v7 = vsel %vm906_vm10, %v2170_v2, 0  ;;  %v3626_v57 = vld [vmem:[%s5075_s4 + $0xf0] sm:$0xff] }
 0x98f   :  { %v2164_v24 = vadd.f32 %v3643_v13, %v2111_v58  ;;  %v2186_v13 = vsel %vm906_vm10, %v2169_v36, 0  ;;  %v2017_v30 = vpop.f32.mrf.mxu1  ;;  %v2129_v53 = vadd.f32 %v3626_v57, %v2015_v40  ;;  %v4025_v58 = vld [vmem:[%s5072_s1 + $0x20] sm:$0xff] }
 0x990   :  { %v2167_v18 = vpack.c.bf16 %v2128_v16, %v2127_v23  ;;  %v2130_v51 = vadd.f32 %v3627_v59, %v2017_v30 }
 0x991   :  { %v2337_v29 = vpack.c.bf16 %v2164_v24, %v2163_v12 }
 0x993   :  { %2354 = vmatpush.bf16.msrb.mxu1 %v2337_v29 }
 0x995   :  { %v2062_v33 = vpop.f32.mrf.mxu2 }
 0x996   :  { %v2146_v25 = vadd.f32 %v3634_v20, %v2062_v33  ;;  %v4029_v20 = vld [vmem:[%s5072_s1 + $0x40] sm:$0xff] }
 0x997   :  { %2355 = vmatpush.bf16.msrb.mxu1 %v2336_v27 }
 0x99b   :  { %2356 = vmatpush.bf16.msrb.mxu1 %v2335_v35 }
 0x99d   :  { %v2064_v39 = vpop.f32.mrf.mxu2 }
 0x99e   :  { %v2147_v22 = vadd.f32 %v3635_v21, %v2064_v39 }
 0x99f   :  { %2357 = vmatpush.bf16.msrb.mxu1 %v2334_v38 }
 0x9a0   :  { %v2172_v42 = vpack.c.bf16 %v2147_v22, %v2146_v25  ;;  %v4030_v22 = vld [vmem:[%s5072_s1 + $0x48] sm:$0xff] }
 0x9a2   :  { %v2195_v46 = vsel %vm906_vm10, %v2172_v42, 0 }
 0x9a3   :  { %2201 = vmatpush.bf16.xpose.msra.mxu0 %v2195_v46  ;;  %v4031_v46 = vld [vmem:[%s5072_s1 + $0x50] sm:$0xff] }
 0x9ab   :  { %2202 = vmatpush.bf16.xpose.msra.mxu0 %v2192_v4 }
 0x9b3   :  { %2203 = vmatpush.bf16.xpose.msra.mxu0 %v2189_v7 }
 0x9bb   :  { %2204 = vmatpush.bf16.xpose.msra.mxu0 %v2186_v13 }
 0x9c2   :  { %3644 = vmatmul.msk.bf16.vlgmr.msra.gmra.mxu0 %vm906_vm10, %v2165_v52  ;;  %v2168_v52 = vpack.c.bf16 %v2130_v51, %v2129_v53 }
 0x9d2   :  { %3645 = vmatmul.msk.bf16.gmra.mxu0 %vm906_vm10, %v2166_v60  ;;  %v4024_v60 = vld [vmem:[%s5072_s1 + $0x18] sm:$0xff] }
 0x9e2   :  { %3646 = vmatmul.msk.bf16.gmra.mxu0 %vm906_vm10, %v2167_v18 }
 0x9f2   :  { %3647 = vmatmul.msk.bf16.gmra.mxu0 %vm906_vm10, %v2168_v52 }
 0xa3f   :  { %v2206_v55 = vpop.f32.mrf.mxu0 }
 0xa40   :  { %v2226_v56 = vmul.f32 0.25, %v2206_v55 }
 0xa42   :  { %v2234_v47 = vadd.f32 %v4024_v60, %v2226_v56 }
 0xa44   :  { %v2242_v17 = vsel %vm223_vm2, %v2234_v47, -inf }
 0xa45   :  { %2243 = vmax.xlane.f32.xlu1 %v2242_v17 }
 0xa47   :  { %v2208_v23 = vpop.f32.mrf.mxu0 }
 0xa48   :  { %v2227_v16 = vmul.f32 0.25, %v2208_v23 }
 0xa4a   :  { %v2235_v12 = vadd.f32 %v4025_v58, %v2227_v16 }
 0xa4c   :  { %v2245_v24 = vsel %vm223_vm2, %v2235_v12, -inf }
 0xa4d   :  { %2246 = vmax.xlane.f32.xlu2 %v2245_v24 }
 0xa4f   :  { %v2211_v63 = vpop.f32.mrf.mxu0 }
 0xa50   :  { %v2228_v18 = vmul.f32 0.25, %v2211_v63 }
 0xa52   :  { %v2236_v29 = vadd.f32 %v4026_v28, %v2228_v18 }
 0xa54   :  { %v2248_v31 = vsel %vm223_vm2, %v2236_v29, -inf }
 0xa55   :  { %2249 = vmax.xlane.f32.xlu0 %v2248_v31 }
 0xa57   :  { %v2213_v11 = vpop.f32.mrf.mxu0 }
 0xa58   :  { %v2229_v32 = vmul.f32 0.25, %v2213_v11 }
 0xa5a   :  { %v2237_v9 = vadd.f32 %v4027_v26, %v2229_v32 }
 0xa5c   :  { %v2251_v27 = vsel %vm223_vm2, %v2237_v9, -inf }
 0xa5d   :  { %2252 = vmax.xlane.f32.xlu1 %v2251_v27 }
 0xa5f   :  { %v2216_v33 = vpop.f32.mrf.mxu0 }
 0xa60   :  { %v2230_v10 = vmul.f32 0.25, %v2216_v33 }
 0xa62   :  { %v2238_v34 = vadd.f32 %v4028_v8, %v2230_v10 }
 0xa64   :  { %v2254_v35 = vsel %vm223_vm2, %v2238_v34, -inf }
 0xa65   :  { %2255 = vmax.xlane.f32.xlu2 %v2254_v35 }
 0xa67   :  { %v2218_v37 = vpop.f32.mrf.mxu0 }
 0xa68   :  { %v2231_v19 = vmul.f32 0.25, %v2218_v37 }
 0xa6a   :  { %v2239_v21 = vadd.f32 %v4029_v20, %v2231_v19 }
 0xa6c   :  { %v2257_v38 = vsel %vm223_vm2, %v2239_v21, -inf }
 0xa6d   :  { %2258 = vmax.xlane.f32.xlu0 %v2257_v38 }
 0xa6f   :  { %v2221_v39 = vpop.f32.mrf.mxu0 }
 0xa70   :  { %v2232_v25 = vmul.f32 0.25, %v2221_v39 }
 0xa72   :  { %v2240_v41 = vadd.f32 %v4030_v22, %v2232_v25 }
 0xa74   :  { %v2260_v42 = vsel %vm223_vm2, %v2240_v41, -inf }
 0xa75   :  { %2261 = vmax.xlane.f32.xlu1 %v2260_v42 }
 0xa77   :  { %v2223_v43 = vpop.f32.mrf.mxu0 }
 0xa78   :  { %v2233_v45 = vmul.f32 0.25, %v2223_v43 }
 0xa7a   :  { %v2241_v48 = vadd.f32 %v4031_v46, %v2233_v45 }
 0xa7c   :  { %v2263_v54 = vsel %vm223_vm2, %v2241_v48, -inf }
 0xa7d   :  { %2264 = vmax.xlane.f32.xlu2 %v2263_v54 }
 0xab8   :  { %v2244_v61 = vpop.xlane.xlu1 %2243 }
 0xab9   :  { %v2266_v1 = vsub.f32 %v2234_v47, %v2244_v61 }
 0xabb   :  { %v2274_v3 = vmul.f32 1.442695, %v2266_v1 }
 0xabd   :  { %3977 = vpow2.f32 %v2274_v3 }
 0xac0   :  { %v2247_v4 = vpop.xlane.xlu2 %2246 }
 0xac1   :  { %v2267_v5 = vsub.f32 %v2235_v12, %v2247_v4 }
 0xac3   :  { %v3978_v2 = vpop.eup %3977  ;;  %v2276_v62 = vmul.f32 1.442695, %v2267_v5 }
 0xac4   :  { %v2290_v6 = vsel %vm223_vm2, %v3978_v2, 0.0 }
 0xac5   :  { %3979 = vpow2.f32 %v2276_v62  ;;  %2291 = vadd.xlane.f32.xlu0 %v2290_v6 }
 0xac8   :  { %v2250_v50 = vpop.xlane.xlu0 %2249 }
 0xac9   :  { %v2268_v7 = vsub.f32 %v2236_v29, %v2250_v50  ;;  %v3898_v50 = vld [vmem:[%s5076_s5 + $0x20] sm:$0xff] }
 0xaca   :  { %2399 = vmatpush.bf16.msrb.mxu2 %v3898_v50 }
 0xacb   :  { %v3980_v0 = vpop.eup %3979  ;;  %v2278_v36 = vmul.f32 1.442695, %v2268_v7  ;;  %v3899_v7 = vld [vmem:[%s5076_s5 + $0x28] sm:$0xff] }
 0xacc   :  { %v2293_v13 = vsel %vm223_vm2, %v3980_v0, 0.0  ;;  %2429 = vmatpush.bf16.msra.mxu3 %v3899_v7 }
 0xacd   :  { %3981 = vpow2.f32 %v2278_v36  ;;  %2294 = vadd.xlane.f32.xlu1 %v2293_v13  ;;  %v3900_v36 = vld [vmem:[%s5076_s5 + $0x30] sm:$0xff] }
 0xace   :  { %2458 = vmatpush.bf16.msra.mxu2 %v3900_v36 }
 0xad0   :  { %v2253_v40 = vpop.xlane.xlu1 %2252 }
 0xad1   :  { %v2269_v30 = vsub.f32 %v2237_v9, %v2253_v40 }
 0xad3   :  { %v3982_v59 = vpop.eup %3981  ;;  %v2280_v57 = vmul.f32 1.442695, %v2269_v30  ;;  %v3901_v30 = vld [vmem:[%s5076_s5 + $0x38] sm:$0xff] }
 0xad4   :  { %v2296_v51 = vsel %vm223_vm2, %v3982_v59, 0.0  ;;  %2487 = vmatpush.bf16.msrb.mxu3 %v3901_v30 }
 0xad5   :  { %3983 = vpow2.f32 %v2280_v57  ;;  %2297 = vadd.xlane.f32.xlu2 %v2296_v51 }
 0xad8   :  { %v2256_v53 = vpop.xlane.xlu2 %2255 }
 0xad9   :  { %v2270_v52 = vsub.f32 %v2238_v34, %v2256_v53 }
 0xadb   :  { %v3984_v55 = vpop.eup %3983  ;;  %v2282_v56 = vmul.f32 1.442695, %v2270_v52 }
 0xadc   :  { %v2299_v60 = vsel %vm223_vm2, %v3984_v55, 0.0 }
 0xadd   :  { %3985 = vpow2.f32 %v2282_v56  ;;  %2300 = vadd.xlane.f32.xlu0 %v2299_v60 }
 0xae0   :  { %v2259_v47 = vpop.xlane.xlu0 %2258 }
 0xae1   :  { %v2271_v17 = vsub.f32 %v2239_v21, %v2259_v47 }
 0xae3   :  { %v3986_v23 = vpop.eup %3985  ;;  %v2284_v16 = vmul.f32 1.442695, %v2271_v17 }
 0xae4   :  { %v2302_v58 = vsel %vm223_vm2, %v3986_v23, 0.0 }
 0xae5   :  { %3987 = vpow2.f32 %v2284_v16  ;;  %2303 = vadd.xlane.f32.xlu1 %v2302_v58  ;;  %v2406_v58 = vperm.slane %v4735_v49, 2 }
 0xae8   :  { %v2262_v12 = vpop.xlane.xlu1 %2261 }
 0xae9   :  { %v2272_v24 = vsub.f32 %v2240_v41, %v2262_v12 }
 0xaeb   :  { %v3988_v63 = vpop.eup %3987  ;;  %v2286_v18 = vmul.f32 1.442695, %v2272_v24 }
 0xaec   :  { %v2305_v28 = vsel %vm223_vm2, %v3988_v63, 0.0 }
 0xaed   :  { %3989 = vpow2.f32 %v2286_v18  ;;  %2306 = vadd.xlane.f32.xlu2 %v2305_v28 }
 0xaf0   :  { %v2265_v29 = vpop.xlane.xlu2 %2264 }
 0xaf1   :  { %v2273_v31 = vsub.f32 %v2241_v48, %v2265_v29 }
 0xaf3   :  { %v3990_v11 = vpop.eup %3989  ;;  %v2288_v32 = vmul.f32 1.442695, %v2273_v31 }
 0xaf4   :  { %v2308_v26 = vsel %vm223_vm2, %v3990_v11, 0.0 }
 0xaf5   :  { %3991 = vpow2.f32 %v2288_v32  ;;  %2309 = vadd.xlane.f32.xlu0 %v2308_v26 }
 0xafb   :  { %v3992_v9 = vpop.eup %3991 }
 0xafc   :  { %v2311_v27 = vsel %vm223_vm2, %v3992_v9, 0.0 }
 0xafd   :  { %2312 = vadd.xlane.f32.xlu1 %v2311_v27 }
 0xb38   :  { %v2292_v33 = vpop.xlane.xlu0 %2291 }
 0xb39   :  { %3993 = vrcp.f32 %v2292_v33 }
 0xb3f   :  { %v3994_v8 = vpop.eup %3993 }
 0xb40   :  { %v2295_v10 = vpop.xlane.xlu1 %2294  ;;  %v2322_v35 = vmul.f32 %v3994_v8, %v3978_v2 }
 0xb41   :  { %3995 = vrcp.f32 %v2295_v10 }
 0xb47   :  { %v3996_v34 = vpop.eup %3995 }
 0xb48   :  { %v2323_v37 = vmul.f32 %v3996_v34, %v3980_v0  ;;  %v2298_v20 = vpop.xlane.xlu2 %2297 }
 0xb49   :  { %3997 = vrcp.f32 %v2298_v20 }
 0xb4a   :  { %v2330_v19 = vpack.c.bf16 %v2323_v37, %v2322_v35 }
 0xb4c   :  { %3648 = vmatmul.msk.bf16.vlgmr.msrb.gmra.mxu1 %vm223_vm2, %v2330_v19 }
 0xb4f   :  { %v3998_v38 = vpop.eup %3997 }
 0xb50   :  { %v2301_v21 = vpop.xlane.xlu0 %2300  ;;  %v2324_v25 = vmul.f32 %v3998_v38, %v3982_v59 }
 0xb51   :  { %3999 = vrcp.f32 %v2301_v21 }
 0xb57   :  { %v4000_v39 = vpop.eup %3999 }
 0xb58   :  { %v2325_v22 = vmul.f32 %v4000_v39, %v3984_v55  ;;  %v2304_v42 = vpop.xlane.xlu1 %2303 }
 0xb59   :  { %4001 = vrcp.f32 %v2304_v42  ;;  %v3904_v42 = vld [vmem:[%s5077_s6 + $0x30] sm:$0xff] }
 0xb5a   :  { %v2331_v41 = vpack.c.bf16 %v2325_v22, %v2324_v25 }
 0xb5c   :  { %3649 = vmatmul.msk.bf16.gmra.mxu1 %vm223_vm2, %v2331_v41  ;;  %v3905_v41 = vld [vmem:[%s5077_s6 + $0x38] sm:$0xff] }
 0xb5f   :  { %v4002_v45 = vpop.eup %4001 }
 0xb60   :  { %v2307_v43 = vpop.xlane.xlu2 %2306  ;;  %v2326_v48 = vmul.f32 %v4002_v45, %v3986_v23 }
 0xb61   :  { %4003 = vrcp.f32 %v2307_v43  ;;  %v3903_v43 = vld [vmem:[%s5077_s6 + $0x28] sm:$0xff] }
 0xb67   :  { %v4004_v46 = vpop.eup %4003 }
 0xb68   :  { %v2327_v54 = vmul.f32 %v4004_v46, %v3988_v63  ;;  %v2310_v1 = vpop.xlane.xlu0 %2309 }
 0xb69   :  { %4005 = vrcp.f32 %v2310_v1 }
 0xb6a   :  { %v2332_v61 = vpack.c.bf16 %v2327_v54, %v2326_v48  ;;  %v3902_v54 = vld [vmem:[%s5077_s6 + $0x20] sm:$0xff] }
 0xb6c   :  { %3650 = vmatmul.msk.bf16.gmra.mxu1 %vm223_vm2, %v2332_v61 }
 0xb6f   :  { %v4006_v4 = vpop.eup %4005 }
 0xb70   :  { %v2313_v3 = vpop.xlane.xlu1 %2312  ;;  %v2328_v2 = vmul.f32 %v4006_v4, %v3990_v11 }
 0xb71   :  { %4007 = vrcp.f32 %v2313_v3 }
 0xb77   :  { %v4008_v5 = vpop.eup %4007 }
 0xb78   :  { %v2329_v62 = vmul.f32 %v4008_v5, %v3992_v9 }
 0xb7a   :  { %v2333_v6 = vpack.c.bf16 %v2329_v62, %v2328_v2 }
 0xb7c   :  { %3651 = vmatmul.msk.bf16.gmra.mxu1 %vm223_vm2, %v2333_v6 }
 0xbc9   :  { %v2359_v0 = vpop.f32.mrf.mxu1 }
 0xbd1   :  { %v2361_v13 = vpop.f32.mrf.mxu1 }
 0xbd2   :  { %v2379_v40 = vpack.c.bf16 %v2361_v13, %v2359_v0 }
 0xbd4   :  { %3658 = vmatmul.msk.bf16.vlgmr.msrb.gmra.mxu2 %vm906_vm10, %v2379_v40 }
 0xbd5   :  { %2590 = vmatpush.bf16.msrb.mxu2 %v3905_v41 }
 0xbd9   :  { %v2364_v59 = vpop.f32.mrf.mxu1  ;;  %2591 = vmatpush.bf16.msrb.mxu2 %v3904_v42 }
 0xbdd   :  { %2592 = vmatpush.bf16.msrb.mxu2 %v3903_v43 }
 0xbe1   :  { %v2366_v57 = vpop.f32.mrf.mxu1  ;;  %2593 = vmatpush.bf16.msrb.mxu2 %v3902_v54  ;;  %v3907_v54 = vld [vmem:[%s5078_s7 + $0x48] sm:$0xff] }
 0xbe2   :  { %v2409_v51 = vpack.c.bf16 %v2366_v57, %v2364_v59  ;;  %v2542_v59 = vperm.slane %v4735_v49, 3 }
 0xbe4   :  { %3665 = vmatmul.msk.bf16.vlgmr.msra.gmra.mxu3 %vm906_vm10, %v2409_v51 }
 0xbe9   :  { %v2369_v53 = vpop.f32.mrf.mxu1 }
 0xbf1   :  { %v2371_v52 = vpop.f32.mrf.mxu1 }
 0xbf2   :  { %v2438_v55 = vpack.c.bf16 %v2371_v52, %v2369_v53  ;;  %v2545_v52 = vperm.slane %v4735_v49, 4 }
 0xbf4   :  { %3672 = vmatmul.msk.bf16.vlgmr.msra.gmra.mxu2 %vm906_vm10, %v2438_v55 }
 0xbf9   :  { %v2374_v56 = vpop.f32.mrf.mxu1 }
 0xc01   :  { %v2376_v60 = vpop.f32.mrf.mxu1 }
 0xc02   :  { %v2467_v47 = vpack.c.bf16 %v2376_v60, %v2374_v56 }
 0xc04   :  { %3679 = vmatmul.msk.bf16.vlgmr.msrb.gmra.mxu3 %vm906_vm10, %v2467_v47 }
 0xc57   :  { %v2401_v17 = vpop.f32.mrf.mxu2 }
 0xc58   :  { %v2407_v63 = vadd.f32 %v2406_v58, %v2401_v17 }
 0xc5f   :  { %v2403_v16 = vpop.f32.mrf.mxu2 }
 0xc60   :  { %v2408_v11 = vadd.f32 %v2406_v58, %v2403_v16  ;;  %v2558_v16 = vperm.slane %v4735_v49, 5 }
 0xc67   :  { %v2431_v23 = vpop.f32.mrf.mxu3 }
 0xc68   :  { %v2436_v18 = vadd.f32 %v2431_v23, %v2407_v63  ;;  %v3913_v63 = vld [vmem:[%s5078_s7 + $0x78] sm:$0xff] }
 0xc69   :  { %2747 = vmatpush.bf16.msra.mxu3 %v3913_v63 }
 0xc6f   :  { %v2433_v12 = vpop.f32.mrf.mxu3 }
 0xc70   :  { %v2437_v9 = vadd.f32 %v2433_v12, %v2408_v11 }
 0xc77   :  { %v2460_v24 = vpop.f32.mrf.mxu2 }
 0xc78   :  { %v2465_v28 = vadd.f32 %v2460_v24, %v2436_v18 }
 0xc7f   :  { %v2462_v26 = vpop.f32.mrf.mxu2 }
 0xc80   :  { %v2466_v33 = vadd.f32 %v2462_v26, %v2437_v9 }
 0xc87   :  { %v2489_v29 = vpop.f32.mrf.mxu3 }
 0xc88   :  { %v2494_v31 = vadd.f32 %v2489_v29, %v2465_v28 }
 0xc8a   :  { %v4967_v32 = vadd.f32 %v2494_v31, %v4611_v14  ;;  %v3912_v31 = vld [vmem:[%s5078_s7 + $0x70] sm:$0xff] }
 0xc8b   :  { %2748 = vmatpush.bf16.msra.mxu3 %v3912_v31 }
 0xc8c   :  { %v2498_v27 = vsel %vm223_vm2, %v4967_v32, 0.0 }
 0xc8d   :  { %2499 = vadd.xlane.f32.xlu2 %v2498_v27  ;;  %v3911_v27 = vld [vmem:[%s5078_s7 + $0x68] sm:$0xff] }
 0xc8f   :  { %v2491_v10 = vpop.f32.mrf.mxu3  ;;  %2749 = vmatpush.bf16.msra.mxu3 %v3911_v27 }
 0xc90   :  { %v2495_v8 = vadd.f32 %v2491_v10, %v2466_v33 }
 0xc92   :  { %v4972_v34 = vadd.f32 %v2495_v8, %v4616_v15  ;;  %v3910_v8 = vld [vmem:[%s5078_s7 + $0x60] sm:$0xff] }
 0xc93   :  { %2750 = vmatpush.bf16.msra.mxu3 %v3910_v8 }
 0xc94   :  { %v2501_v35 = vsel %vm223_vm2, %v4972_v34, 0.0 }
 0xc95   :  { %2502 = vadd.xlane.f32.xlu0 %v2501_v35 }
 0xd00   :  { %v2500_v37 = vpop.xlane.xlu2 %2499 }
 0xd01   :  { %v2504_v14 = vmul.f32 %v2500_v37, %v4182_v44 }
 0xd03   :  { %v2506_v19 = vsub.f32 %v4967_v32, %v2504_v14 }
 0xd05   :  { %v2508_v20 = vmul.f32 %v2506_v19, %v2506_v19 }
 0xd07   :  { %v2510_v21 = vsel %vm223_vm2, %v2508_v20, 0.0  ;;  %v3909_v20 = vld [vmem:[%s5078_s7 + $0x58] sm:$0xff] }
 0xd08   :  { %2511 = vadd.xlane.f32.xlu1 %v2510_v21  ;;  %v2503_v38 = vpop.xlane.xlu0 %2502  ;;  %2751 = vmatpush.bf16.msra.mxu3 %v3909_v20 }
 0xd09   :  { %v2505_v39 = vmul.f32 %v2503_v38, %v4182_v44 }
 0xd0b   :  { %v2507_v25 = vsub.f32 %v4972_v34, %v2505_v39 }
 0xd0d   :  { %v2509_v15 = vmul.f32 %v2507_v25, %v2507_v25 }
 0xd0f   :  { %v2513_v22 = vsel %vm223_vm2, %v2509_v15, 0.0  ;;  %v3908_v15 = vld [vmem:[%s5078_s7 + $0x50] sm:$0xff] }
 0xd10   :  { %2514 = vadd.xlane.f32.xlu2 %v2513_v22  ;;  %2752 = vmatpush.bf16.msra.mxu3 %v3908_v15 }
 0xd14   :  { %2753 = vmatpush.bf16.msra.mxu3 %v3907_v54 }
 0xd7b   :  { %v2512_v45 = vpop.xlane.xlu1 %2511 }
 0xd7c   :  { %v2516_v46 = vmul.f32 %v2512_v45, %v4182_v44 }
 0xd7e   :  { %v2518_v48 = vadd.f32 1e-06, %v2516_v46 }
 0xd80   :  { %4009 = vrsqrt.f32 %v2518_v48  ;;  %vm2526_vm6 = vweird.f32 %v2518_v48 }
 0xd83   :  { %v2515_v61 = vpop.xlane.xlu2 %2514 }
 0xd84   :  { %v2517_v1 = vmul.f32 %v2515_v61, %v4182_v44 }
 0xd86   :  { %v4010_v3 = vpop.eup %4009  ;;  %v2519_v4 = vadd.f32 1e-06, %v2517_v1 }
 0xd87   :  { %v2521_v5 = vmul.f32 %v4010_v3, %v2518_v48  ;;  %vm2527_vm10 = vweird.f32 %v4010_v3 }
 0xd88   :  { %4011 = vrsqrt.f32 %v2519_v4  ;;  %vm2528_vm7 = vmor %vm2526_vm6, %vm2527_vm10  ;;  %vm2536_vm9 = vweird.f32 %v2519_v4 }
 0xd89   :  { %v2522_v2 = vmul.f32 %v4010_v3, %v2521_v5 }
 0xd8b   :  { %v2523_v62 = vmul.f32 0.5, %v2522_v2 }
 0xd8d   :  { %v2524_v6 = vsub.f32 1.5, %v2523_v62 }
 0xd8e   :  { %v4012_v50 = vpop.eup %4011 }
 0xd8f   :  { %v2525_v7 = vmul.f32 %v4010_v3, %v2524_v6  ;;  %v2531_v0 = vmul.f32 %v4012_v50, %v2519_v4  ;;  %vm2537_vm8 = vweird.f32 %v4012_v50  ;;  %v3906_v6 = vld [vmem:[%s5078_s7 + $0x40] sm:$0xff] }
 0xd90   :  { %vm2538_vm11 = vmor %vm2536_vm9, %vm2537_vm8  ;;  %2754 = vmatpush.bf16.msra.mxu3 %v3906_v6 }
 0xd91   :  { %v2532_v36 = vmul.f32 %v4012_v50, %v2531_v0  ;;  %v2529_v13 = vsel %vm2528_vm7, %v4010_v3, %v2525_v7  ;;  %vm2769_vm7 = vcmask 517120  }
 0xd92   :  { %v2540_v57 = vmul.f32 %v2529_v13, %v2506_v19 }
 0xd93   :  { %v2533_v40 = vmul.f32 0.5, %v2532_v36 }
 0xd94   :  { %v2543_v55 = vmul.f32 %v2542_v59, %v2540_v57 }
 0xd95   :  { %v2534_v30 = vsub.f32 1.5, %v2533_v40 }
 0xd96   :  { %v2546_v47 = vadd.f32 %v2545_v52, %v2543_v55 }
 0xd97   :  { %v2535_v51 = vmul.f32 %v4012_v50, %v2534_v30 }
 0xd99   :  { %v2539_v53 = vsel %vm2538_vm11, %v4012_v50, %v2535_v51 }
 0xd9a   :  { %v2541_v56 = vmul.f32 %v2539_v53, %v2507_v25 }
 0xd9c   :  { %v2544_v60 = vmul.f32 %v2542_v59, %v2541_v56 }
 0xd9e   :  { %v2547_v17 = vadd.f32 %v2545_v52, %v2544_v60 }
 0xda0   :  { %v2548_v23 = vpack.c.bf16 %v2547_v17, %v2546_v47 }
 0xda2   :  { %3704 = vmatmul.msk.bf16.vlgmr.msrb.gmra.mxu2 %vm223_vm2, %v2548_v23 }
 0xe25   :  { %v2595_v58 = vpop.f32.mrf.mxu2 }
 0xe26   :  { %v5000_v12 = vadd.f32 %v2595_v58, %v2558_v16 }
 0xe28   :  { %v5003_v24 = vmul.f32 0.70710677, %v5000_v12  ;;  %v2600_v20 = vmul.f32 0.5, %v5000_v12 }
 0xe2a   :  { %v2604_v18 = vand.u32 2147483647, %v5003_v24  ;;  %vm2670_vm10 = vcmp.lt.f32.partialorder %v5003_v24, 0.0 }
 0xe2c   :  { %v2606_v28 = vmul.f32 0.3275911, %v2604_v18  ;;  %v2658_v45 = vsub.f32 0.0, %v2604_v18 }
 0xe2d   :  { %v2597_v29 = vpop.f32.mrf.mxu2 }
 0xe2e   :  { %v2608_v11 = vadd.f32 1.0, %v2606_v28  ;;  %v5012_v26 = vadd.f32 %v2597_v29, %v2558_v16  ;;  %v2660_v4 = vmul.f32 %v2658_v45, %v2604_v18 }
 0xe30   :  { %4013 = vrcp.f32 %v2608_v11  ;;  %v5015_v9 = vmul.f32 0.70710677, %v5012_v26  ;;  %v2621_v21 = vand.u32 2147483648, %v2608_v11  ;;  %v2619_v39 = vand.u32 2147483647, %v2608_v11 }
 0xe31   :  { %vm2615_vm13 = vweird.f32 %v2608_v11  ;;  %v2662_v36 = vmul.f32 1.442695, %v2660_v4  ;;  %v3914_v4 = vld [vmem:[%s5080_s9] sm:$0xff] }
 0xe32   :  { %v2605_v33 = vand.u32 2147483647, %v5015_v9  ;;  %v2622_v22 = vor.u32 1.1754944e-38, %v2621_v21  ;;  %vm2620_vm15 = vcmp.eq.f32.partialorder %v2619_v39, 8.507059e+37  ;;  %vm2671_vm6 = vcmp.lt.f32.partialorder %v5015_v9, 0.0 }
 0xe33   :  { %v2601_v21 = vmul.f32 0.5, %v5012_v26 }
 0xe34   :  { %v2607_v10 = vmul.f32 0.3275911, %v2605_v33  ;;  %v2659_v59 = vsub.f32 0.0, %v2605_v33 }
 0xe36   :  { %v4014_v35 = vpop.eup %4013  ;;  %v2609_v14 = vadd.f32 1.0, %v2607_v10  ;;  %v2661_v55 = vmul.f32 %v2659_v59, %v2605_v33 }
 0xe37   :  { %v2611_v37 = vmul.f32 %v4014_v35, %v2608_v11  ;;  %vm2616_vm12 = vweird.f32 %v4014_v35 }
 0xe38   :  { %4015 = vrcp.f32 %v2609_v14  ;;  %vm2617_vm14 = vmor %vm2615_vm13, %vm2616_vm12  ;;  %v2636_v3 = vand.u32 2147483648, %v2609_v14  ;;  %v2634_v2 = vand.u32 2147483647, %v2609_v14  ;;  %vm2630_vm3 = vweird.f32 %v2609_v14 }
 0xe39   :  { %v2612_v19 = vsub.f32 1.0, %v2611_v37  ;;  %4017 = vpow2.f32 %v2662_v36  ;;  %v2664_v23 = vmul.f32 1.442695, %v2661_v55 }
 0xe3a   :  { %v2637_v0 = vor.u32 1.1754944e-38, %v2636_v3  ;;  %vm2635_vm5 = vcmp.eq.f32.partialorder %v2634_v2, 8.507059e+37 }
 0xe3b   :  { %v2613_v38 = vmul.f32 %v4014_v35, %v2612_v19  ;;  %4019 = vpow2.f32 %v2664_v23 }
 0xe3d   :  { %v2614_v25 = vadd.f32 %v4014_v35, %v2613_v38 }
 0xe3e   :  { %v4016_v41 = vpop.eup %4015 }
 0xe3f   :  { %v2618_v42 = vsel %vm2617_vm14, %v4014_v35, %v2614_v25  ;;  %v2626_v46 = vmul.f32 %v4016_v41, %v2609_v14  ;;  %vm2631_vm1 = vweird.f32 %v4016_v41  ;;  %v4018_v16 = vpop.eup %4017 }
 0xe40   :  { %v2623_v43 = vsel %vm2620_vm15, %v2622_v22, %v2618_v42  ;;  %vm2632_vm4 = vmor %vm2630_vm3, %vm2631_vm1 }
 0xe41   :  { %v2640_v48 = vmul.f32 1.0614054, %v2623_v43  ;;  %v2627_v61 = vsub.f32 1.0, %v2626_v46  ;;  %v4020_v10 = vpop.eup %4019 }
 0xe43   :  { %v2642_v1 = vadd.f32 -1.4531521, %v2640_v48  ;;  %v2628_v5 = vmul.f32 %v4016_v41, %v2627_v61 }
 0xe45   :  { %v2644_v62 = vmul.f32 %v2642_v1, %v2623_v43  ;;  %v2629_v50 = vadd.f32 %v4016_v41, %v2628_v5 }
 0xe47   :  { %v2646_v7 = vadd.f32 1.4214138, %v2644_v62  ;;  %v2633_v13 = vsel %vm2632_vm4, %v4016_v41, %v2629_v50  ;;  %v2698_v41 = vperm.slane %v4735_v49, 6  ;;  %v3917_v49 = vld [vmem:[%s5080_s9 + $0x18] sm:$0xff] }
 0xe48   :  { %v2638_v30 = vsel %vm2635_vm5, %v2637_v0, %v2633_v13  ;;  %2838 = vmatpush.bf16.msra.mxu2 %v3917_v49 }
 0xe49   :  { %v2648_v40 = vmul.f32 %v2646_v7, %v2623_v43  ;;  %v2641_v57 = vmul.f32 1.0614054, %v2638_v30 }
 0xe4b   :  { %v2650_v51 = vadd.f32 -0.28449672, %v2648_v40  ;;  %v2643_v53 = vadd.f32 -1.4531521, %v2641_v57  ;;  %v3920_v40 = vld [vmem:[%s5072_s1 + $0x10] ss:$0 sm:$0xff] }
 0xe4d   :  { %v2652_v52 = vmul.f32 %v2650_v51, %v2623_v43  ;;  %v2645_v56 = vmul.f32 %v2643_v53, %v2638_v30 }
 0xe4f   :  { %v2654_v60 = vadd.f32 0.2548296, %v2652_v52  ;;  %v2647_v47 = vadd.f32 1.4214138, %v2645_v56  ;;  %v3922_v52 = vld [vmem:[%s5072_s1 + $0x12] ss:$0 sm:$0xff] }
 0xe51   :  { %v2656_v17 = vmul.f32 %v2654_v60, %v2623_v43  ;;  %v2649_v58 = vmul.f32 %v2647_v47, %v2638_v30 }
 0xe53   :  { %v2666_v63 = vmul.f32 %v4018_v16, %v2656_v17  ;;  %v2651_v18 = vadd.f32 -0.28449672, %v2649_v58 }
 0xe55   :  { %v2668_v28 = vsub.f32 1.0, %v2666_v63  ;;  %v2653_v29 = vmul.f32 %v2651_v18, %v2638_v30 }
 0xe57   :  { %v2655_v31 = vadd.f32 0.2548296, %v2653_v29  ;;  %v2672_v11 = vsub.f32 0.0, %v2668_v28 }
 0xe59   :  { %v2657_v27 = vmul.f32 %v2655_v31, %v2638_v30  ;;  %v2674_v33 = vsel %vm2670_vm10, %v2672_v11, %v2668_v28 }
 0xe5a   :  { %v2676_v14 = vadd.f32 1.0, %v2674_v33 }
 0xe5b   :  { %v2667_v8 = vmul.f32 %v4020_v10, %v2657_v27 }
 0xe5c   :  { %v2678_v39 = vmul.f32 %v2676_v14, %v2600_v20 }
 0xe5d   :  { %v2669_v35 = vsub.f32 1.0, %v2667_v8 }
 0xe5f   :  { %v2673_v37 = vsub.f32 0.0, %v2669_v35 }
 0xe61   :  { %v2675_v19 = vsel %vm2671_vm6, %v2673_v37, %v2669_v35 }
 0xe62   :  { %v2677_v38 = vadd.f32 1.0, %v2675_v19 }
 0xe64   :  { %v2679_v25 = vmul.f32 %v2677_v38, %v2601_v21 }
 0xe66   :  { %v2680_v15 = vpack.c.bf16 %v2679_v25, %v2678_v39 }
 0xe68   :  { %2755 = vmatmul.bf16.vlgmr.msra.gmra.mxu3 %v2680_v15 }
 0xeeb   :  { %v2756_v22 = vpop.f32.mrf.mxu3 }
 0xeec   :  { %v2757_v42 = vadd.f32 %v2756_v22, %v2698_v41 }
 0xeee   :  { %v2761_v9 = vadd.f32 %v2757_v42, %v4967_v32  ;;  %v3916_v32 = vld [vmem:[%s5080_s9 + $0x10] sm:$0xff] }
 0xeef   :  { %2839 = vmatpush.bf16.msra.mxu2 %v3916_v32 }
 0xef3   :  { %v2758_v24 = vpop.f32.mrf.mxu3 }
 0xef4   :  { %v2759_v43 = vadd.f32 %v2758_v24, %v2698_v41 }
 0xef6   :  { %v2762_v45 = vadd.f32 %v2759_v43, %v4972_v34  ;;  %v3915_v34 = vld [vmem:[%s5080_s9 + $0x8] sm:$0xff] }
 0xef7   :  { %2840 = vmatpush.bf16.msra.mxu2 %v3915_v34 }
 0xef8   :  { %v2764_v46 = vrot.slane %v2762_v45, 7 }
 0xefa   :  { %v2766_v12 = vsel %vm202_vm0, %v2761_v9, %v2764_v46 }
 0xefb   :  { %v2770_v26 = vsel %vm2769_vm7, %v2766_v12, 0.0  ;;  %2841 = vmatpush.bf16.msra.mxu2 %v3914_v4 }
 0xefc   :  { %2771 = vadd.xlane.f32.xlu0 %v2770_v26 }
 0xf6f   :  { %v2772_v48 = vpop.xlane.xlu0 %2771 }
 0xf70   :  { %v2773_v54 = vmul.f32 %v2772_v48, %v4182_v44 }
 0xf72   :  { %v2774_v61 = vsub.f32 %v2766_v12, %v2773_v54 }
 0xf74   :  { %v2775_v1 = vmul.f32 %v2774_v61, %v2774_v61 }
 0xf76   :  { %v2776_v3 = vsel %vm2769_vm7, %v2775_v1, 0.0 }
 0xf77   :  { %2777 = vadd.xlane.f32.xlu1 %v2776_v3 }
 0xfea   :  { %v2778_v5 = vpop.xlane.xlu1 %2777 }
 0xfeb   :  { %v2779_v2 = vmul.f32 %v2778_v5, %v4182_v44  ;;  %v3921_v44 = vld [vmem:[%s5072_s1 + $0x11] ss:$0 sm:$0xff] }
 0xfed   :  { %v2780_v62 = vadd.f32 1e-06, %v2779_v2 }
 0xfef   :  { %4021 = vrsqrt.f32 %v2780_v62  ;;  %vm2787_vm8 = vweird.f32 %v2780_v62 }
 0xff5   :  { %v4022_v6 = vpop.eup %4021 }
 0xff6   :  { %v2782_v50 = vmul.f32 %v4022_v6, %v2780_v62  ;;  %vm2788_vm0 = vweird.f32 %v4022_v6 }
 0xff7   :  { %vm2789_vm9 = vmor %vm2787_vm8, %vm2788_vm0 }
 0xff8   :  { %v2783_v7 = vmul.f32 %v4022_v6, %v2782_v50 }
 0xffa   :  { %v2784_v0 = vmul.f32 0.5, %v2783_v7 }
 0xffc   :  { %v2785_v36 = vsub.f32 1.5, %v2784_v0 }
 0xffe   :  { %v2786_v13 = vmul.f32 %v4022_v6, %v2785_v36 }
0x1000   :  { %v2790_v30 = vsel %vm2789_vm9, %v4022_v6, %v2786_v13 }
0x1001   :  { %v2791_v59 = vmul.f32 %v2790_v30, %v2774_v61 }
0x1003   :  { %v2793_v57 = vmul.f32 %v3920_v40, %v2791_v59 }
0x1005   :  { %v2795_v51 = vadd.f32 %v3921_v44, %v2793_v57 }
0x1007   :  { %v2796_v53 = vpack.c.bf16 %v2795_v51, %v2795_v51 }
0x1009   :  { %3769 = vmatmul.msk.bf16.vlgmr.msra.gmra.mxu2 %vm223_vm2, %v2796_v53 }
0x108c   :  { %v2843_v55 = vpop.f32.mrf.mxu2 }
0x108d   :  { %v2844_v56 = vadd.f32 %v3922_v52, %v2843_v55 }
0x108f   :  { %2847 = vst [vmem:[#allocation2] sm:$0x3] %v2844_v56 }
0x1090   :  { %2858 = dma.vmem_to_hbm [thread:$0]  %s2854_s20, 32, %s2856_s23, [#allocation3]  }
0x1094   :  { %v2845_v60 = vpop.f32.mrf.mxu2 }
0x1095   :  { %4056 = dma.done.wait [#allocation3], 32  }
0x1096   :  { %4057 = vsyncadd [#allocation3], 4294967264 }
0x1097   :  { %2863 = vsyncpa [#allocation3], 1 }

</bundles_post_ra>
